<compile_context>
chip_gen: v5e
topology: v5e:2x2
jax: 0.10.0
libtpu: 0.0.40
codegen_flags: <defaults>
</compile_context>

<pallas_src>
import functools

import jax
import jax.numpy as jnp
from jax import lax
from jax.experimental import pallas as pl
from jax.experimental.pallas import tpu as pltpu


# -----------------------------------------------------------------------------
# Pallas kernel (one grid step = one tile of NT documents, docs in lanes)
# -----------------------------------------------------------------------------
def _doc_encoder_kernel(x_ref, wih_ref, bi_ref, whhf_ref, whhb_ref, bhhn_ref,
                        w0_ref, docb0_ref, w1_ref, out_ref, gi_ref, rnn_ref):
    H2, NT = out_ref.shape            # [2H, n_tile]
    H = H2 // 2
    H3 = 3 * H
    TN = gi_ref.shape[1]              # T * n_tile
    T = TN // NT
    f32 = jnp.float32

    # ---- hoisted input projection: ONE MXU matmul for all timesteps and both
    # directions; input biases + r/z hidden biases are folded into bi_ref.
    gi_ref[...] = (jnp.dot(wih_ref[...], x_ref[0], preferred_element_type=f32)
                   + bi_ref[...])                                  # [6H, T*NT]

    # ---- loop-invariant loads / broadcasts (hoisted out of the recurrence) --
    whh_f = whhf_ref[...]             # [3H, H] f32 (recurrence stays f32)
    whh_b = whhb_ref[...]
    bhn_f = jnp.broadcast_to(bhhn_ref[0:H, :], (H, NT))
    bhn_b = jnp.broadcast_to(bhhn_ref[H:H2, :], (H, NT))

    def gru_gates(gi, gh, h, bhn):
        r = jax.nn.sigmoid(gi[0:H] + gh[0:H])
        z = jax.nn.sigmoid(gi[H:2 * H] + gh[H:2 * H])
        n = jnp.tanh(gi[2 * H:H3] + r * (gh[2 * H:H3] + bhn))
        return n + z * (h - n)                     # == (1 - z) * n + z * h

    # ---- fused, fully-unrolled bidirectional recurrence ---------------------
    # fwd step t and bwd step T-1-t share an iteration -> 2 independent dots
    # per iteration (ILP on the latency-bound chain); static Python unroll
    # gives the LLO scheduler full cross-step visibility.
    # TODO(synk): for very long documents (T >> 16) switch to a fori_loop over
    # a time-major 3-D scratch to bound unrolled code size / live ranges.
    h_f = jnp.zeros((H, NT), f32)
    h_b = jnp.zeros((H, NT), f32)
    for t in range(T):
        tb = T - 1 - t
        cf = t * NT                   # static, 128-aligned lane offsets
        cb = tb * NT
        gh_f = jnp.dot(whh_f, h_f, preferred_element_type=f32)
        gh_b = jnp.dot(whh_b, h_b, preferred_element_type=f32)
        h_f = gru_gates(gi_ref[0:H3, cf:cf + NT], gh_f, h_f, bhn_f)
        h_b = gru_gates(gi_ref[H3:2 * H3, cb:cb + NT], gh_b, h_b, bhn_b)
        rnn_ref[0:H, cf:cf + NT] = h_f
        rnn_ref[H:H2, cb:cb + NT] = h_b

    # ---- attention MLP: one matmul over all T*NT positions ------------------
    # doc-vector projection + fc0 bias are pre-folded into docb0 ([A, 1]).
    temp = jnp.tanh(jnp.dot(w0_ref[...], rnn_ref[...],
                            preferred_element_type=f32)
                    + docb0_ref[...])                              # [A, T*NT]
    # fc_layer_1 (A -> 1): VPU multiply + sublane reduction.  Its bias is a
    # constant shift per document, so it cancels in the softmax and is dropped.
    ws = jnp.sum(temp * w1_ref[...], axis=0, keepdims=True)        # [1, T*NT]

    # ---- softmax over time + weighted sum, documents stay in lanes ----------
    scores = [ws[:, t * NT:(t + 1) * NT] for t in range(T)]        # T x [1, NT]
    m = scores[0]
    for t in range(1, T):
        m = jnp.maximum(m, scores[t])
    denom = jnp.zeros((1, NT), f32)
    acc = jnp.zeros((H2, NT), f32)
    for t in range(T):
        e_t = jnp.exp(scores[t] - m)
        denom = denom + e_t
        acc = acc + rnn_ref[:, t * NT:(t + 1) * NT] * e_t
    out_ref[...] = acc * pl.reciprocal(denom, approx=True)         # [2H, NT]


# -----------------------------------------------------------------------------
# Generation-aware tiling helpers
# -----------------------------------------------------------------------------
def _vmem_capacity_bytes():
    # 128 MiB on v5e/v6e, 64 MiB per TensorCore on v7x; conservative fallback.
    try:
        return int(pltpu.get_tpu_info().vmem_capacity_bytes)
    except Exception:
        return 64 * 1024 * 1024


def _pick_n_tile(N, T, D, H, itemsize, vmem_cap):
    f32 = 4
    # Per-document VMEM footprint of one grid step.
    per_doc = (2 * T * D * itemsize        # double-buffered input block
               + 8 * H * T * f32           # gi (6H) + rnn (2H) scratch
               + 2 * 2 * H * f32)          # double-buffered output block
    budget = max(vmem_cap // 2 - (4 << 20), 4 << 20)
    n_budget = max(128, (budget // max(per_doc, 1)) // 128 * 128)
    n_need = pl.cdiv(N, 128) * 128         # docs padded to a lane multiple
    n_tile = min(n_budget, 512, n_need)
    # Guarantee >= 2 grid steps once N is large enough so both v7x TensorCores
    # get work (and the input/output DMA pipeline has something to overlap).
    if n_need >= 2 * 128:
        half = pl.cdiv(pl.cdiv(n_need, 2), 128) * 128
        n_tile = min(n_tile, half)
    return int(n_tile)


# -----------------------------------------------------------------------------
# Wrapper
# -----------------------------------------------------------------------------
@functools.partial(jax.jit,
                   static_argnames=("hidden_size_rnn", "hidden_size_att",
                                    "n_tile", "compute_dtype"))
def document_encoder(inputs, document_vector, params, *, hidden_size_rnn,
                     hidden_size_att, n_tile=None, compute_dtype=jnp.float32):
    """inputs: [N, T, D]; document_vector: [2H]; returns [N, 2H] float32.

    compute_dtype only affects x / W_ih of the hoisted input projection
    (recurrence and attention stay f32); leave it at f32 on v5e.
    """
    N, T, D = inputs.shape
    H = hidden_size_rnn
    A = hidden_size_att
    H2, H3 = 2 * H, 3 * H
    cdt = jnp.dtype(compute_dtype)
    f32 = jnp.float32

    vmem_cap = _vmem_capacity_bytes()
    if n_tile is None:
        n_tile = _pick_n_tile(N, T, D, H, cdt.itemsize, vmem_cap)
    else:
        n_tile = max(128, ((int(n_tile) + 127) // 128) * 128)   # lane-aligned
    n_pad = pl.cdiv(N, n_tile) * n_tile
    n_grid = n_pad // n_tile

    # ---- input packing: cast FIRST, then transpose/pad to docs-in-lanes -----
    # x_packed[g, d, t*n_tile + j] = inputs[g*n_tile + j, t, d]
    # TODO(synk): the packing transpose is still an XLA-side HBM round trip of
    # the (small) input; it could be fused into the kernel with an in-kernel
    # relayout if the input ever becomes the dominant HBM traffic.
    x = inputs.astype(cdt)
    x = jnp.pad(x, ((0, n_pad - N), (0, 0), (0, 0)))
    x = x.reshape(n_grid, n_tile, T, D)
    x_packed = jnp.transpose(x, (0, 3, 2, 1)).reshape(n_grid, D, T * n_tile)

    # ---- weight re-layout (all matrices stay in their PyTorch orientation) --
    wih_cat = jnp.concatenate([params["wih_f"], params["wih_b"]],
                              axis=0).astype(cdt)                  # [6H, D]

    def _fold_bias(bih, bhh):
        # Fold b_ih (all gates) and b_hh for the r/z gates into the hoisted
        # projection; the n-gate hidden bias must stay inside r * (.).
        return (bih + jnp.concatenate([bhh[:H2], jnp.zeros((H,), f32)]))

    bi_fold = jnp.concatenate(
        [_fold_bias(params["bih_f"].astype(f32), params["bhh_f"].astype(f32)),
         _fold_bias(params["bih_b"].astype(f32), params["bhh_b"].astype(f32))]
    ).reshape(2 * H3, 1)                                           # [6H, 1]
    whh_f = params["whh_f"].astype(f32)                            # [3H, H]
    whh_b = params["whh_b"].astype(f32)
    bhhn = jnp.concatenate([params["bhh_f"][2 * H:],
                            params["bhh_b"][2 * H:]]).reshape(H2, 1).astype(f32)

    w0 = params["w0"].astype(f32)                                  # [A, 4H]
    w0_rnn = w0[:, :H2]                                            # [A, 2H]
    doc_b0 = (w0[:, H2:] @ document_vector.astype(f32).reshape(H2, 1)
              + params["b0"].reshape(A, 1)).astype(f32)            # [A, 1]
    w1col = params["w1"].reshape(1, A).T.astype(f32)               # [A, 1]
    # params["b1"] is intentionally not passed: it cancels in the softmax.

    args = (x_packed, wih_cat, bi_fold, whh_f, whh_b, bhhn,
            w0_rnn, doc_b0, w1col)

    def _full_spec(a):
        return pl.BlockSpec(a.shape, lambda i, _nd=a.ndim: (0,) * _nd)

    in_specs = [pl.BlockSpec((1, D, T * n_tile), lambda i: (i, 0, 0))]
    in_specs += [_full_spec(a) for a in args[1:]]
    out_specs = pl.BlockSpec((H2, n_tile), lambda i: (0, i))

    # ---- VMEM limit tied to the actual per-step estimate and chip capacity --
    weight_bytes = sum(int(a.size) * a.dtype.itemsize for a in args[1:])
    est = (2 * D * T * n_tile * cdt.itemsize       # double-buffered input block
           + 2 * H2 * n_tile * 4                   # double-buffered output block
           + 8 * H * T * n_tile * 4                # gi + rnn scratch
           + 2 * weight_bytes)
    vmem_limit = int(min(max(2 * est, 16 << 20),
                         max(vmem_cap - (8 << 20), 16 << 20)))
    # TODO(synk): weights could be single-buffered via pipeline_mode=
    # pl.Buffered(1) to save VMEM on v7x; at KB-scale weights it is negligible.

    out2d = pl.pallas_call(
        _doc_encoder_kernel,
        out_shape=jax.ShapeDtypeStruct((H2, n_pad), f32),
        grid_spec=pltpu.PrefetchScalarGridSpec(
            num_scalar_prefetch=0,
            grid=(n_grid,),
            in_specs=in_specs,
            out_specs=out_specs,
            scratch_shapes=[
                pltpu.VMEM((2 * H3, T * n_tile), f32),   # gi (both directions)
                pltpu.VMEM((H2, T * n_tile), f32),       # GRU outputs fwd|bwd
            ]),
        compiler_params=pltpu.CompilerParams(
            dimension_semantics=("parallel",),
            vmem_limit_bytes=vmem_limit),
    )(*args)

    # Lane-dense [2H, n_pad] slab -> [N, 2H]; the transpose is a tiny XLA op.
    return out2d[:, :N].T


# -----------------------------------------------------------------------------
# Deterministic parameter init (shapes follow nn.GRU / nn.Linear conventions)
# -----------------------------------------------------------------------------
def init_params(key, input_size, hidden_size_rnn, hidden_size_att):
    D, H, A = input_size, hidden_size_rnn, hidden_size_att
    ks = jax.random.split(key, 12)

    def u(k, shape, scale):
        return jax.random.uniform(k, shape, jnp.float32, -scale, scale)

    s = 1.0 / jnp.sqrt(H)
    s0 = 1.0 / jnp.sqrt(4 * H)
    s1 = 1.0 / jnp.sqrt(A)
    return {
        # GRU forward direction (gate order r, z, n — PyTorch convention)
        "wih_f": u(ks[0], (3 * H, D), s), "whh_f": u(ks[1], (3 * H, H), s),
        "bih_f": u(ks[2], (3 * H,), s),   "bhh_f": u(ks[3], (3 * H,), s),
        # GRU reverse direction
        "wih_b": u(ks[4], (3 * H, D), s), "whh_b": u(ks[5], (3 * H, H), s),
        "bih_b": u(ks[6], (3 * H,), s),   "bhh_b": u(ks[7], (3 * H,), s),
        # fc_layer_0: 4H -> A ; fc_layer_1: A -> 1
        "w0": u(ks[8], (A, 4 * H), s0), "b0": u(ks[9], (A,), s0),
        "w1": u(ks[10], (1, A), s1),    "b1": u(ks[11], (1,), s1),
    }


# -----------------------------------------------------------------------------
# Pure-JAX reference (mirrors the PyTorch forward exactly)
# -----------------------------------------------------------------------------
def reference_forward(inputs, document_vector, params, H):
    N, T, D = inputs.shape

    def gru_dir(x_seq, wih, whh, bih, bhh):
        def step(h, x_t):
            gi = x_t @ wih.T + bih
            gh = h @ whh.T + bhh
            r = jax.nn.sigmoid(gi[:, 0:H] + gh[:, 0:H])
            z = jax.nn.sigmoid(gi[:, H:2 * H] + gh[:, H:2 * H])
            n = jnp.tanh(gi[:, 2 * H:] + r * gh[:, 2 * H:])
            h_new = (1.0 - z) * n + z * h
            return h_new, h_new
        h0 = jnp.zeros((x_seq.shape[1], H), jnp.float32)
        _, hs = lax.scan(step, h0, x_seq)
        return hs                                                    # [T, N, H]

    x_tm = jnp.transpose(inputs, (1, 0, 2))
    hf = gru_dir(x_tm, params["wih_f"], params["whh_f"],
                 params["bih_f"], params["bhh_f"])
    hb = gru_dir(x_tm[::-1], params["wih_b"], params["whh_b"],
                 params["bih_b"], params["bhh_b"])[::-1]
    rnn = jnp.transpose(jnp.concatenate([hf, hb], -1), (1, 0, 2))    # [N, T, 2H]

    doc = jnp.broadcast_to(document_vector[None, None, :], (N, T, 2 * H))
    q = jnp.concatenate([rnn, doc], axis=2)                          # [N, T, 4H]
    tmp = jnp.tanh(q @ params["w0"].T + params["b0"])
    sc = tmp @ params["w1"].T + params["b1"]                         # [N, T, 1]
    p = jax.nn.softmax(sc, axis=1)
    return jnp.sum(rnn * p, axis=1)                                  # [N, 2H]


# -----------------------------------------------------------------------------
if __name__ == "__main__":
    num_documents = 12
    document_length = 8
    input_size = 16
    hidden_size_rnn = 16
    hidden_size_att = 16

    key = jax.random.PRNGKey(0)
    k_in, k_doc, k_par, k_in2 = jax.random.split(key, 4)

    inputs = jax.random.normal(
        k_in, (num_documents, document_length, input_size), jnp.float32)
    document_vector = jax.random.normal(
        k_doc, (2 * hidden_size_rnn,), jnp.float32)
    params = init_params(k_par, input_size, hidden_size_rnn, hidden_size_att)

    # --- default tiling (single lane-aligned document tile) -------------------
    ref = reference_forward(inputs, document_vector, params, hidden_size_rnn)
    out = document_encoder(inputs, document_vector, params,
                           hidden_size_rnn=hidden_size_rnn,
                           hidden_size_att=hidden_size_att)
    out = jax.block_until_ready(out)
    assert out.shape == (num_documents, 2 * hidden_size_rnn)
    assert jnp.allclose(out, ref, atol=2e-3, rtol=2e-3), (
        float(jnp.max(jnp.abs(out - ref))))

    # --- multi-tile grid path (2 grid steps -> both TensorCores on v7x) -------
    n_docs2 = 200
    inputs2 = jax.random.normal(
        k_in2, (n_docs2, document_length, input_size), jnp.float32)
    ref2 = reference_forward(inputs2, document_vector, params, hidden_size_rnn)
    out2 = document_encoder(inputs2, document_vector, params,
                            hidden_size_rnn=hidden_size_rnn,
                            hidden_size_att=hidden_size_att,
                            n_tile=128)
    out2 = jax.block_until_ready(out2)
    assert out2.shape == (n_docs2, 2 * hidden_size_rnn)
    assert jnp.allclose(out2, ref2, atol=2e-3, rtol=2e-3), (
        float(jnp.max(jnp.abs(out2 - ref2))))

    # --- bf16 input-projection fast path (recurrence/attention stay f32) ------
    out_bf16 = document_encoder(inputs, document_vector, params,
                                hidden_size_rnn=hidden_size_rnn,
                                hidden_size_att=hidden_size_att,
                                compute_dtype=jnp.bfloat16)
    out_bf16 = jax.block_until_ready(out_bf16)
    assert out_bf16.shape == (num_documents, 2 * hidden_size_rnn)
    assert jnp.allclose(out_bf16, ref, atol=5e-2, rtol=5e-2), (
        float(jnp.max(jnp.abs(out_bf16 - ref))))

    print("KERNEL_OK")
</pallas_src>

<mosaic_0001>
module attributes {stable_mosaic.version = 11 : i64} {
  func.func @_doc_encoder_kernel(%arg0: i32, %arg1: memref<1x16x1024xf32, #tpu.memory_space<vmem>>, %arg2: memref<96x16xf32, #tpu.memory_space<vmem>>, %arg3: memref<96x1xf32, #tpu.memory_space<vmem>>, %arg4: memref<48x16xf32, #tpu.memory_space<vmem>>, %arg5: memref<48x16xf32, #tpu.memory_space<vmem>>, %arg6: memref<32x1xf32, #tpu.memory_space<vmem>>, %arg7: memref<16x32xf32, #tpu.memory_space<vmem>>, %arg8: memref<16x1xf32, #tpu.memory_space<vmem>>, %arg9: memref<16x1xf32, #tpu.memory_space<vmem>>, %arg10: memref<32x128xf32, #tpu.memory_space<vmem>>, %arg11: memref<96x1024xf32, #tpu.memory_space<vmem>>, %arg12: memref<32x1024xf32, #tpu.memory_space<vmem>>) attributes {dimension_semantics = [#tpu.dimension_semantics<parallel>], iteration_bounds = array<i64: 1>, scalar_prefetch = 0 : i64, scratch_operands = 2 : i64, tpu.core_type = #tpu.core_type<tc>, window_params = [{transform_indices = @transform_0, window_bounds = array<i64: 1, 16, 1024>}, {pipeline_mode = #tpu.pipeline_mode<synchronous>, transform_indices = @transform_1, window_bounds = array<i64: 96, 16>}, {pipeline_mode = #tpu.pipeline_mode<synchronous>, transform_indices = @transform_2, window_bounds = array<i64: 96, 1>}, {pipeline_mode = #tpu.pipeline_mode<synchronous>, transform_indices = @transform_3, window_bounds = array<i64: 48, 16>}, {pipeline_mode = #tpu.pipeline_mode<synchronous>, transform_indices = @transform_4, window_bounds = array<i64: 48, 16>}, {pipeline_mode = #tpu.pipeline_mode<synchronous>, transform_indices = @transform_5, window_bounds = array<i64: 32, 1>}, {pipeline_mode = #tpu.pipeline_mode<synchronous>, transform_indices = @transform_6, window_bounds = array<i64: 16, 32>}, {pipeline_mode = #tpu.pipeline_mode<synchronous>, transform_indices = @transform_7, window_bounds = array<i64: 16, 1>}, {pipeline_mode = #tpu.pipeline_mode<synchronous>, transform_indices = @transform_8, window_bounds = array<i64: 16, 1>}, {transform_indices = @transform_9, window_bounds = array<i64: 32, 128>}]} {
    %c0 = arith.constant 0 : index
    %c0_0 = arith.constant 0 : index
    %0 = vector.load %arg2[%c0, %c0_0] : memref<96x16xf32, #tpu.memory_space<vmem>>, vector<96x16xf32>
    %c0_1 = arith.constant 0 : index
    %c0_2 = arith.constant 0 : index
    %c0_3 = arith.constant 0 : index
    %1 = vector.load %arg1[%c0_1, %c0_2, %c0_3] : memref<1x16x1024xf32, #tpu.memory_space<vmem>>, vector<1x16x1024xf32>
    %2 = vector.shape_cast %1 : vector<1x16x1024xf32> to vector<16x1024xf32>
    %cst = arith.constant dense<0.000000e+00> : vector<96x1024xf32>
    %3 = tpu.matmul %0, %2, %cst {dimension_numbers = #tpu.dot_dimension_numbers<[1], [0], [0], [1], [0, 0, 1, 1], [], []>} : vector<96x16xf32>, vector<16x1024xf32>, vector<96x1024xf32> -> vector<96x1024xf32>
    %c0_4 = arith.constant 0 : index
    %c0_5 = arith.constant 0 : index
    %4 = vector.load %arg3[%c0_4, %c0_5] : memref<96x1xf32, #tpu.memory_space<vmem>>, vector<96x1xf32>
    %5 = vector.broadcast %4 : vector<96x1xf32> to vector<96x1024xf32>
    %6 = arith.addf %3, %5 : vector<96x1024xf32>
    %c0_6 = arith.constant 0 : index
    %c0_7 = arith.constant 0 : index
    %7 = vector.load %arg11[%c0_6, %c0_7] : memref<96x1024xf32, #tpu.memory_space<vmem>>, vector<96x1024xf32>
    tpu.vector_store %arg11[%c0_6, %c0_7], %6 {strides = array<i32>} : memref<96x1024xf32, #tpu.memory_space<vmem>>, vector<96x1024xf32>,
    %c0_8 = arith.constant 0 : index
    %c0_9 = arith.constant 0 : index
    %8 = vector.load %arg4[%c0_8, %c0_9] : memref<48x16xf32, #tpu.memory_space<vmem>>, vector<48x16xf32>
    %c0_10 = arith.constant 0 : index
    %c0_11 = arith.constant 0 : index
    %9 = vector.load %arg5[%c0_10, %c0_11] : memref<48x16xf32, #tpu.memory_space<vmem>>, vector<48x16xf32>
    %c0_12 = arith.constant 0 : index
    %c0_13 = arith.constant 0 : index
    %10 = vector.load %arg6[%c0_12, %c0_13] : memref<32x1xf32, #tpu.memory_space<vmem>>, vector<16x1xf32>
    %11 = vector.shape_cast %10 : vector<16x1xf32> to vector<16x1xf32>
    %12 = vector.broadcast %11 : vector<16x1xf32> to vector<16x128xf32>
    %c16 = arith.constant 16 : index
    %c0_14 = arith.constant 0 : index
    %13 = vector.load %arg6[%c16, %c0_14] : memref<32x1xf32, #tpu.memory_space<vmem>>, vector<16x1xf32>
    %14 = vector.shape_cast %13 : vector<16x1xf32> to vector<16x1xf32>
    %15 = vector.broadcast %14 : vector<16x1xf32> to vector<16x128xf32>
    %cst_15 = arith.constant 0.000000e+00 : f32
    %16 = vector.broadcast %cst_15 : f32 to vector<16x128xf32>
    %cst_16 = arith.constant 0.000000e+00 : f32
    %17 = vector.broadcast %cst_16 : f32 to vector<16x128xf32>
    %cst_17 = arith.constant dense<0.000000e+00> : vector<48x128xf32>
    %18 = tpu.matmul %8, %16, %cst_17 {dimension_numbers = #tpu.dot_dimension_numbers<[1], [0], [0], [1], [0, 0, 1, 1], [], []>} : vector<48x16xf32>, vector<16x128xf32>, vector<48x128xf32> -> vector<48x128xf32>
    %cst_18 = arith.constant dense<0.000000e+00> : vector<48x128xf32>
    %19 = tpu.matmul %9, %17, %cst_18 {dimension_numbers = #tpu.dot_dimension_numbers<[1], [0], [0], [1], [0, 0, 1, 1], [], []>} : vector<48x16xf32>, vector<16x128xf32>, vector<48x128xf32> -> vector<48x128xf32>
    %c0_19 = arith.constant 0 : index
    %c0_20 = arith.constant 0 : index
    %20 = vector.load %arg11[%c0_19, %c0_20] : memref<96x1024xf32, #tpu.memory_space<vmem>>, vector<48x128xf32>
    %21 = vector.extract_strided_slice %20 {offsets = [0, 0], sizes = [16, 128], strides = [1, 1]} : vector<48x128xf32> to vector<16x128xf32>
    %22 = vector.extract_strided_slice %18 {offsets = [0, 0], sizes = [16, 128], strides = [1, 1]} : vector<48x128xf32> to vector<16x128xf32>
    %23 = arith.addf %21, %22 : vector<16x128xf32>
    %24 = arith.negf %23 : vector<16x128xf32>
    %25 = math.exp %24 : vector<16x128xf32>
    %cst_21 = arith.constant 1.000000e+00 : f32
    %26 = vector.broadcast %cst_21 : f32 to vector<16x128xf32>
    %27 = arith.addf %26, %25 : vector<16x128xf32>
    %28 = arith.divf %26, %27 : vector<16x128xf32>
    %29 = vector.extract_strided_slice %20 {offsets = [16, 0], sizes = [16, 128], strides = [1, 1]} : vector<48x128xf32> to vector<16x128xf32>
    %30 = vector.extract_strided_slice %18 {offsets = [16, 0], sizes = [16, 128], strides = [1, 1]} : vector<48x128xf32> to vector<16x128xf32>
    %31 = arith.addf %29, %30 : vector<16x128xf32>
    %32 = arith.negf %31 : vector<16x128xf32>
    %33 = math.exp %32 : vector<16x128xf32>
    %cst_22 = arith.constant 1.000000e+00 : f32
    %34 = vector.broadcast %cst_22 : f32 to vector<16x128xf32>
    %35 = arith.addf %34, %33 : vector<16x128xf32>
    %36 = arith.divf %34, %35 : vector<16x128xf32>
    %37 = vector.extract_strided_slice %20 {offsets = [32, 0], sizes = [16, 128], strides = [1, 1]} : vector<48x128xf32> to vector<16x128xf32>
    %38 = vector.extract_strided_slice %18 {offsets = [32, 0], sizes = [16, 128], strides = [1, 1]} : vector<48x128xf32> to vector<16x128xf32>
    %39 = arith.addf %38, %12 : vector<16x128xf32>
    %40 = arith.mulf %28, %39 : vector<16x128xf32>
    %41 = arith.addf %37, %40 : vector<16x128xf32>
    %42 = math.tanh %41 : vector<16x128xf32>
    %43 = arith.subf %16, %42 : vector<16x128xf32>
    %44 = arith.mulf %36, %43 : vector<16x128xf32>
    %45 = arith.addf %42, %44 : vector<16x128xf32>
    %c48 = arith.constant 48 : index
    %c896 = arith.constant 896 : index
    %46 = vector.load %arg11[%c48, %c896] : memref<96x1024xf32, #tpu.memory_space<vmem>>, vector<48x128xf32>
    %47 = vector.extract_strided_slice %46 {offsets = [0, 0], sizes = [16, 128], strides = [1, 1]} : vector<48x128xf32> to vector<16x128xf32>
    %48 = vector.extract_strided_slice %19 {offsets = [0, 0], sizes = [16, 128], strides = [1, 1]} : vector<48x128xf32> to vector<16x128xf32>
    %49 = arith.addf %47, %48 : vector<16x128xf32>
    %50 = arith.negf %49 : vector<16x128xf32>
    %51 = math.exp %50 : vector<16x128xf32>
    %cst_23 = arith.constant 1.000000e+00 : f32
    %52 = vector.broadcast %cst_23 : f32 to vector<16x128xf32>
    %53 = arith.addf %52, %51 : vector<16x128xf32>
    %54 = arith.divf %52, %53 : vector<16x128xf32>
    %55 = vector.extract_strided_slice %46 {offsets = [16, 0], sizes = [16, 128], strides = [1, 1]} : vector<48x128xf32> to vector<16x128xf32>
    %56 = vector.extract_strided_slice %19 {offsets = [16, 0], sizes = [16, 128], strides = [1, 1]} : vector<48x128xf32> to vector<16x128xf32>
    %57 = arith.addf %55, %56 : vector<16x128xf32>
    %58 = arith.negf %57 : vector<16x128xf32>
    %59 = math.exp %58 : vector<16x128xf32>
    %cst_24 = arith.constant 1.000000e+00 : f32
    %60 = vector.broadcast %cst_24 : f32 to vector<16x128xf32>
    %61 = arith.addf %60, %59 : vector<16x128xf32>
    %62 = arith.divf %60, %61 : vector<16x128xf32>
    %63 = vector.extract_strided_slice %46 {offsets = [32, 0], sizes = [16, 128], strides = [1, 1]} : vector<48x128xf32> to vector<16x128xf32>
    %64 = vector.extract_strided_slice %19 {offsets = [32, 0], sizes = [16, 128], strides = [1, 1]} : vector<48x128xf32> to vector<16x128xf32>
    %65 = arith.addf %64, %15 : vector<16x128xf32>
    %66 = arith.mulf %54, %65 : vector<16x128xf32>
    %67 = arith.addf %63, %66 : vector<16x128xf32>
    %68 = math.tanh %67 : vector<16x128xf32>
    %69 = arith.subf %17, %68 : vector<16x128xf32>
    %70 = arith.mulf %62, %69 : vector<16x128xf32>
    %71 = arith.addf %68, %70 : vector<16x128xf32>
    %c0_25 = arith.constant 0 : index
    %c0_26 = arith.constant 0 : index
    %72 = vector.load %arg12[%c0_25, %c0_26] : memref<32x1024xf32, #tpu.memory_space<vmem>>, vector<16x128xf32>
    tpu.vector_store %arg12[%c0_25, %c0_26], %45 {strides = array<i32>} : memref<32x1024xf32, #tpu.memory_space<vmem>>, vector<16x128xf32>,
    %c16_27 = arith.constant 16 : index
    %c896_28 = arith.constant 896 : index
    %73 = vector.load %arg12[%c16_27, %c896_28] : memref<32x1024xf32, #tpu.memory_space<vmem>>, vector<16x128xf32>
    tpu.vector_store %arg12[%c16_27, %c896_28], %71 {strides = array<i32>} : memref<32x1024xf32, #tpu.memory_space<vmem>>, vector<16x128xf32>,
    %cst_29 = arith.constant dense<0.000000e+00> : vector<48x128xf32>
    %74 = tpu.matmul %8, %45, %cst_29 {dimension_numbers = #tpu.dot_dimension_numbers<[1], [0], [0], [1], [0, 0, 1, 1], [], []>} : vector<48x16xf32>, vector<16x128xf32>, vector<48x128xf32> -> vector<48x128xf32>
    %cst_30 = arith.constant dense<0.000000e+00> : vector<48x128xf32>
    %75 = tpu.matmul %9, %71, %cst_30 {dimension_numbers = #tpu.dot_dimension_numbers<[1], [0], [0], [1], [0, 0, 1, 1], [], []>} : vector<48x16xf32>, vector<16x128xf32>, vector<48x128xf32> -> vector<48x128xf32>
    %c0_31 = arith.constant 0 : index
    %c128 = arith.constant 128 : index
    %76 = vector.load %arg11[%c0_31, %c128] : memref<96x1024xf32, #tpu.memory_space<vmem>>, vector<48x128xf32>
    %77 = vector.extract_strided_slice %76 {offsets = [0, 0], sizes = [16, 128], strides = [1, 1]} : vector<48x128xf32> to vector<16x128xf32>
    %78 = vector.extract_strided_slice %74 {offsets = [0, 0], sizes = [16, 128], strides = [1, 1]} : vector<48x128xf32> to vector<16x128xf32>
    %79 = arith.addf %77, %78 : vector<16x128xf32>
    %80 = arith.negf %79 : vector<16x128xf32>
    %81 = math.exp %80 : vector<16x128xf32>
    %cst_32 = arith.constant 1.000000e+00 : f32
    %82 = vector.broadcast %cst_32 : f32 to vector<16x128xf32>
    %83 = arith.addf %82, %81 : vector<16x128xf32>
    %84 = arith.divf %82, %83 : vector<16x128xf32>
    %85 = vector.extract_strided_slice %76 {offsets = [16, 0], sizes = [16, 128], strides = [1, 1]} : vector<48x128xf32> to vector<16x128xf32>
    %86 = vector.extract_strided_slice %74 {offsets = [16, 0], sizes = [16, 128], strides = [1, 1]} : vector<48x128xf32> to vector<16x128xf32>
    %87 = arith.addf %85, %86 : vector<16x128xf32>
    %88 = arith.negf %87 : vector<16x128xf32>
    %89 = math.exp %88 : vector<16x128xf32>
    %cst_33 = arith.constant 1.000000e+00 : f32
    %90 = vector.broadcast %cst_33 : f32 to vector<16x128xf32>
    %91 = arith.addf %90, %89 : vector<16x128xf32>
    %92 = arith.divf %90, %91 : vector<16x128xf32>
    %93 = vector.extract_strided_slice %76 {offsets = [32, 0], sizes = [16, 128], strides = [1, 1]} : vector<48x128xf32> to vector<16x128xf32>
    %94 = vector.extract_strided_slice %74 {offsets = [32, 0], sizes = [16, 128], strides = [1, 1]} : vector<48x128xf32> to vector<16x128xf32>
    %95 = arith.addf %94, %12 : vector<16x128xf32>
    %96 = arith.mulf %84, %95 : vector<16x128xf32>
    %97 = arith.addf %93, %96 : vector<16x128xf32>
    %98 = math.tanh %97 : vector<16x128xf32>
    %99 = arith.subf %45, %98 : vector<16x128xf32>
    %100 = arith.mulf %92, %99 : vector<16x128xf32>
    %101 = arith.addf %98, %100 : vector<16x128xf32>
    %c48_34 = arith.constant 48 : index
    %c768 = arith.constant 768 : index
    %102 = vector.load %arg11[%c48_34, %c768] : memref<96x1024xf32, #tpu.memory_space<vmem>>, vector<48x128xf32>
    %103 = vector.extract_strided_slice %102 {offsets = [0, 0], sizes = [16, 128], strides = [1, 1]} : vector<48x128xf32> to vector<16x128xf32>
    %104 = vector.extract_strided_slice %75 {offsets = [0, 0], sizes = [16, 128], strides = [1, 1]} : vector<48x128xf32> to vector<16x128xf32>
    %105 = arith.addf %103, %104 : vector<16x128xf32>
    %106 = arith.negf %105 : vector<16x128xf32>
    %107 = math.exp %106 : vector<16x128xf32>
    %cst_35 = arith.constant 1.000000e+00 : f32
    %108 = vector.broadcast %cst_35 : f32 to vector<16x128xf32>
    %109 = arith.addf %108, %107 : vector<16x128xf32>
    %110 = arith.divf %108, %109 : vector<16x128xf32>
    %111 = vector.extract_strided_slice %102 {offsets = [16, 0], sizes = [16, 128], strides = [1, 1]} : vector<48x128xf32> to vector<16x128xf32>
    %112 = vector.extract_strided_slice %75 {offsets = [16, 0], sizes = [16, 128], strides = [1, 1]} : vector<48x128xf32> to vector<16x128xf32>
    %113 = arith.addf %111, %112 : vector<16x128xf32>
    %114 = arith.negf %113 : vector<16x128xf32>
    %115 = math.exp %114 : vector<16x128xf32>
    %cst_36 = arith.constant 1.000000e+00 : f32
    %116 = vector.broadcast %cst_36 : f32 to vector<16x128xf32>
    %117 = arith.addf %116, %115 : vector<16x128xf32>
    %118 = arith.divf %116, %117 : vector<16x128xf32>
    %119 = vector.extract_strided_slice %102 {offsets = [32, 0], sizes = [16, 128], strides = [1, 1]} : vector<48x128xf32> to vector<16x128xf32>
    %120 = vector.extract_strided_slice %75 {offsets = [32, 0], sizes = [16, 128], strides = [1, 1]} : vector<48x128xf32> to vector<16x128xf32>
    %121 = arith.addf %120, %15 : vector<16x128xf32>
    %122 = arith.mulf %110, %121 : vector<16x128xf32>
    %123 = arith.addf %119, %122 : vector<16x128xf32>
    %124 = math.tanh %123 : vector<16x128xf32>
    %125 = arith.subf %71, %124 : vector<16x128xf32>
    %126 = arith.mulf %118, %125 : vector<16x128xf32>
    %127 = arith.addf %124, %126 : vector<16x128xf32>
    %c0_37 = arith.constant 0 : index
    %c128_38 = arith.constant 128 : index
    %128 = vector.load %arg12[%c0_37, %c128_38] : memref<32x1024xf32, #tpu.memory_space<vmem>>, vector<16x128xf32>
    tpu.vector_store %arg12[%c0_37, %c128_38], %101 {strides = array<i32>} : memref<32x1024xf32, #tpu.memory_space<vmem>>, vector<16x128xf32>,
    %c16_39 = arith.constant 16 : index
    %c768_40 = arith.constant 768 : index
    %129 = vector.load %arg12[%c16_39, %c768_40] : memref<32x1024xf32, #tpu.memory_space<vmem>>, vector<16x128xf32>
    tpu.vector_store %arg12[%c16_39, %c768_40], %127 {strides = array<i32>} : memref<32x1024xf32, #tpu.memory_space<vmem>>, vector<16x128xf32>,
    %cst_41 = arith.constant dense<0.000000e+00> : vector<48x128xf32>
    %130 = tpu.matmul %8, %101, %cst_41 {dimension_numbers = #tpu.dot_dimension_numbers<[1], [0], [0], [1], [0, 0, 1, 1], [], []>} : vector<48x16xf32>, vector<16x128xf32>, vector<48x128xf32> -> vector<48x128xf32>
    %cst_42 = arith.constant dense<0.000000e+00> : vector<48x128xf32>
    %131 = tpu.matmul %9, %127, %cst_42 {dimension_numbers = #tpu.dot_dimension_numbers<[1], [0], [0], [1], [0, 0, 1, 1], [], []>} : vector<48x16xf32>, vector<16x128xf32>, vector<48x128xf32> -> vector<48x128xf32>
    %c0_43 = arith.constant 0 : index
    %c256 = arith.constant 256 : index
    %132 = vector.load %arg11[%c0_43, %c256] : memref<96x1024xf32, #tpu.memory_space<vmem>>, vector<48x128xf32>
    %133 = vector.extract_strided_slice %132 {offsets = [0, 0], sizes = [16, 128], strides = [1, 1]} : vector<48x128xf32> to vector<16x128xf32>
    %134 = vector.extract_strided_slice %130 {offsets = [0, 0], sizes = [16, 128], strides = [1, 1]} : vector<48x128xf32> to vector<16x128xf32>
    %135 = arith.addf %133, %134 : vector<16x128xf32>
    %136 = arith.negf %135 : vector<16x128xf32>
    %137 = math.exp %136 : vector<16x128xf32>
    %cst_44 = arith.constant 1.000000e+00 : f32
    %138 = vector.broadcast %cst_44 : f32 to vector<16x128xf32>
    %139 = arith.addf %138, %137 : vector<16x128xf32>
    %140 = arith.divf %138, %139 : vector<16x128xf32>
    %141 = vector.extract_strided_slice %132 {offsets = [16, 0], sizes = [16, 128], strides = [1, 1]} : vector<48x128xf32> to vector<16x128xf32>
    %142 = vector.extract_strided_slice %130 {offsets = [16, 0], sizes = [16, 128], strides = [1, 1]} : vector<48x128xf32> to vector<16x128xf32>
    %143 = arith.addf %141, %142 : vector<16x128xf32>
    %144 = arith.negf %143 : vector<16x128xf32>
    %145 = math.exp %144 : vector<16x128xf32>
    %cst_45 = arith.constant 1.000000e+00 : f32
    %146 = vector.broadcast %cst_45 : f32 to vector<16x128xf32>
    %147 = arith.addf %146, %145 : vector<16x128xf32>
    %148 = arith.divf %146, %147 : vector<16x128xf32>
    %149 = vector.extract_strided_slice %132 {offsets = [32, 0], sizes = [16, 128], strides = [1, 1]} : vector<48x128xf32> to vector<16x128xf32>
    %150 = vector.extract_strided_slice %130 {offsets = [32, 0], sizes = [16, 128], strides = [1, 1]} : vector<48x128xf32> to vector<16x128xf32>
    %151 = arith.addf %150, %12 : vector<16x128xf32>
    %152 = arith.mulf %140, %151 : vector<16x128xf32>
    %153 = arith.addf %149, %152 : vector<16x128xf32>
    %154 = math.tanh %153 : vector<16x128xf32>
    %155 = arith.subf %101, %154 : vector<16x128xf32>
    %156 = arith.mulf %148, %155 : vector<16x128xf32>
    %157 = arith.addf %154, %156 : vector<16x128xf32>
    %c48_46 = arith.constant 48 : index
    %c640 = arith.constant 640 : index
    %158 = vector.load %arg11[%c48_46, %c640] : memref<96x1024xf32, #tpu.memory_space<vmem>>, vector<48x128xf32>
    %159 = vector.extract_strided_slice %158 {offsets = [0, 0], sizes = [16, 128], strides = [1, 1]} : vector<48x128xf32> to vector<16x128xf32>
    %160 = vector.extract_strided_slice %131 {offsets = [0, 0], sizes = [16, 128], strides = [1, 1]} : vector<48x128xf32> to vector<16x128xf32>
    %161 = arith.addf %159, %160 : vector<16x128xf32>
    %162 = arith.negf %161 : vector<16x128xf32>
    %163 = math.exp %162 : vector<16x128xf32>
    %cst_47 = arith.constant 1.000000e+00 : f32
    %164 = vector.broadcast %cst_47 : f32 to vector<16x128xf32>
    %165 = arith.addf %164, %163 : vector<16x128xf32>
    %166 = arith.divf %164, %165 : vector<16x128xf32>
    %167 = vector.extract_strided_slice %158 {offsets = [16, 0], sizes = [16, 128], strides = [1, 1]} : vector<48x128xf32> to vector<16x128xf32>
    %168 = vector.extract_strided_slice %131 {offsets = [16, 0], sizes = [16, 128], strides = [1, 1]} : vector<48x128xf32> to vector<16x128xf32>
    %169 = arith.addf %167, %168 : vector<16x128xf32>
    %170 = arith.negf %169 : vector<16x128xf32>
    %171 = math.exp %170 : vector<16x128xf32>
    %cst_48 = arith.constant 1.000000e+00 : f32
    %172 = vector.broadcast %cst_48 : f32 to vector<16x128xf32>
    %173 = arith.addf %172, %171 : vector<16x128xf32>
    %174 = arith.divf %172, %173 : vector<16x128xf32>
    %175 = vector.extract_strided_slice %158 {offsets = [32, 0], sizes = [16, 128], strides = [1, 1]} : vector<48x128xf32> to vector<16x128xf32>
    %176 = vector.extract_strided_slice %131 {offsets = [32, 0], sizes = [16, 128], strides = [1, 1]} : vector<48x128xf32> to vector<16x128xf32>
    %177 = arith.addf %176, %15 : vector<16x128xf32>
    %178 = arith.mulf %166, %177 : vector<16x128xf32>
    %179 = arith.addf %175, %178 : vector<16x128xf32>
    %180 = math.tanh %179 : vector<16x128xf32>
    %181 = arith.subf %127, %180 : vector<16x128xf32>
    %182 = arith.mulf %174, %181 : vector<16x128xf32>
    %183 = arith.addf %180, %182 : vector<16x128xf32>
    %c0_49 = arith.constant 0 : index
    %c256_50 = arith.constant 256 : index
    %184 = vector.load %arg12[%c0_49, %c256_50] : memref<32x1024xf32, #tpu.memory_space<vmem>>, vector<16x128xf32>
    tpu.vector_store %arg12[%c0_49, %c256_50], %157 {strides = array<i32>} : memref<32x1024xf32, #tpu.memory_space<vmem>>, vector<16x128xf32>,
    %c16_51 = arith.constant 16 : index
    %c640_52 = arith.constant 640 : index
    %185 = vector.load %arg12[%c16_51, %c640_52] : memref<32x1024xf32, #tpu.memory_space<vmem>>, vector<16x128xf32>
    tpu.vector_store %arg12[%c16_51, %c640_52], %183 {strides = array<i32>} : memref<32x1024xf32, #tpu.memory_space<vmem>>, vector<16x128xf32>,
    %cst_53 = arith.constant dense<0.000000e+00> : vector<48x128xf32>
    %186 = tpu.matmul %8, %157, %cst_53 {dimension_numbers = #tpu.dot_dimension_numbers<[1], [0], [0], [1], [0, 0, 1, 1], [], []>} : vector<48x16xf32>, vector<16x128xf32>, vector<48x128xf32> -> vector<48x128xf32>
    %cst_54 = arith.constant dense<0.000000e+00> : vector<48x128xf32>
    %187 = tpu.matmul %9, %183, %cst_54 {dimension_numbers = #tpu.dot_dimension_numbers<[1], [0], [0], [1], [0, 0, 1, 1], [], []>} : vector<48x16xf32>, vector<16x128xf32>, vector<48x128xf32> -> vector<48x128xf32>
    %c0_55 = arith.constant 0 : index
    %c384 = arith.constant 384 : index
    %188 = vector.load %arg11[%c0_55, %c384] : memref<96x1024xf32, #tpu.memory_space<vmem>>, vector<48x128xf32>
    %189 = vector.extract_strided_slice %188 {offsets = [0, 0], sizes = [16, 128], strides = [1, 1]} : vector<48x128xf32> to vector<16x128xf32>
    %190 = vector.extract_strided_slice %186 {offsets = [0, 0], sizes = [16, 128], strides = [1, 1]} : vector<48x128xf32> to vector<16x128xf32>
    %191 = arith.addf %189, %190 : vector<16x128xf32>
    %192 = arith.negf %191 : vector<16x128xf32>
    %193 = math.exp %192 : vector<16x128xf32>
    %cst_56 = arith.constant 1.000000e+00 : f32
    %194 = vector.broadcast %cst_56 : f32 to vector<16x128xf32>
    %195 = arith.addf %194, %193 : vector<16x128xf32>
    %196 = arith.divf %194, %195 : vector<16x128xf32>
    %197 = vector.extract_strided_slice %188 {offsets = [16, 0], sizes = [16, 128], strides = [1, 1]} : vector<48x128xf32> to vector<16x128xf32>
    %198 = vector.extract_strided_slice %186 {offsets = [16, 0], sizes = [16, 128], strides = [1, 1]} : vector<48x128xf32> to vector<16x128xf32>
    %199 = arith.addf %197, %198 : vector<16x128xf32>
    %200 = arith.negf %199 : vector<16x128xf32>
    %201 = math.exp %200 : vector<16x128xf32>
    %cst_57 = arith.constant 1.000000e+00 : f32
    %202 = vector.broadcast %cst_57 : f32 to vector<16x128xf32>
    %203 = arith.addf %202, %201 : vector<16x128xf32>
    %204 = arith.divf %202, %203 : vector<16x128xf32>
    %205 = vector.extract_strided_slice %188 {offsets = [32, 0], sizes = [16, 128], strides = [1, 1]} : vector<48x128xf32> to vector<16x128xf32>
    %206 = vector.extract_strided_slice %186 {offsets = [32, 0], sizes = [16, 128], strides = [1, 1]} : vector<48x128xf32> to vector<16x128xf32>
    %207 = arith.addf %206, %12 : vector<16x128xf32>
    %208 = arith.mulf %196, %207 : vector<16x128xf32>
    %209 = arith.addf %205, %208 : vector<16x128xf32>
    %210 = math.tanh %209 : vector<16x128xf32>
    %211 = arith.subf %157, %210 : vector<16x128xf32>
    %212 = arith.mulf %204, %211 : vector<16x128xf32>
    %213 = arith.addf %210, %212 : vector<16x128xf32>
    %c48_58 = arith.constant 48 : index
    %c512 = arith.constant 512 : index
    %214 = vector.load %arg11[%c48_58, %c512] : memref<96x1024xf32, #tpu.memory_space<vmem>>, vector<48x128xf32>
    %215 = vector.extract_strided_slice %214 {offsets = [0, 0], sizes = [16, 128], strides = [1, 1]} : vector<48x128xf32> to vector<16x128xf32>
    %216 = vector.extract_strided_slice %187 {offsets = [0, 0], sizes = [16, 128], strides = [1, 1]} : vector<48x128xf32> to vector<16x128xf32>
    %217 = arith.addf %215, %216 : vector<16x128xf32>
    %218 = arith.negf %217 : vector<16x128xf32>
    %219 = math.exp %218 : vector<16x128xf32>
    %cst_59 = arith.constant 1.000000e+00 : f32
    %220 = vector.broadcast %cst_59 : f32 to vector<16x128xf32>
    %221 = arith.addf %220, %219 : vector<16x128xf32>
    %222 = arith.divf %220, %221 : vector<16x128xf32>
    %223 = vector.extract_strided_slice %214 {offsets = [16, 0], sizes = [16, 128], strides = [1, 1]} : vector<48x128xf32> to vector<16x128xf32>
    %224 = vector.extract_strided_slice %187 {offsets = [16, 0], sizes = [16, 128], strides = [1, 1]} : vector<48x128xf32> to vector<16x128xf32>
    %225 = arith.addf %223, %224 : vector<16x128xf32>
    %226 = arith.negf %225 : vector<16x128xf32>
    %227 = math.exp %226 : vector<16x128xf32>
    %cst_60 = arith.constant 1.000000e+00 : f32
    %228 = vector.broadcast %cst_60 : f32 to vector<16x128xf32>
    %229 = arith.addf %228, %227 : vector<16x128xf32>
    %230 = arith.divf %228, %229 : vector<16x128xf32>
    %231 = vector.extract_strided_slice %214 {offsets = [32, 0], sizes = [16, 128], strides = [1, 1]} : vector<48x128xf32> to vector<16x128xf32>
    %232 = vector.extract_strided_slice %187 {offsets = [32, 0], sizes = [16, 128], strides = [1, 1]} : vector<48x128xf32> to vector<16x128xf32>
    %233 = arith.addf %232, %15 : vector<16x128xf32>
    %234 = arith.mulf %222, %233 : vector<16x128xf32>
    %235 = arith.addf %231, %234 : vector<16x128xf32>
    %236 = math.tanh %235 : vector<16x128xf32>
    %237 = arith.subf %183, %236 : vector<16x128xf32>
    %238 = arith.mulf %230, %237 : vector<16x128xf32>
    %239 = arith.addf %236, %238 : vector<16x128xf32>
    %c0_61 = arith.constant 0 : index
    %c384_62 = arith.constant 384 : index
    %240 = vector.load %arg12[%c0_61, %c384_62] : memref<32x1024xf32, #tpu.memory_space<vmem>>, vector<16x128xf32>
    tpu.vector_store %arg12[%c0_61, %c384_62], %213 {strides = array<i32>} : memref<32x1024xf32, #tpu.memory_space<vmem>>, vector<16x128xf32>,
    %c16_63 = arith.constant 16 : index
    %c512_64 = arith.constant 512 : index
    %241 = vector.load %arg12[%c16_63, %c512_64] : memref<32x1024xf32, #tpu.memory_space<vmem>>, vector<16x128xf32>
    tpu.vector_store %arg12[%c16_63, %c512_64], %239 {strides = array<i32>} : memref<32x1024xf32, #tpu.memory_space<vmem>>, vector<16x128xf32>,
    %cst_65 = arith.constant dense<0.000000e+00> : vector<48x128xf32>
    %242 = tpu.matmul %8, %213, %cst_65 {dimension_numbers = #tpu.dot_dimension_numbers<[1], [0], [0], [1], [0, 0, 1, 1], [], []>} : vector<48x16xf32>, vector<16x128xf32>, vector<48x128xf32> -> vector<48x128xf32>
    %cst_66 = arith.constant dense<0.000000e+00> : vector<48x128xf32>
    %243 = tpu.matmul %9, %239, %cst_66 {dimension_numbers = #tpu.dot_dimension_numbers<[1], [0], [0], [1], [0, 0, 1, 1], [], []>} : vector<48x16xf32>, vector<16x128xf32>, vector<48x128xf32> -> vector<48x128xf32>
    %c0_67 = arith.constant 0 : index
    %c512_68 = arith.constant 512 : index
    %244 = vector.load %arg11[%c0_67, %c512_68] : memref<96x1024xf32, #tpu.memory_space<vmem>>, vector<48x128xf32>
    %245 = vector.extract_strided_slice %244 {offsets = [0, 0], sizes = [16, 128], strides = [1, 1]} : vector<48x128xf32> to vector<16x128xf32>
    %246 = vector.extract_strided_slice %242 {offsets = [0, 0], sizes = [16, 128], strides = [1, 1]} : vector<48x128xf32> to vector<16x128xf32>
    %247 = arith.addf %245, %246 : vector<16x128xf32>
    %248 = arith.negf %247 : vector<16x128xf32>
    %249 = math.exp %248 : vector<16x128xf32>
    %cst_69 = arith.constant 1.000000e+00 : f32
    %250 = vector.broadcast %cst_69 : f32 to vector<16x128xf32>
    %251 = arith.addf %250, %249 : vector<16x128xf32>
    %252 = arith.divf %250, %251 : vector<16x128xf32>
    %253 = vector.extract_strided_slice %244 {offsets = [16, 0], sizes = [16, 128], strides = [1, 1]} : vector<48x128xf32> to vector<16x128xf32>
    %254 = vector.extract_strided_slice %242 {offsets = [16, 0], sizes = [16, 128], strides = [1, 1]} : vector<48x128xf32> to vector<16x128xf32>
    %255 = arith.addf %253, %254 : vector<16x128xf32>
    %256 = arith.negf %255 : vector<16x128xf32>
    %257 = math.exp %256 : vector<16x128xf32>
    %cst_70 = arith.constant 1.000000e+00 : f32
    %258 = vector.broadcast %cst_70 : f32 to vector<16x128xf32>
    %259 = arith.addf %258, %257 : vector<16x128xf32>
    %260 = arith.divf %258, %259 : vector<16x128xf32>
    %261 = vector.extract_strided_slice %244 {offsets = [32, 0], sizes = [16, 128], strides = [1, 1]} : vector<48x128xf32> to vector<16x128xf32>
    %262 = vector.extract_strided_slice %242 {offsets = [32, 0], sizes = [16, 128], strides = [1, 1]} : vector<48x128xf32> to vector<16x128xf32>
    %263 = arith.addf %262, %12 : vector<16x128xf32>
    %264 = arith.mulf %252, %263 : vector<16x128xf32>
    %265 = arith.addf %261, %264 : vector<16x128xf32>
    %266 = math.tanh %265 : vector<16x128xf32>
    %267 = arith.subf %213, %266 : vector<16x128xf32>
    %268 = arith.mulf %260, %267 : vector<16x128xf32>
    %269 = arith.addf %266, %268 : vector<16x128xf32>
    %c48_71 = arith.constant 48 : index
    %c384_72 = arith.constant 384 : index
    %270 = vector.load %arg11[%c48_71, %c384_72] : memref<96x1024xf32, #tpu.memory_space<vmem>>, vector<48x128xf32>
    %271 = vector.extract_strided_slice %270 {offsets = [0, 0], sizes = [16, 128], strides = [1, 1]} : vector<48x128xf32> to vector<16x128xf32>
    %272 = vector.extract_strided_slice %243 {offsets = [0, 0], sizes = [16, 128], strides = [1, 1]} : vector<48x128xf32> to vector<16x128xf32>
    %273 = arith.addf %271, %272 : vector<16x128xf32>
    %274 = arith.negf %273 : vector<16x128xf32>
    %275 = math.exp %274 : vector<16x128xf32>
    %cst_73 = arith.constant 1.000000e+00 : f32
    %276 = vector.broadcast %cst_73 : f32 to vector<16x128xf32>
    %277 = arith.addf %276, %275 : vector<16x128xf32>
    %278 = arith.divf %276, %277 : vector<16x128xf32>
    %279 = vector.extract_strided_slice %270 {offsets = [16, 0], sizes = [16, 128], strides = [1, 1]} : vector<48x128xf32> to vector<16x128xf32>
    %280 = vector.extract_strided_slice %243 {offsets = [16, 0], sizes = [16, 128], strides = [1, 1]} : vector<48x128xf32> to vector<16x128xf32>
    %281 = arith.addf %279, %280 : vector<16x128xf32>
    %282 = arith.negf %281 : vector<16x128xf32>
    %283 = math.exp %282 : vector<16x128xf32>
    %cst_74 = arith.constant 1.000000e+00 : f32
    %284 = vector.broadcast %cst_74 : f32 to vector<16x128xf32>
    %285 = arith.addf %284, %283 : vector<16x128xf32>
    %286 = arith.divf %284, %285 : vector<16x128xf32>
    %287 = vector.extract_strided_slice %270 {offsets = [32, 0], sizes = [16, 128], strides = [1, 1]} : vector<48x128xf32> to vector<16x128xf32>
    %288 = vector.extract_strided_slice %243 {offsets = [32, 0], sizes = [16, 128], strides = [1, 1]} : vector<48x128xf32> to vector<16x128xf32>
    %289 = arith.addf %288, %15 : vector<16x128xf32>
    %290 = arith.mulf %278, %289 : vector<16x128xf32>
    %291 = arith.addf %287, %290 : vector<16x128xf32>
    %292 = math.tanh %291 : vector<16x128xf32>
    %293 = arith.subf %239, %292 : vector<16x128xf32>
    %294 = arith.mulf %286, %293 : vector<16x128xf32>
    %295 = arith.addf %292, %294 : vector<16x128xf32>
    %c0_75 = arith.constant 0 : index
    %c512_76 = arith.constant 512 : index
    %296 = vector.load %arg12[%c0_75, %c512_76] : memref<32x1024xf32, #tpu.memory_space<vmem>>, vector<16x128xf32>
    tpu.vector_store %arg12[%c0_75, %c512_76], %269 {strides = array<i32>} : memref<32x1024xf32, #tpu.memory_space<vmem>>, vector<16x128xf32>,
    %c16_77 = arith.constant 16 : index
    %c384_78 = arith.constant 384 : index
    %297 = vector.load %arg12[%c16_77, %c384_78] : memref<32x1024xf32, #tpu.memory_space<vmem>>, vector<16x128xf32>
    tpu.vector_store %arg12[%c16_77, %c384_78], %295 {strides = array<i32>} : memref<32x1024xf32, #tpu.memory_space<vmem>>, vector<16x128xf32>,
    %cst_79 = arith.constant dense<0.000000e+00> : vector<48x128xf32>
    %298 = tpu.matmul %8, %269, %cst_79 {dimension_numbers = #tpu.dot_dimension_numbers<[1], [0], [0], [1], [0, 0, 1, 1], [], []>} : vector<48x16xf32>, vector<16x128xf32>, vector<48x128xf32> -> vector<48x128xf32>
    %cst_80 = arith.constant dense<0.000000e+00> : vector<48x128xf32>
    %299 = tpu.matmul %9, %295, %cst_80 {dimension_numbers = #tpu.dot_dimension_numbers<[1], [0], [0], [1], [0, 0, 1, 1], [], []>} : vector<48x16xf32>, vector<16x128xf32>, vector<48x128xf32> -> vector<48x128xf32>
    %c0_81 = arith.constant 0 : index
    %c640_82 = arith.constant 640 : index
    %300 = vector.load %arg11[%c0_81, %c640_82] : memref<96x1024xf32, #tpu.memory_space<vmem>>, vector<48x128xf32>
    %301 = vector.extract_strided_slice %300 {offsets = [0, 0], sizes = [16, 128], strides = [1, 1]} : vector<48x128xf32> to vector<16x128xf32>
    %302 = vector.extract_strided_slice %298 {offsets = [0, 0], sizes = [16, 128], strides = [1, 1]} : vector<48x128xf32> to vector<16x128xf32>
    %303 = arith.addf %301, %302 : vector<16x128xf32>
    %304 = arith.negf %303 : vector<16x128xf32>
    %305 = math.exp %304 : vector<16x128xf32>
    %cst_83 = arith.constant 1.000000e+00 : f32
    %306 = vector.broadcast %cst_83 : f32 to vector<16x128xf32>
    %307 = arith.addf %306, %305 : vector<16x128xf32>
    %308 = arith.divf %306, %307 : vector<16x128xf32>
    %309 = vector.extract_strided_slice %300 {offsets = [16, 0], sizes = [16, 128], strides = [1, 1]} : vector<48x128xf32> to vector<16x128xf32>
    %310 = vector.extract_strided_slice %298 {offsets = [16, 0], sizes = [16, 128], strides = [1, 1]} : vector<48x128xf32> to vector<16x128xf32>
    %311 = arith.addf %309, %310 : vector<16x128xf32>
    %312 = arith.negf %311 : vector<16x128xf32>
    %313 = math.exp %312 : vector<16x128xf32>
    %cst_84 = arith.constant 1.000000e+00 : f32
    %314 = vector.broadcast %cst_84 : f32 to vector<16x128xf32>
    %315 = arith.addf %314, %313 : vector<16x128xf32>
    %316 = arith.divf %314, %315 : vector<16x128xf32>
    %317 = vector.extract_strided_slice %300 {offsets = [32, 0], sizes = [16, 128], strides = [1, 1]} : vector<48x128xf32> to vector<16x128xf32>
    %318 = vector.extract_strided_slice %298 {offsets = [32, 0], sizes = [16, 128], strides = [1, 1]} : vector<48x128xf32> to vector<16x128xf32>
    %319 = arith.addf %318, %12 : vector<16x128xf32>
    %320 = arith.mulf %308, %319 : vector<16x128xf32>
    %321 = arith.addf %317, %320 : vector<16x128xf32>
    %322 = math.tanh %321 : vector<16x128xf32>
    %323 = arith.subf %269, %322 : vector<16x128xf32>
    %324 = arith.mulf %316, %323 : vector<16x128xf32>
    %325 = arith.addf %322, %324 : vector<16x128xf32>
    %c48_85 = arith.constant 48 : index
    %c256_86 = arith.constant 256 : index
    %326 = vector.load %arg11[%c48_85, %c256_86] : memref<96x1024xf32, #tpu.memory_space<vmem>>, vector<48x128xf32>
    %327 = vector.extract_strided_slice %326 {offsets = [0, 0], sizes = [16, 128], strides = [1, 1]} : vector<48x128xf32> to vector<16x128xf32>
    %328 = vector.extract_strided_slice %299 {offsets = [0, 0], sizes = [16, 128], strides = [1, 1]} : vector<48x128xf32> to vector<16x128xf32>
    %329 = arith.addf %327, %328 : vector<16x128xf32>
    %330 = arith.negf %329 : vector<16x128xf32>
    %331 = math.exp %330 : vector<16x128xf32>
    %cst_87 = arith.constant 1.000000e+00 : f32
    %332 = vector.broadcast %cst_87 : f32 to vector<16x128xf32>
    %333 = arith.addf %332, %331 : vector<16x128xf32>
    %334 = arith.divf %332, %333 : vector<16x128xf32>
    %335 = vector.extract_strided_slice %326 {offsets = [16, 0], sizes = [16, 128], strides = [1, 1]} : vector<48x128xf32> to vector<16x128xf32>
    %336 = vector.extract_strided_slice %299 {offsets = [16, 0], sizes = [16, 128], strides = [1, 1]} : vector<48x128xf32> to vector<16x128xf32>
    %337 = arith.addf %335, %336 : vector<16x128xf32>
    %338 = arith.negf %337 : vector<16x128xf32>
    %339 = math.exp %338 : vector<16x128xf32>
    %cst_88 = arith.constant 1.000000e+00 : f32
    %340 = vector.broadcast %cst_88 : f32 to vector<16x128xf32>
    %341 = arith.addf %340, %339 : vector<16x128xf32>
    %342 = arith.divf %340, %341 : vector<16x128xf32>
    %343 = vector.extract_strided_slice %326 {offsets = [32, 0], sizes = [16, 128], strides = [1, 1]} : vector<48x128xf32> to vector<16x128xf32>
    %344 = vector.extract_strided_slice %299 {offsets = [32, 0], sizes = [16, 128], strides = [1, 1]} : vector<48x128xf32> to vector<16x128xf32>
    %345 = arith.addf %344, %15 : vector<16x128xf32>
    %346 = arith.mulf %334, %345 : vector<16x128xf32>
    %347 = arith.addf %343, %346 : vector<16x128xf32>
    %348 = math.tanh %347 : vector<16x128xf32>
    %349 = arith.subf %295, %348 : vector<16x128xf32>
    %350 = arith.mulf %342, %349 : vector<16x128xf32>
    %351 = arith.addf %348, %350 : vector<16x128xf32>
    %c0_89 = arith.constant 0 : index
    %c640_90 = arith.constant 640 : index
    %352 = vector.load %arg12[%c0_89, %c640_90] : memref<32x1024xf32, #tpu.memory_space<vmem>>, vector<16x128xf32>
    tpu.vector_store %arg12[%c0_89, %c640_90], %325 {strides = array<i32>} : memref<32x1024xf32, #tpu.memory_space<vmem>>, vector<16x128xf32>,
    %c16_91 = arith.constant 16 : index
    %c256_92 = arith.constant 256 : index
    %353 = vector.load %arg12[%c16_91, %c256_92] : memref<32x1024xf32, #tpu.memory_space<vmem>>, vector<16x128xf32>
    tpu.vector_store %arg12[%c16_91, %c256_92], %351 {strides = array<i32>} : memref<32x1024xf32, #tpu.memory_space<vmem>>, vector<16x128xf32>,
    %cst_93 = arith.constant dense<0.000000e+00> : vector<48x128xf32>
    %354 = tpu.matmul %8, %325, %cst_93 {dimension_numbers = #tpu.dot_dimension_numbers<[1], [0], [0], [1], [0, 0, 1, 1], [], []>} : vector<48x16xf32>, vector<16x128xf32>, vector<48x128xf32> -> vector<48x128xf32>
    %cst_94 = arith.constant dense<0.000000e+00> : vector<48x128xf32>
    %355 = tpu.matmul %9, %351, %cst_94 {dimension_numbers = #tpu.dot_dimension_numbers<[1], [0], [0], [1], [0, 0, 1, 1], [], []>} : vector<48x16xf32>, vector<16x128xf32>, vector<48x128xf32> -> vector<48x128xf32>
    %c0_95 = arith.constant 0 : index
    %c768_96 = arith.constant 768 : index
    %356 = vector.load %arg11[%c0_95, %c768_96] : memref<96x1024xf32, #tpu.memory_space<vmem>>, vector<48x128xf32>
    %357 = vector.extract_strided_slice %356 {offsets = [0, 0], sizes = [16, 128], strides = [1, 1]} : vector<48x128xf32> to vector<16x128xf32>
    %358 = vector.extract_strided_slice %354 {offsets = [0, 0], sizes = [16, 128], strides = [1, 1]} : vector<48x128xf32> to vector<16x128xf32>
    %359 = arith.addf %357, %358 : vector<16x128xf32>
    %360 = arith.negf %359 : vector<16x128xf32>
    %361 = math.exp %360 : vector<16x128xf32>
    %cst_97 = arith.constant 1.000000e+00 : f32
    %362 = vector.broadcast %cst_97 : f32 to vector<16x128xf32>
    %363 = arith.addf %362, %361 : vector<16x128xf32>
    %364 = arith.divf %362, %363 : vector<16x128xf32>
    %365 = vector.extract_strided_slice %356 {offsets = [16, 0], sizes = [16, 128], strides = [1, 1]} : vector<48x128xf32> to vector<16x128xf32>
    %366 = vector.extract_strided_slice %354 {offsets = [16, 0], sizes = [16, 128], strides = [1, 1]} : vector<48x128xf32> to vector<16x128xf32>
    %367 = arith.addf %365, %366 : vector<16x128xf32>
    %368 = arith.negf %367 : vector<16x128xf32>
    %369 = math.exp %368 : vector<16x128xf32>
    %cst_98 = arith.constant 1.000000e+00 : f32
    %370 = vector.broadcast %cst_98 : f32 to vector<16x128xf32>
    %371 = arith.addf %370, %369 : vector<16x128xf32>
    %372 = arith.divf %370, %371 : vector<16x128xf32>
    %373 = vector.extract_strided_slice %356 {offsets = [32, 0], sizes = [16, 128], strides = [1, 1]} : vector<48x128xf32> to vector<16x128xf32>
    %374 = vector.extract_strided_slice %354 {offsets = [32, 0], sizes = [16, 128], strides = [1, 1]} : vector<48x128xf32> to vector<16x128xf32>
    %375 = arith.addf %374, %12 : vector<16x128xf32>
    %376 = arith.mulf %364, %375 : vector<16x128xf32>
    %377 = arith.addf %373, %376 : vector<16x128xf32>
    %378 = math.tanh %377 : vector<16x128xf32>
    %379 = arith.subf %325, %378 : vector<16x128xf32>
    %380 = arith.mulf %372, %379 : vector<16x128xf32>
    %381 = arith.addf %378, %380 : vector<16x128xf32>
    %c48_99 = arith.constant 48 : index
    %c128_100 = arith.constant 128 : index
    %382 = vector.load %arg11[%c48_99, %c128_100] : memref<96x1024xf32, #tpu.memory_space<vmem>>, vector<48x128xf32>
    %383 = vector.extract_strided_slice %382 {offsets = [0, 0], sizes = [16, 128], strides = [1, 1]} : vector<48x128xf32> to vector<16x128xf32>
    %384 = vector.extract_strided_slice %355 {offsets = [0, 0], sizes = [16, 128], strides = [1, 1]} : vector<48x128xf32> to vector<16x128xf32>
    %385 = arith.addf %383, %384 : vector<16x128xf32>
    %386 = arith.negf %385 : vector<16x128xf32>
    %387 = math.exp %386 : vector<16x128xf32>
    %cst_101 = arith.constant 1.000000e+00 : f32
    %388 = vector.broadcast %cst_101 : f32 to vector<16x128xf32>
    %389 = arith.addf %388, %387 : vector<16x128xf32>
    %390 = arith.divf %388, %389 : vector<16x128xf32>
    %391 = vector.extract_strided_slice %382 {offsets = [16, 0], sizes = [16, 128], strides = [1, 1]} : vector<48x128xf32> to vector<16x128xf32>
    %392 = vector.extract_strided_slice %355 {offsets = [16, 0], sizes = [16, 128], strides = [1, 1]} : vector<48x128xf32> to vector<16x128xf32>
    %393 = arith.addf %391, %392 : vector<16x128xf32>
    %394 = arith.negf %393 : vector<16x128xf32>
    %395 = math.exp %394 : vector<16x128xf32>
    %cst_102 = arith.constant 1.000000e+00 : f32
    %396 = vector.broadcast %cst_102 : f32 to vector<16x128xf32>
    %397 = arith.addf %396, %395 : vector<16x128xf32>
    %398 = arith.divf %396, %397 : vector<16x128xf32>
    %399 = vector.extract_strided_slice %382 {offsets = [32, 0], sizes = [16, 128], strides = [1, 1]} : vector<48x128xf32> to vector<16x128xf32>
    %400 = vector.extract_strided_slice %355 {offsets = [32, 0], sizes = [16, 128], strides = [1, 1]} : vector<48x128xf32> to vector<16x128xf32>
    %401 = arith.addf %400, %15 : vector<16x128xf32>
    %402 = arith.mulf %390, %401 : vector<16x128xf32>
    %403 = arith.addf %399, %402 : vector<16x128xf32>
    %404 = math.tanh %403 : vector<16x128xf32>
    %405 = arith.subf %351, %404 : vector<16x128xf32>
    %406 = arith.mulf %398, %405 : vector<16x128xf32>
    %407 = arith.addf %404, %406 : vector<16x128xf32>
    %c0_103 = arith.constant 0 : index
    %c768_104 = arith.constant 768 : index
    %408 = vector.load %arg12[%c0_103, %c768_104] : memref<32x1024xf32, #tpu.memory_space<vmem>>, vector<16x128xf32>
    tpu.vector_store %arg12[%c0_103, %c768_104], %381 {strides = array<i32>} : memref<32x1024xf32, #tpu.memory_space<vmem>>, vector<16x128xf32>,
    %c16_105 = arith.constant 16 : index
    %c128_106 = arith.constant 128 : index
    %409 = vector.load %arg12[%c16_105, %c128_106] : memref<32x1024xf32, #tpu.memory_space<vmem>>, vector<16x128xf32>
    tpu.vector_store %arg12[%c16_105, %c128_106], %407 {strides = array<i32>} : memref<32x1024xf32, #tpu.memory_space<vmem>>, vector<16x128xf32>,
    %cst_107 = arith.constant dense<0.000000e+00> : vector<48x128xf32>
    %410 = tpu.matmul %8, %381, %cst_107 {dimension_numbers = #tpu.dot_dimension_numbers<[1], [0], [0], [1], [0, 0, 1, 1], [], []>} : vector<48x16xf32>, vector<16x128xf32>, vector<48x128xf32> -> vector<48x128xf32>
    %cst_108 = arith.constant dense<0.000000e+00> : vector<48x128xf32>
    %411 = tpu.matmul %9, %407, %cst_108 {dimension_numbers = #tpu.dot_dimension_numbers<[1], [0], [0], [1], [0, 0, 1, 1], [], []>} : vector<48x16xf32>, vector<16x128xf32>, vector<48x128xf32> -> vector<48x128xf32>
    %c0_109 = arith.constant 0 : index
    %c896_110 = arith.constant 896 : index
    %412 = vector.load %arg11[%c0_109, %c896_110] : memref<96x1024xf32, #tpu.memory_space<vmem>>, vector<48x128xf32>
    %413 = vector.extract_strided_slice %412 {offsets = [0, 0], sizes = [16, 128], strides = [1, 1]} : vector<48x128xf32> to vector<16x128xf32>
    %414 = vector.extract_strided_slice %410 {offsets = [0, 0], sizes = [16, 128], strides = [1, 1]} : vector<48x128xf32> to vector<16x128xf32>
    %415 = arith.addf %413, %414 : vector<16x128xf32>
    %416 = arith.negf %415 : vector<16x128xf32>
    %417 = math.exp %416 : vector<16x128xf32>
    %cst_111 = arith.constant 1.000000e+00 : f32
    %418 = vector.broadcast %cst_111 : f32 to vector<16x128xf32>
    %419 = arith.addf %418, %417 : vector<16x128xf32>
    %420 = arith.divf %418, %419 : vector<16x128xf32>
    %421 = vector.extract_strided_slice %412 {offsets = [16, 0], sizes = [16, 128], strides = [1, 1]} : vector<48x128xf32> to vector<16x128xf32>
    %422 = vector.extract_strided_slice %410 {offsets = [16, 0], sizes = [16, 128], strides = [1, 1]} : vector<48x128xf32> to vector<16x128xf32>
    %423 = arith.addf %421, %422 : vector<16x128xf32>
    %424 = arith.negf %423 : vector<16x128xf32>
    %425 = math.exp %424 : vector<16x128xf32>
    %cst_112 = arith.constant 1.000000e+00 : f32
    %426 = vector.broadcast %cst_112 : f32 to vector<16x128xf32>
    %427 = arith.addf %426, %425 : vector<16x128xf32>
    %428 = arith.divf %426, %427 : vector<16x128xf32>
    %429 = vector.extract_strided_slice %412 {offsets = [32, 0], sizes = [16, 128], strides = [1, 1]} : vector<48x128xf32> to vector<16x128xf32>
    %430 = vector.extract_strided_slice %410 {offsets = [32, 0], sizes = [16, 128], strides = [1, 1]} : vector<48x128xf32> to vector<16x128xf32>
    %431 = arith.addf %430, %12 : vector<16x128xf32>
    %432 = arith.mulf %420, %431 : vector<16x128xf32>
    %433 = arith.addf %429, %432 : vector<16x128xf32>
    %434 = math.tanh %433 : vector<16x128xf32>
    %435 = arith.subf %381, %434 : vector<16x128xf32>
    %436 = arith.mulf %428, %435 : vector<16x128xf32>
    %437 = arith.addf %434, %436 : vector<16x128xf32>
    %c48_113 = arith.constant 48 : index
    %c0_114 = arith.constant 0 : index
    %438 = vector.load %arg11[%c48_113, %c0_114] : memref<96x1024xf32, #tpu.memory_space<vmem>>, vector<48x128xf32>
    %439 = vector.extract_strided_slice %438 {offsets = [0, 0], sizes = [16, 128], strides = [1, 1]} : vector<48x128xf32> to vector<16x128xf32>
    %440 = vector.extract_strided_slice %411 {offsets = [0, 0], sizes = [16, 128], strides = [1, 1]} : vector<48x128xf32> to vector<16x128xf32>
    %441 = arith.addf %439, %440 : vector<16x128xf32>
    %442 = arith.negf %441 : vector<16x128xf32>
    %443 = math.exp %442 : vector<16x128xf32>
    %cst_115 = arith.constant 1.000000e+00 : f32
    %444 = vector.broadcast %cst_115 : f32 to vector<16x128xf32>
    %445 = arith.addf %444, %443 : vector<16x128xf32>
    %446 = arith.divf %444, %445 : vector<16x128xf32>
    %447 = vector.extract_strided_slice %438 {offsets = [16, 0], sizes = [16, 128], strides = [1, 1]} : vector<48x128xf32> to vector<16x128xf32>
    %448 = vector.extract_strided_slice %411 {offsets = [16, 0], sizes = [16, 128], strides = [1, 1]} : vector<48x128xf32> to vector<16x128xf32>
    %449 = arith.addf %447, %448 : vector<16x128xf32>
    %450 = arith.negf %449 : vector<16x128xf32>
    %451 = math.exp %450 : vector<16x128xf32>
    %cst_116 = arith.constant 1.000000e+00 : f32
    %452 = vector.broadcast %cst_116 : f32 to vector<16x128xf32>
    %453 = arith.addf %452, %451 : vector<16x128xf32>
    %454 = arith.divf %452, %453 : vector<16x128xf32>
    %455 = vector.extract_strided_slice %438 {offsets = [32, 0], sizes = [16, 128], strides = [1, 1]} : vector<48x128xf32> to vector<16x128xf32>
    %456 = vector.extract_strided_slice %411 {offsets = [32, 0], sizes = [16, 128], strides = [1, 1]} : vector<48x128xf32> to vector<16x128xf32>
    %457 = arith.addf %456, %15 : vector<16x128xf32>
    %458 = arith.mulf %446, %457 : vector<16x128xf32>
    %459 = arith.addf %455, %458 : vector<16x128xf32>
    %460 = math.tanh %459 : vector<16x128xf32>
    %461 = arith.subf %407, %460 : vector<16x128xf32>
    %462 = arith.mulf %454, %461 : vector<16x128xf32>
    %463 = arith.addf %460, %462 : vector<16x128xf32>
    %c0_117 = arith.constant 0 : index
    %c896_118 = arith.constant 896 : index
    %464 = vector.load %arg12[%c0_117, %c896_118] : memref<32x1024xf32, #tpu.memory_space<vmem>>, vector<16x128xf32>
    tpu.vector_store %arg12[%c0_117, %c896_118], %437 {strides = array<i32>} : memref<32x1024xf32, #tpu.memory_space<vmem>>, vector<16x128xf32>,
    %c16_119 = arith.constant 16 : index
    %c0_120 = arith.constant 0 : index
    %465 = vector.load %arg12[%c16_119, %c0_120] : memref<32x1024xf32, #tpu.memory_space<vmem>>, vector<16x128xf32>
    tpu.vector_store %arg12[%c16_119, %c0_120], %463 {strides = array<i32>} : memref<32x1024xf32, #tpu.memory_space<vmem>>, vector<16x128xf32>,
    %c0_121 = arith.constant 0 : index
    %c0_122 = arith.constant 0 : index
    %466 = vector.load %arg7[%c0_121, %c0_122] : memref<16x32xf32, #tpu.memory_space<vmem>>, vector<16x32xf32>
    %c0_123 = arith.constant 0 : index
    %c0_124 = arith.constant 0 : index
    %467 = vector.load %arg12[%c0_123, %c0_124] : memref<32x1024xf32, #tpu.memory_space<vmem>>, vector<32x1024xf32>
    %cst_125 = arith.constant dense<0.000000e+00> : vector<16x1024xf32>
    %468 = tpu.matmul %466, %467, %cst_125 {dimension_numbers = #tpu.dot_dimension_numbers<[1], [0], [0], [1], [0, 0, 1, 1], [], []>} : vector<16x32xf32>, vector<32x1024xf32>, vector<16x1024xf32> -> vector<16x1024xf32>
    %c0_126 = arith.constant 0 : index
    %c0_127 = arith.constant 0 : index
    %469 = vector.load %arg8[%c0_126, %c0_127] : memref<16x1xf32, #tpu.memory_space<vmem>>, vector<16x1xf32>
    %470 = vector.broadcast %469 : vector<16x1xf32> to vector<16x1024xf32>
    %471 = arith.addf %468, %470 : vector<16x1024xf32>
    %472 = math.tanh %471 : vector<16x1024xf32>
    %c0_128 = arith.constant 0 : index
    %c0_129 = arith.constant 0 : index
    %473 = vector.load %arg9[%c0_128, %c0_129] : memref<16x1xf32, #tpu.memory_space<vmem>>, vector<16x1xf32>
    %474 = vector.broadcast %473 : vector<16x1xf32> to vector<16x1024xf32>
    %475 = arith.mulf %472, %474 : vector<16x1024xf32>
    %cst_130 = arith.constant dense<0.000000e+00> : vector<1024xf32>
    %476 = vector.multi_reduction <add>, %475, %cst_130 [0] : vector<16x1024xf32> to vector<1024xf32>
    %477 = vector.shape_cast %476 : vector<1024xf32> to vector<1x1024xf32>
    %478 = vector.extract_strided_slice %477 {offsets = [0, 0], sizes = [1, 128], strides = [1, 1]} : vector<1x1024xf32> to vector<1x128xf32>
    %479 = vector.extract_strided_slice %477 {offsets = [0, 128], sizes = [1, 128], strides = [1, 1]} : vector<1x1024xf32> to vector<1x128xf32>
    %480 = vector.extract_strided_slice %477 {offsets = [0, 256], sizes = [1, 128], strides = [1, 1]} : vector<1x1024xf32> to vector<1x128xf32>
    %481 = vector.extract_strided_slice %477 {offsets = [0, 384], sizes = [1, 128], strides = [1, 1]} : vector<1x1024xf32> to vector<1x128xf32>
    %482 = vector.extract_strided_slice %477 {offsets = [0, 512], sizes = [1, 128], strides = [1, 1]} : vector<1x1024xf32> to vector<1x128xf32>
    %483 = vector.extract_strided_slice %477 {offsets = [0, 640], sizes = [1, 128], strides = [1, 1]} : vector<1x1024xf32> to vector<1x128xf32>
    %484 = vector.extract_strided_slice %477 {offsets = [0, 768], sizes = [1, 128], strides = [1, 1]} : vector<1x1024xf32> to vector<1x128xf32>
    %485 = vector.extract_strided_slice %477 {offsets = [0, 896], sizes = [1, 128], strides = [1, 1]} : vector<1x1024xf32> to vector<1x128xf32>
    %486 = arith.maximumf %478, %479 : vector<1x128xf32>
    %487 = arith.maximumf %486, %480 : vector<1x128xf32>
    %488 = arith.maximumf %487, %481 : vector<1x128xf32>
    %489 = arith.maximumf %488, %482 : vector<1x128xf32>
    %490 = arith.maximumf %489, %483 : vector<1x128xf32>
    %491 = arith.maximumf %490, %484 : vector<1x128xf32>
    %492 = arith.maximumf %491, %485 : vector<1x128xf32>
    %cst_131 = arith.constant 0.000000e+00 : f32
    %493 = vector.broadcast %cst_131 : f32 to vector<1x128xf32>
    %cst_132 = arith.constant 0.000000e+00 : f32
    %494 = vector.broadcast %cst_132 : f32 to vector<32x128xf32>
    %495 = arith.subf %478, %492 : vector<1x128xf32>
    %496 = math.exp %495 : vector<1x128xf32>
    %497 = arith.addf %493, %496 : vector<1x128xf32>
    %c0_133 = arith.constant 0 : index
    %c0_134 = arith.constant 0 : index
    %498 = vector.load %arg12[%c0_133, %c0_134] : memref<32x1024xf32, #tpu.memory_space<vmem>>, vector<32x128xf32>
    %499 = vector.broadcast %496 : vector<1x128xf32> to vector<32x128xf32>
    %500 = arith.mulf %498, %499 : vector<32x128xf32>
    %501 = arith.addf %494, %500 : vector<32x128xf32>
    %502 = arith.subf %479, %492 : vector<1x128xf32>
    %503 = math.exp %502 : vector<1x128xf32>
    %504 = arith.addf %497, %503 : vector<1x128xf32>
    %c0_135 = arith.constant 0 : index
    %c128_136 = arith.constant 128 : index
    %505 = vector.load %arg12[%c0_135, %c128_136] : memref<32x1024xf32, #tpu.memory_space<vmem>>, vector<32x128xf32>
    %506 = vector.broadcast %503 : vector<1x128xf32> to vector<32x128xf32>
    %507 = arith.mulf %505, %506 : vector<32x128xf32>
    %508 = arith.addf %501, %507 : vector<32x128xf32>
    %509 = arith.subf %480, %492 : vector<1x128xf32>
    %510 = math.exp %509 : vector<1x128xf32>
    %511 = arith.addf %504, %510 : vector<1x128xf32>
    %c0_137 = arith.constant 0 : index
    %c256_138 = arith.constant 256 : index
    %512 = vector.load %arg12[%c0_137, %c256_138] : memref<32x1024xf32, #tpu.memory_space<vmem>>, vector<32x128xf32>
    %513 = vector.broadcast %510 : vector<1x128xf32> to vector<32x128xf32>
    %514 = arith.mulf %512, %513 : vector<32x128xf32>
    %515 = arith.addf %508, %514 : vector<32x128xf32>
    %516 = arith.subf %481, %492 : vector<1x128xf32>
    %517 = math.exp %516 : vector<1x128xf32>
    %518 = arith.addf %511, %517 : vector<1x128xf32>
    %c0_139 = arith.constant 0 : index
    %c384_140 = arith.constant 384 : index
    %519 = vector.load %arg12[%c0_139, %c384_140] : memref<32x1024xf32, #tpu.memory_space<vmem>>, vector<32x128xf32>
    %520 = vector.broadcast %517 : vector<1x128xf32> to vector<32x128xf32>
    %521 = arith.mulf %519, %520 : vector<32x128xf32>
    %522 = arith.addf %515, %521 : vector<32x128xf32>
    %523 = arith.subf %482, %492 : vector<1x128xf32>
    %524 = math.exp %523 : vector<1x128xf32>
    %525 = arith.addf %518, %524 : vector<1x128xf32>
    %c0_141 = arith.constant 0 : index
    %c512_142 = arith.constant 512 : index
    %526 = vector.load %arg12[%c0_141, %c512_142] : memref<32x1024xf32, #tpu.memory_space<vmem>>, vector<32x128xf32>
    %527 = vector.broadcast %524 : vector<1x128xf32> to vector<32x128xf32>
    %528 = arith.mulf %526, %527 : vector<32x128xf32>
    %529 = arith.addf %522, %528 : vector<32x128xf32>
    %530 = arith.subf %483, %492 : vector<1x128xf32>
    %531 = math.exp %530 : vector<1x128xf32>
    %532 = arith.addf %525, %531 : vector<1x128xf32>
    %c0_143 = arith.constant 0 : index
    %c640_144 = arith.constant 640 : index
    %533 = vector.load %arg12[%c0_143, %c640_144] : memref<32x1024xf32, #tpu.memory_space<vmem>>, vector<32x128xf32>
    %534 = vector.broadcast %531 : vector<1x128xf32> to vector<32x128xf32>
    %535 = arith.mulf %533, %534 : vector<32x128xf32>
    %536 = arith.addf %529, %535 : vector<32x128xf32>
    %537 = arith.subf %484, %492 : vector<1x128xf32>
    %538 = math.exp %537 : vector<1x128xf32>
    %539 = arith.addf %532, %538 : vector<1x128xf32>
    %c0_145 = arith.constant 0 : index
    %c768_146 = arith.constant 768 : index
    %540 = vector.load %arg12[%c0_145, %c768_146] : memref<32x1024xf32, #tpu.memory_space<vmem>>, vector<32x128xf32>
    %541 = vector.broadcast %538 : vector<1x128xf32> to vector<32x128xf32>
    %542 = arith.mulf %540, %541 : vector<32x128xf32>
    %543 = arith.addf %536, %542 : vector<32x128xf32>
    %544 = arith.subf %485, %492 : vector<1x128xf32>
    %545 = math.exp %544 : vector<1x128xf32>
    %546 = arith.addf %539, %545 : vector<1x128xf32>
    %c0_147 = arith.constant 0 : index
    %c896_148 = arith.constant 896 : index
    %547 = vector.load %arg12[%c0_147, %c896_148] : memref<32x1024xf32, #tpu.memory_space<vmem>>, vector<32x128xf32>
    %548 = vector.broadcast %545 : vector<1x128xf32> to vector<32x128xf32>
    %549 = arith.mulf %547, %548 : vector<32x128xf32>
    %550 = arith.addf %543, %549 : vector<32x128xf32>
    %551 = tpu.reciprocal %546 {approx = true} : vector<1x128xf32> -> vector<1x128xf32>
    %552 = vector.broadcast %551 : vector<1x128xf32> to vector<32x128xf32>
    %553 = arith.mulf %550, %552 : vector<32x128xf32>
    %c0_149 = arith.constant 0 : index
    %c0_150 = arith.constant 0 : index
    %554 = vector.load %arg10[%c0_149, %c0_150] : memref<32x128xf32, #tpu.memory_space<vmem>>, vector<32x128xf32>
    tpu.vector_store %arg10[%c0_149, %c0_150], %553 {strides = array<i32>} : memref<32x128xf32, #tpu.memory_space<vmem>>, vector<32x128xf32>,
    return
  }
  func.func @transform_0(%arg0: i32) -> (i32, i32, i32) {
    %c0_i32 = arith.constant 0 : i32
    %c0_i32_0 = arith.constant 0 : i32
    %c0_i32_1 = arith.constant 0 : i32
    return %arg0, %c0_i32, %c0_i32_0 : i32, i32, i32
  }
  func.func @transform_1(%arg0: i32) -> (i32, i32) {
    %c0_i32 = arith.constant 0 : i32
    %c0_i32_0 = arith.constant 0 : i32
    %c0_i32_1 = arith.constant 0 : i32
    return %c0_i32, %c0_i32_0 : i32, i32
  }
  func.func @transform_2(%arg0: i32) -> (i32, i32) {
    %c0_i32 = arith.constant 0 : i32
    %c0_i32_0 = arith.constant 0 : i32
    %c0_i32_1 = arith.constant 0 : i32
    return %c0_i32, %c0_i32_0 : i32, i32
  }
  func.func @transform_3(%arg0: i32) -> (i32, i32) {
    %c0_i32 = arith.constant 0 : i32
    %c0_i32_0 = arith.constant 0 : i32
    %c0_i32_1 = arith.constant 0 : i32
    return %c0_i32, %c0_i32_0 : i32, i32
  }
  func.func @transform_4(%arg0: i32) -> (i32, i32) {
    %c0_i32 = arith.constant 0 : i32
    %c0_i32_0 = arith.constant 0 : i32
    %c0_i32_1 = arith.constant 0 : i32
    return %c0_i32, %c0_i32_0 : i32, i32
  }
  func.func @transform_5(%arg0: i32) -> (i32, i32) {
    %c0_i32 = arith.constant 0 : i32
    %c0_i32_0 = arith.constant 0 : i32
    %c0_i32_1 = arith.constant 0 : i32
    return %c0_i32, %c0_i32_0 : i32, i32
  }
  func.func @transform_6(%arg0: i32) -> (i32, i32) {
    %c0_i32 = arith.constant 0 : i32
    %c0_i32_0 = arith.constant 0 : i32
    %c0_i32_1 = arith.constant 0 : i32
    return %c0_i32, %c0_i32_0 : i32, i32
  }
  func.func @transform_7(%arg0: i32) -> (i32, i32) {
    %c0_i32 = arith.constant 0 : i32
    %c0_i32_0 = arith.constant 0 : i32
    %c0_i32_1 = arith.constant 0 : i32
    return %c0_i32, %c0_i32_0 : i32, i32
  }
  func.func @transform_8(%arg0: i32) -> (i32, i32) {
    %c0_i32 = arith.constant 0 : i32
    %c0_i32_0 = arith.constant 0 : i32
    %c0_i32_1 = arith.constant 0 : i32
    return %c0_i32, %c0_i32_0 : i32, i32
  }
  func.func @transform_9(%arg0: i32) -> (i32, i32) {
    %c0_i32 = arith.constant 0 : i32
    %c0_i32_0 = arith.constant 0 : i32
    return %c0_i32, %arg0 : i32, i32
  }
}

</mosaic_0001>

<bundles_post_ra>
// kernel: document_encoder.1
= control target key start
LH: loop header
LB: loop body
LE: loop exit
PB: predicated region body
PF: predicated region fallthrough
CT: control target
= control target key end

     0   :  { %v4105_v3 = vmov 0   ;;  %vm132_vm0 = vcmask 130048   ;;  %v4106_v57 = vmov 0.0   ;;  %s7123_s0 = inlined_call_operand.vmem [shape: f32[1,16,1024], index: 0, kind: input, shape index: {}]   ;;  %s7124_s1 = inlined_call_operand.vmem [shape: f32[96,16], index: 1, kind: input, shape index: {}]   ;;  %s7125_s2 = inlined_call_operand.vmem [shape: f32[96,1], index: 2, kind: input, shape index: {}]   ;;  %s7126_s5 = inlined_call_operand.vmem [shape: f32[32,1], index: 5, kind: input, shape index: {}]   ;;  %s7127_s8 = inlined_call_operand.vmem [shape: f32[16,1], index: 8, kind: input, shape index: {}]   ;;  %s7128_s7 = inlined_call_operand.vmem [shape: f32[16,1], index: 7, kind: input, shape index: {}]   ;;  %s7129_s3 = inlined_call_operand.vmem [shape: f32[48,16], index: 3, kind: input, shape index: {}]   ;;  %s7130_s4 = inlined_call_operand.vmem [shape: f32[48,16], index: 4, kind: input, shape index: {}]   ;;  %s7131_s6 = inlined_call_operand.vmem [shape: f32[16,32], index: 6, kind: input, shape index: {}]   ;;  %s7132_s9 = inlined_call_operand.vmem [shape: f32[32,128], index: 9, kind: output, shape index: {}]  }
   0x1   :  { %v52_v0 = vld [vmem:[%s7123_s0 + $0x40] sm:$0xff]  ;;  %v53_v1 = vld [vmem:[%s7123_s0 + $0x48] sm:$0xff]  ;;  %3708 = vset.pattern.permute.xlu0 %v4105_v3  ;;  %3709 = vset.pattern.permute.xlu1 %v4105_v3  ;;  %v67_v6 = vld [vmem:[%s7125_s2 + $0x38] sm:$0xff] }
   0x2   :  { %v44_v2 = vld [vmem:[%s7123_s0] sm:$0xff]  ;;  %183 = vmatpush.msra.mxu0 %v52_v0  ;;  %236 = vmatpush.msra.mxu1 %v53_v1  ;;  %v45_v4 = vld [vmem:[%s7123_s0 + $0x8] sm:$0xff]  ;;  %v54_v8 = vld [vmem:[%s7123_s0 + $0x50] sm:$0xff] }
   0x3   :  { %v4172_v5 = vld [vmem:[%s7124_s1] sm:$0xff]  ;;  %109 = vperm.xlu0 %3708, %v67_v6   ;;  %3710 = vset.pattern.permute.xlu2 %v4105_v3  ;;  %v69_v7 = vld [vmem:[%s7125_s2 + $0x48] sm:$0xff]  ;;  %v55_v9 = vld [vmem:[%s7123_s0 + $0x58] sm:$0xff] }
   0x4   :  { %184 = vmatpush.msra.mxu0 %v44_v2  ;;  %237 = vmatpush.msra.mxu1 %v45_v4  ;;  %v46_v10 = vld [vmem:[%s7123_s0 + $0x10] sm:$0xff]  ;;  %v47_v11 = vld [vmem:[%s7123_s0 + $0x18] sm:$0xff]  ;;  %v61_v12 = vld [vmem:[%s7125_s2 + $0x8] sm:$0xff] }
   0x5   :  { %3434 = vmatmul.msk.f32.vlgmr.msra.gmra.mxu0 %vm132_vm0, %v4172_v5  ;;  %3446 = vmatmul.msk.f32.vlgmr.msra.gmra.mxu1 %vm132_vm0, %v4172_v5  ;;  %v66_v13 = vld [vmem:[%s7125_s2 + $0x30] sm:$0xff]  ;;  %v4207_v14 = vld [vmem:[%s7124_s1 + $0x8] sm:$0xff]  ;;  %v68_v15 = vld [vmem:[%s7125_s2 + $0x40] sm:$0xff] }
   0x6   :  { %119 = vperm.xlu1 %3709, %v69_v7   ;;  %289 = vmatpush.msra.mxu2 %v54_v8  ;;  %v60_v16 = vld [vmem:[%s7125_s2] sm:$0xff]  ;;  %v714_v17 = vld [vmem:[%s7126_s5 + $0x18] sm:$0xff]  ;;  %v4229_v18 = vld [vmem:[%s7124_s1 + $0x10] sm:$0xff] }
   0x7   :  { %342 = vmatpush.msra.mxu3 %v55_v9  ;;  %79 = vperm.xlu2 %3710, %v61_v12   ;;  %v71_v19 = vld [vmem:[%s7125_s2 + $0x58] sm:$0xff]  ;;  %v713_v20 = vld [vmem:[%s7126_s5 + $0x10] sm:$0xff]  ;;  %v702_v25 = vld [vmem:[%s7126_s5 + $0x8] sm:$0xff] }
   0x8   :  { %290 = vmatpush.msra.mxu2 %v46_v10  ;;  %v63_v21 = vld [vmem:[%s7125_s2 + $0x18] sm:$0xff]  ;;  %v70_v23 = vld [vmem:[%s7125_s2 + $0x50] sm:$0xff]  ;;  %v4273_v26 = vld [vmem:[%s7124_s1 + $0x20] sm:$0xff] }
   0x9   :  { %343 = vmatpush.msra.mxu3 %v47_v11  ;;  %3458 = vmatmul.msk.f32.vlgmr.msra.gmra.mxu2 %vm132_vm0, %v4172_v5  ;;  %v4251_v22 = vld [vmem:[%s7124_s1 + $0x18] sm:$0xff]  ;;  %v62_v24 = vld [vmem:[%s7125_s2 + $0x10] sm:$0xff]  ;;  %v65_v27 = vld [vmem:[%s7125_s2 + $0x28] sm:$0xff] }
   0xa   :  { %3470 = vmatmul.msk.f32.vlgmr.msra.gmra.mxu3 %vm132_vm0, %v4172_v5  ;;  %v64_v28 = vld [vmem:[%s7125_s2 + $0x20] sm:$0xff]  ;;  %v4292_v29 = vld [vmem:[%s7124_s1 + $0x28] sm:$0xff]  ;;  %v4305_v30 = vld [vmem:[%s7124_s1 + $0x30] sm:$0xff] }
   0xb   :  { %104 = vperm.xlu0 %3708, %v66_v13   ;;  %v4318_v31 = vld [vmem:[%s7124_s1 + $0x38] sm:$0xff]  ;;  %v56_v32 = vld [vmem:[%s7123_s0 + $0x60] sm:$0xff]  ;;  %v57_v33 = vld [vmem:[%s7123_s0 + $0x68] sm:$0xff] }
   0xc   :  { %v48_v34 = vld [vmem:[%s7123_s0 + $0x20] sm:$0xff]  ;;  %395 = vmatpush.msrb.mxu0 %v56_v32  ;;  %448 = vmatpush.msrb.mxu1 %v57_v33  ;;  %v49_v35 = vld [vmem:[%s7123_s0 + $0x28] sm:$0xff]  ;;  %v4369_v38 = vld [vmem:[%s7124_s1 + $0x50] sm:$0xff] }
   0xd   :  { %3435 = vmatmul.msk.f32.gmra.mxu0 %vm132_vm0, %v4207_v14  ;;  %3447 = vmatmul.msk.f32.gmra.mxu1 %vm132_vm0, %v4207_v14  ;;  %v4343_v36 = vld [vmem:[%s7124_s1 + $0x40] sm:$0xff]  ;;  %v4356_v37 = vld [vmem:[%s7124_s1 + $0x48] sm:$0xff]  ;;  %v58_v39 = vld [vmem:[%s7123_s0 + $0x70] sm:$0xff] }
   0xe   :  { %114 = vperm.xlu1 %3709, %v68_v15   ;;  %396 = vmatpush.msrb.mxu0 %v48_v34  ;;  %v59_v40 = vld [vmem:[%s7123_s0 + $0x78] sm:$0xff]  ;;  %v50_v41 = vld [vmem:[%s7123_s0 + $0x30] sm:$0xff]  ;;  %v3206_v0 = vld [vmem:[%s7127_s8] sm:$0xff] }
   0xf   :  { %74 = vperm.xlu2 %3710, %v60_v16   ;;  %449 = vmatpush.msrb.mxu1 %v49_v35  ;;  %v51_v42 = vld [vmem:[%s7123_s0 + $0x38] sm:$0xff]  ;;  %v2987_v2 = vld [vmem:[%s7128_s7] sm:$0xff]  ;;  %v3207_v6 = vld [vmem:[%s7127_s8 + $0x8] sm:$0xff] }
  0x10   :  { %501 = vmatpush.msrb.mxu2 %v58_v39  ;;  %554 = vmatpush.msrb.mxu3 %v59_v40  ;;  %v4394_v43 = vld [vmem:[%s7124_s1 + $0x58] sm:$0xff]  ;;  %v4562_v9 = vld [vmem:[%s7129_s3] sm:$0xff]  ;;  %v4589_v15 = vld [vmem:[%s7130_s4 + $0x8] sm:$0xff] }
  0x11   :  { %3459 = vmatmul.msk.f32.gmra.mxu2 %vm132_vm0, %v4207_v14  ;;  %811 = vmatpush.msra.mxu1 %v4106_v57  ;;  %v4567_v10 = vld [vmem:[%s7130_s4] sm:$0xff] }
  0x12   :  { %3471 = vmatmul.msk.f32.gmra.mxu3 %vm132_vm0, %v4207_v14  ;;  %502 = vmatpush.msrb.mxu2 %v50_v41  ;;  %v4655_v32 = vld [vmem:[%s7130_s4 + $0x20] sm:$0xff] }
  0x13   :  { %722 = vperm.xlu0 %3708, %v714_v17   ;;  %555 = vmatpush.msrb.mxu3 %v51_v42 }
  0x14   :  { %758 = vmatpush.msra.mxu0 %v4106_v57 }
  0x15   :  { %3436 = vmatmul.msk.f32.gmra.mxu0 %vm132_vm0, %v4229_v18  ;;  %3448 = vmatmul.msk.f32.gmra.mxu1 %vm132_vm0, %v4229_v18 }
  0x16   :  { %129 = vperm.xlu1 %3709, %v71_v19   ;;  %v4604_v19 = vld [vmem:[%s7129_s3 + $0x10] sm:$0xff] }
  0x17   :  { %717 = vperm.xlu2 %3710, %v713_v20   ;;  %v4609_v20 = vld [vmem:[%s7130_s4 + $0x10] sm:$0xff] }
  0x19   :  { %3460 = vmatmul.msk.f32.gmra.mxu2 %vm132_vm0, %v4229_v18 }
  0x1a   :  { %3472 = vmatmul.msk.f32.gmra.mxu3 %vm132_vm0, %v4229_v18 }
  0x1b   :  { %89 = vperm.xlu0 %3708, %v63_v21   ;;  %v701_v21 = vld [vmem:[%s7126_s5] sm:$0xff] }
  0x1d   :  { %3437 = vmatmul.msk.f32.gmra.mxu0 %vm132_vm0, %v4251_v22  ;;  %3449 = vmatmul.msk.f32.gmra.mxu1 %vm132_vm0, %v4251_v22 }
  0x1e   :  { %124 = vperm.xlu1 %3709, %v70_v23  }
  0x1f   :  { %84 = vperm.xlu2 %3710, %v62_v24  }
  0x21   :  { %3461 = vmatmul.msk.f32.gmra.mxu2 %vm132_vm0, %v4251_v22 }
  0x22   :  { %3473 = vmatmul.msk.f32.gmra.mxu3 %vm132_vm0, %v4251_v22 }
  0x23   :  { %710 = vperm.xlu0 %3708, %v702_v25   ;;  %v4627_v25 = vld [vmem:[%s7129_s3 + $0x18] sm:$0xff] }
  0x25   :  { %3438 = vmatmul.msk.f32.gmra.mxu0 %vm132_vm0, %v4273_v26  ;;  %3450 = vmatmul.msk.f32.gmra.mxu1 %vm132_vm0, %v4273_v26 }
  0x26   :  { %99 = vperm.xlu1 %3709, %v65_v27   ;;  %v2988_v27 = vld [vmem:[%s7128_s7 + $0x8] sm:$0xff] }
  0x27   :  { %705 = vperm.xlu2 %3710, %v701_v21  }
  0x29   :  { %3462 = vmatmul.msk.f32.gmra.mxu2 %vm132_vm0, %v4273_v26 }
  0x2a   :  { %3474 = vmatmul.msk.f32.gmra.mxu3 %vm132_vm0, %v4273_v26 }
  0x2b   :  { %94 = vperm.xlu0 %3708, %v64_v28  }
  0x2d   :  { %3439 = vmatmul.msk.f32.gmra.mxu0 %vm132_vm0, %v4292_v29  ;;  %3451 = vmatmul.msk.f32.gmra.mxu1 %vm132_vm0, %v4292_v29 }
  0x2e   :  { %2991 = vperm.xlu1 %3709, %v2987_v2  }
  0x2f   :  { %2996 = vperm.xlu2 %3710, %v2988_v27  }
  0x31   :  { %3463 = vmatmul.msk.f32.gmra.mxu2 %vm132_vm0, %v4292_v29 }
  0x32   :  { %3475 = vmatmul.msk.f32.gmra.mxu3 %vm132_vm0, %v4292_v29 }
  0x33   :  { %3210 = vperm.xlu0 %3708, %v3206_v0  }
  0x35   :  { %3440 = vmatmul.msk.f32.gmra.mxu0 %vm132_vm0, %v4305_v30  ;;  %3452 = vmatmul.msk.f32.gmra.mxu1 %vm132_vm0, %v4305_v30 }
  0x36   :  { %3215 = vperm.xlu1 %3709, %v3207_v6  }
  0x39   :  { %3464 = vmatmul.msk.f32.gmra.mxu2 %vm132_vm0, %v4305_v30 }
  0x3a   :  { %3476 = vmatmul.msk.f32.gmra.mxu3 %vm132_vm0, %v4305_v30 }
  0x3d   :  { %3441 = vmatmul.msk.f32.gmra.mxu0 %vm132_vm0, %v4318_v31  ;;  %3453 = vmatmul.msk.f32.gmra.mxu1 %vm132_vm0, %v4318_v31 }
  0x41   :  { %3465 = vmatmul.msk.f32.gmra.mxu2 %vm132_vm0, %v4318_v31 }
  0x42   :  { %3477 = vmatmul.msk.f32.gmra.mxu3 %vm132_vm0, %v4318_v31 }
  0x45   :  { %3442 = vmatmul.msk.f32.gmra.mxu0 %vm132_vm0, %v4343_v36  ;;  %3454 = vmatmul.msk.f32.gmra.mxu1 %vm132_vm0, %v4343_v36 }
  0x49   :  { %3466 = vmatmul.msk.f32.gmra.mxu2 %vm132_vm0, %v4343_v36 }
  0x4a   :  { %3478 = vmatmul.msk.f32.gmra.mxu3 %vm132_vm0, %v4343_v36 }
  0x4d   :  { %3443 = vmatmul.msk.f32.gmra.mxu0 %vm132_vm0, %v4356_v37  ;;  %3455 = vmatmul.msk.f32.gmra.mxu1 %vm132_vm0, %v4356_v37 }
  0x51   :  { %3467 = vmatmul.msk.f32.gmra.mxu2 %vm132_vm0, %v4356_v37 }
  0x52   :  { %3479 = vmatmul.msk.f32.gmra.mxu3 %vm132_vm0, %v4356_v37 }
  0x55   :  { %3444 = vmatmul.msk.f32.gmra.mxu0 %vm132_vm0, %v4369_v38  ;;  %3456 = vmatmul.msk.f32.gmra.mxu1 %vm132_vm0, %v4369_v38 }
  0x59   :  { %3468 = vmatmul.msk.f32.gmra.mxu2 %vm132_vm0, %v4369_v38 }
  0x5a   :  { %3480 = vmatmul.msk.f32.gmra.mxu3 %vm132_vm0, %v4369_v38 }
  0x5d   :  { %3445 = vmatmul.msk.f32.gmra.mxu0 %vm132_vm0, %v4394_v43  ;;  %3457 = vmatmul.msk.f32.gmra.mxu1 %vm132_vm0, %v4394_v43 }
  0x61   :  { %3469 = vmatmul.msk.f32.gmra.mxu2 %vm132_vm0, %v4394_v43 }
  0x62   :  { %3481 = vmatmul.msk.f32.gmra.mxu3 %vm132_vm0, %v4394_v43 }
  0x65   :  { %3482 = vmatmul.msk.f32.vlgmr.msrb.gmra.mxu0 %vm132_vm0, %v4172_v5  ;;  %3494 = vmatmul.msk.f32.vlgmr.msrb.gmra.mxu1 %vm132_vm0, %v4172_v5 }
  0x69   :  { %3506 = vmatmul.msk.f32.vlgmr.msrb.gmra.mxu2 %vm132_vm0, %v4172_v5 }
  0x6a   :  { %3518 = vmatmul.msk.f32.vlgmr.msrb.gmra.mxu3 %vm132_vm0, %v4172_v5 }
  0x6d   :  { %3483 = vmatmul.msk.f32.gmra.mxu0 %vm132_vm0, %v4207_v14  ;;  %3495 = vmatmul.msk.f32.gmra.mxu1 %vm132_vm0, %v4207_v14 }
  0x71   :  { %3507 = vmatmul.msk.f32.gmra.mxu2 %vm132_vm0, %v4207_v14 }
  0x72   :  { %3519 = vmatmul.msk.f32.gmra.mxu3 %vm132_vm0, %v4207_v14  ;;  %v4584_v14 = vld [vmem:[%s7129_s3 + $0x8] sm:$0xff] }
  0x75   :  { %3484 = vmatmul.msk.f32.gmra.mxu0 %vm132_vm0, %v4229_v18  ;;  %3496 = vmatmul.msk.f32.gmra.mxu1 %vm132_vm0, %v4229_v18 }
  0x79   :  { %3508 = vmatmul.msk.f32.gmra.mxu2 %vm132_vm0, %v4229_v18 }
  0x7a   :  { %3520 = vmatmul.msk.f32.gmra.mxu3 %vm132_vm0, %v4229_v18 }
  0x7d   :  { %3485 = vmatmul.msk.f32.gmra.mxu0 %vm132_vm0, %v4251_v22  ;;  %3497 = vmatmul.msk.f32.gmra.mxu1 %vm132_vm0, %v4251_v22 }
  0x81   :  { %3509 = vmatmul.msk.f32.gmra.mxu2 %vm132_vm0, %v4251_v22 }
  0x82   :  { %v4436_v44 = vpop.f32.mrf.mxu0  ;;  %v4438_v45 = vpop.f32.mrf.mxu1  ;;  %3521 = vmatmul.msk.f32.gmra.mxu3 %vm132_vm0, %v4251_v22 }
  0x85   :  { %3486 = vmatmul.msk.f32.gmra.mxu0 %vm132_vm0, %v4273_v26  ;;  %3498 = vmatmul.msk.f32.gmra.mxu1 %vm132_vm0, %v4273_v26 }
  0x89   :  { %3510 = vmatmul.msk.f32.gmra.mxu2 %vm132_vm0, %v4273_v26 }
  0x8a   :  { %v4448_v46 = vpop.f32.mrf.mxu0  ;;  %v4450_v47 = vpop.f32.mrf.mxu1  ;;  %3522 = vmatmul.msk.f32.gmra.mxu3 %vm132_vm0, %v4273_v26  ;;  %v4632_v26 = vld [vmem:[%s7130_s4 + $0x18] sm:$0xff] }
  0x8d   :  { %3487 = vmatmul.msk.f32.gmra.mxu0 %vm132_vm0, %v4292_v29  ;;  %3499 = vmatmul.msk.f32.gmra.mxu1 %vm132_vm0, %v4292_v29  ;;  %v4458_v48 = vpop.f32.mrf.mxu3 }
  0x8e   :  { %7179 = vst [vmem:[#allocation4_spill] sm:$0xff] %v4458_v48 }
  0x91   :  { %3511 = vmatmul.msk.f32.gmra.mxu2 %vm132_vm0, %v4292_v29 }
  0x92   :  { %v4462_v49 = vpop.f32.mrf.mxu0  ;;  %v4464_v50 = vpop.f32.mrf.mxu1  ;;  %3523 = vmatmul.msk.f32.gmra.mxu3 %vm132_vm0, %v4292_v29 }
  0x95   :  { %3488 = vmatmul.msk.f32.gmra.mxu0 %vm132_vm0, %v4305_v30  ;;  %3500 = vmatmul.msk.f32.gmra.mxu1 %vm132_vm0, %v4305_v30  ;;  %v4472_v51 = vpop.f32.mrf.mxu3 }
  0x96   :  { %7180 = vst [vmem:[#allocation5_spill] sm:$0xff] %v4472_v51 }
  0x99   :  { %3512 = vmatmul.msk.f32.gmra.mxu2 %vm132_vm0, %v4305_v30 }
  0x9a   :  { %v4476_v52 = vpop.f32.mrf.mxu0  ;;  %v4478_v53 = vpop.f32.mrf.mxu1  ;;  %3524 = vmatmul.msk.f32.gmra.mxu3 %vm132_vm0, %v4305_v30 }
  0x9d   :  { %3489 = vmatmul.msk.f32.gmra.mxu0 %vm132_vm0, %v4318_v31  ;;  %3501 = vmatmul.msk.f32.gmra.mxu1 %vm132_vm0, %v4318_v31  ;;  %v4486_v54 = vpop.f32.mrf.mxu3 }
  0x9e   :  { %7181 = vst [vmem:[#allocation6_spill] sm:$0xff] %v4486_v54 }
  0xa1   :  { %3513 = vmatmul.msk.f32.gmra.mxu2 %vm132_vm0, %v4318_v31 }
  0xa2   :  { %v4490_v55 = vpop.f32.mrf.mxu0  ;;  %v4492_v56 = vpop.f32.mrf.mxu1  ;;  %3525 = vmatmul.msk.f32.gmra.mxu3 %vm132_vm0, %v4318_v31  ;;  %v4650_v31 = vld [vmem:[%s7129_s3 + $0x20] sm:$0xff] }
  0xa5   :  { %3490 = vmatmul.msk.f32.gmra.mxu0 %vm132_vm0, %v4343_v36  ;;  %3502 = vmatmul.msk.f32.gmra.mxu1 %vm132_vm0, %v4343_v36  ;;  %v4500_v58 = vpop.f32.mrf.mxu3 }
  0xa6   :  { %7182 = vst [vmem:[#allocation7_spill] sm:$0xff] %v4500_v58 }
  0xa9   :  { %3514 = vmatmul.msk.f32.gmra.mxu2 %vm132_vm0, %v4343_v36 }
  0xaa   :  { %v4504_v59 = vpop.f32.mrf.mxu0  ;;  %v4506_v60 = vpop.f32.mrf.mxu1  ;;  %3526 = vmatmul.msk.f32.gmra.mxu3 %vm132_vm0, %v4343_v36  ;;  %v4670_v36 = vld [vmem:[%s7129_s3 + $0x28] sm:$0xff] }
  0xad   :  { %3491 = vmatmul.msk.f32.gmra.mxu0 %vm132_vm0, %v4356_v37  ;;  %3503 = vmatmul.msk.f32.gmra.mxu1 %vm132_vm0, %v4356_v37  ;;  %v4514_v61 = vpop.f32.mrf.mxu3 }
  0xae   :  { %7183 = vst [vmem:[#allocation8_spill] sm:$0xff] %v4514_v61 }
  0xb1   :  { %3515 = vmatmul.msk.f32.gmra.mxu2 %vm132_vm0, %v4356_v37 }
  0xb2   :  { %v4518_v62 = vpop.f32.mrf.mxu0  ;;  %v4520_v63 = vpop.f32.mrf.mxu1  ;;  %3527 = vmatmul.msk.f32.gmra.mxu3 %vm132_vm0, %v4356_v37  ;;  %v4675_v37 = vld [vmem:[%s7130_s4 + $0x28] sm:$0xff] }
  0xb3   :  { %7184 = vst [vmem:[#allocation9_spill] sm:$0xff] %v4518_v62 }
  0xb4   :  { %7185 = vst [vmem:[#allocation10_spill] sm:$0xff] %v4520_v63 }
  0xb5   :  { %3492 = vmatmul.msk.f32.gmra.mxu0 %vm132_vm0, %v4369_v38  ;;  %3504 = vmatmul.msk.f32.gmra.mxu1 %vm132_vm0, %v4369_v38  ;;  %v4531_v1 = vpop.f32.mrf.mxu3 }
  0xb6   :  { %7186 = vst [vmem:[#allocation11_spill] sm:$0xff] %v4531_v1 }
  0xb9   :  { %3516 = vmatmul.msk.f32.gmra.mxu2 %vm132_vm0, %v4369_v38 }
  0xba   :  { %v4538_v3 = vpop.f32.mrf.mxu0  ;;  %v4540_v4 = vpop.f32.mrf.mxu1  ;;  %3528 = vmatmul.msk.f32.gmra.mxu3 %vm132_vm0, %v4369_v38 }
  0xbb   :  { %7187 = vst [vmem:[#allocation12_spill] sm:$0xff] %v4538_v3 }
  0xbc   :  { %7188 = vst [vmem:[#allocation13_spill] sm:$0xff] %v4540_v4 }
  0xbd   :  { %3493 = vmatmul.msk.f32.gmra.mxu0 %vm132_vm0, %v4394_v43  ;;  %3505 = vmatmul.msk.f32.gmra.mxu1 %vm132_vm0, %v4394_v43  ;;  %v4548_v5 = vpop.f32.mrf.mxu3 }
  0xbe   :  { %7189 = vst [vmem:[#allocation14_spill] sm:$0xff] %v4548_v5 }
  0xc1   :  { %3517 = vmatmul.msk.f32.gmra.mxu2 %vm132_vm0, %v4394_v43 }
  0xc2   :  { %v4555_v7 = vpop.f32.mrf.mxu0  ;;  %v4557_v8 = vpop.f32.mrf.mxu1  ;;  %3529 = vmatmul.msk.f32.gmra.mxu3 %vm132_vm0, %v4394_v43 }
  0xc3   :  { %7190 = vst [vmem:[#allocation15_spill] sm:$0xff] %v4555_v7  ;;  %v4711_v7 = vpop.f32.mrf.mxu2 }
  0xc4   :  { %7191 = vst [vmem:[#allocation16_spill] sm:$0xff] %v4557_v8 }
  0xc5   :  { %3530 = vmatmul.msk.f32.vlgmr.msra.gmra.mxu0 %vm132_vm0, %v4562_v9  ;;  %3536 = vmatmul.msk.f32.vlgmr.msra.gmra.mxu1 %vm132_vm0, %v4567_v10  ;;  %v4575_v11 = vpop.f32.mrf.mxu3  ;;  %7222 = vst [vmem:[#allocation47_spill] sm:$0xff] %v4711_v7 }
  0xc6   :  { %7192 = vst [vmem:[#allocation17_spill] sm:$0xff] %v4575_v11 }
  0xca   :  { %v4577_v12 = vpop.f32.mrf.mxu0  ;;  %v4579_v13 = vpop.f32.mrf.mxu1 }
  0xcb   :  { %7193 = vst [vmem:[#allocation18_spill] sm:$0xff] %v4577_v12 }
  0xcc   :  { %7194 = vst [vmem:[#allocation19_spill] sm:$0xff] %v4579_v13 }
  0xcd   :  { %3531 = vmatmul.msk.f32.gmra.mxu0 %vm132_vm0, %v4584_v14  ;;  %3537 = vmatmul.msk.f32.gmra.mxu1 %vm132_vm0, %v4589_v15  ;;  %v4595_v16 = vpop.f32.mrf.mxu3 }
  0xce   :  { %7195 = vst [vmem:[#allocation20_spill] sm:$0xff] %v4595_v16 }
  0xd2   :  { %v4597_v17 = vpop.f32.mrf.mxu0  ;;  %v4599_v18 = vpop.f32.mrf.mxu1 }
  0xd3   :  { %7196 = vst [vmem:[#allocation21_spill] sm:$0xff] %v4597_v17 }
  0xd4   :  { %7197 = vst [vmem:[#allocation22_spill] sm:$0xff] %v4599_v18 }
  0xd5   :  { %3532 = vmatmul.msk.f32.gmra.mxu0 %vm132_vm0, %v4604_v19  ;;  %3538 = vmatmul.msk.f32.gmra.mxu1 %vm132_vm0, %v4609_v20  ;;  %v4618_v22 = vpop.f32.mrf.mxu3 }
  0xd6   :  { %7198 = vst [vmem:[#allocation23_spill] sm:$0xff] %v4618_v22 }
  0xda   :  { %v4620_v23 = vpop.f32.mrf.mxu0  ;;  %v4622_v24 = vpop.f32.mrf.mxu1 }
  0xdb   :  { %7199 = vst [vmem:[#allocation24_spill] sm:$0xff] %v4620_v23 }
  0xdc   :  { %7200 = vst [vmem:[#allocation25_spill] sm:$0xff] %v4622_v24  ;;  %v4725_v24 = vpop.permute.xlu0 %109 }
  0xdd   :  { %3533 = vmatmul.msk.f32.gmra.mxu0 %vm132_vm0, %v4627_v25  ;;  %3539 = vmatmul.msk.f32.gmra.mxu1 %vm132_vm0, %v4632_v26  ;;  %v4641_v28 = vpop.f32.mrf.mxu3 }
  0xde   :  { %7201 = vst [vmem:[#allocation26_spill] sm:$0xff] %v4641_v28 }
  0xe2   :  { %v4643_v29 = vpop.f32.mrf.mxu0  ;;  %v4645_v30 = vpop.f32.mrf.mxu1 }
  0xe3   :  { %7202 = vst [vmem:[#allocation27_spill] sm:$0xff] %v4643_v29 }
  0xe4   :  { %7203 = vst [vmem:[#allocation28_spill] sm:$0xff] %v4645_v30  ;;  %v4735_v4 = vpop.permute.xlu0 %104 }
  0xe5   :  { %3534 = vmatmul.msk.f32.gmra.mxu0 %vm132_vm0, %v4650_v31  ;;  %3540 = vmatmul.msk.f32.gmra.mxu1 %vm132_vm0, %v4655_v32  ;;  %v4661_v33 = vpop.f32.mrf.mxu3 }
  0xe6   :  { %7204 = vst [vmem:[#allocation29_spill] sm:$0xff] %v4661_v33 }
  0xea   :  { %v4663_v34 = vpop.f32.mrf.mxu0  ;;  %v4665_v35 = vpop.f32.mrf.mxu1 }
  0xeb   :  { %7205 = vst [vmem:[#allocation30_spill] sm:$0xff] %v4663_v34 }
  0xec   :  { %7206 = vst [vmem:[#allocation31_spill] sm:$0xff] %v4665_v35  ;;  %v4747_v30 = vpop.permute.xlu0 %722 }
  0xed   :  { %3535 = vmatmul.msk.f32.gmra.mxu0 %vm132_vm0, %v4670_v36  ;;  %3541 = vmatmul.msk.f32.gmra.mxu1 %vm132_vm0, %v4675_v37  ;;  %v4681_v38 = vpop.f32.mrf.mxu3 }
  0xee   :  { %7207 = vst [vmem:[#allocation32_spill] sm:$0xff] %v4681_v38  ;;  %v4719_v38 = vpop.f32.mrf.mxu2 }
  0xef   :  { %7226 = vst [vmem:[#allocation51_spill] sm:$0xff] %v4719_v38 }
  0xf2   :  { %v4683_v39 = vpop.f32.mrf.mxu0  ;;  %v4685_v40 = vpop.f32.mrf.mxu1 }
  0xf3   :  { %7208 = vst [vmem:[#allocation33_spill] sm:$0xff] %v4683_v39 }
  0xf4   :  { %7209 = vst [vmem:[#allocation34_spill] sm:$0xff] %v4685_v40  ;;  %v4762_v11 = vpop.permute.xlu0 %89 }
  0xf5   :  { %v4687_v41 = vpop.f32.mrf.mxu3 }
  0xf6   :  { %7210 = vst [vmem:[#allocation35_spill] sm:$0xff] %v4687_v41  ;;  %v4727_v18 = vpop.f32.mrf.mxu2 }
  0xf7   :  { %7229 = vst [vmem:[#allocation54_spill] sm:$0xff] %v4727_v18 }
  0xfa   :  { %v4689_v42 = vpop.f32.mrf.mxu0  ;;  %v4691_v43 = vpop.f32.mrf.mxu1 }
  0xfb   :  { %7211 = vst [vmem:[#allocation36_spill] sm:$0xff] %v4689_v42 }
  0xfc   :  { %7212 = vst [vmem:[#allocation37_spill] sm:$0xff] %v4691_v43 }
  0xfd   :  { %v4693_v57 = vpop.f32.mrf.mxu3 }
  0xfe   :  { %7213 = vst [vmem:[#allocation38_spill] sm:$0xff] %v4693_v57  ;;  %v4743_v40 = vpop.f32.mrf.mxu2 }
  0xff   :  { %7234 = vst [vmem:[#allocation59_spill] sm:$0xff] %v4743_v40 }
 0x102   :  { %v4695_v0 = vpop.f32.mrf.mxu0  ;;  %v4697_v2 = vpop.f32.mrf.mxu1 }
 0x103   :  { %7214 = vst [vmem:[#allocation39_spill] sm:$0xff] %v4695_v0 }
 0x104   :  { %7215 = vst [vmem:[#allocation40_spill] sm:$0xff] %v4697_v2 }
 0x105   :  { %v4699_v6 = vpop.f32.mrf.mxu3 }
 0x106   :  { %7216 = vst [vmem:[#allocation41_spill] sm:$0xff] %v4699_v6  ;;  %v4755_v28 = vpop.f32.mrf.mxu2 }
 0x107   :  { %7237 = vst [vmem:[#allocation62_spill] sm:$0xff] %v4755_v28 }
 0x10a   :  { %v4701_v21 = vpop.f32.mrf.mxu0  ;;  %v4703_v27 = vpop.f32.mrf.mxu1 }
 0x10b   :  { %7217 = vst [vmem:[#allocation42_spill] sm:$0xff] %v4701_v21 }
 0x10c   :  { %7218 = vst [vmem:[#allocation43_spill] sm:$0xff] %v4703_v27  ;;  %v4737_v27 = vpop.permute.xlu2 %79 }
 0x10d   :  { %v4705_v23 = vpop.f32.mrf.mxu3 }
 0x10e   :  { %7219 = vst [vmem:[#allocation44_spill] sm:$0xff] %v4705_v23  ;;  %v4766_v58 = vpop.f32.mrf.mxu2 }
 0x10f   :  { %7240 = vst [vmem:[#allocation65_spill] sm:$0xff] %v4766_v58 }
 0x112   :  { %v4707_v17 = vpop.f32.mrf.mxu0  ;;  %v4709_v12 = vpop.f32.mrf.mxu1 }
 0x113   :  { %7220 = vst [vmem:[#allocation45_spill] sm:$0xff] %v4707_v17 }
 0x114   :  { %7221 = vst [vmem:[#allocation46_spill] sm:$0xff] %v4709_v12  ;;  %v4753_v33 = vpop.permute.xlu2 %74 }
 0x115   :  { %v4713_v41 = vpop.f32.mrf.mxu3  ;;  %v187_v39 = vadd.f32 %v4436_v44, %v4753_v33 }
 0x116   :  { %7223 = vst [vmem:[#allocation48_spill] sm:$0xff] %v4713_v41  ;;  %v4733_v41 = vpop.permute.xlu1 %119 }
 0x11a   :  { %v4715_v57 = vpop.f32.mrf.mxu0  ;;  %v4717_v3 = vpop.f32.mrf.mxu1 }
 0x11b   :  { %7224 = vst [vmem:[#allocation49_spill] sm:$0xff] %v4715_v57 }
 0x11c   :  { %7225 = vst [vmem:[#allocation50_spill] sm:$0xff] %v4717_v3  ;;  %v4764_v61 = vpop.permute.xlu2 %717 }
 0x11d   :  { %v575_v23 = vpop.f32.mrf.mxu3  ;;  %7239 = vst [vmem:[#allocation64_spill] sm:$0xff] %v4764_v61 }
 0x11e   :  { %v4745_v35 = vpop.permute.xlu1 %114  ;;  %v576_v22 = vadd.f32 %v575_v23, %v4735_v4  ;;  %v190_v23 = vadd.f32 %v4448_v46, %v4737_v27 }
 0x122   :  { %v4721_v6 = vpop.f32.mrf.mxu0  ;;  %v4723_v62 = vpop.f32.mrf.mxu1 }
 0x123   :  { %7227 = vst [vmem:[#allocation52_spill] sm:$0xff] %v4721_v6 }
 0x124   :  { %7228 = vst [vmem:[#allocation53_spill] sm:$0xff] %v4723_v62 }
 0x125   :  { %v578_v63 = vpop.f32.mrf.mxu3 }
 0x126   :  { %v4758_v16 = vpop.permute.xlu1 %129  ;;  %v579_v44 = vadd.f32 %v578_v63, %v4725_v24  ;;  %v4780_v63 = vpop.permute.xlu2 %84 }
 0x127   :  { %7238 = vst [vmem:[#allocation63_spill] sm:$0xff] %v4758_v16 }
 0x12a   :  { %v4729_v13 = vpop.f32.mrf.mxu0  ;;  %v4731_v8 = vpop.f32.mrf.mxu1 }
 0x12b   :  { %7230 = vst [vmem:[#allocation55_spill] sm:$0xff] %v4729_v13 }
 0x12c   :  { %7231 = vst [vmem:[#allocation56_spill] sm:$0xff] %v4731_v8 }
 0x12d   :  { %v581_v21 = vpop.f32.mrf.mxu3 }
 0x12e   :  { %v4771_v57 = vpop.permute.xlu1 %124 }
 0x12f   :  { %7241 = vst [vmem:[#allocation66_spill] sm:$0xff] %v4771_v57 }
 0x132   :  { %v4739_v2 = vpop.f32.mrf.mxu0  ;;  %v4741_v43 = vpop.f32.mrf.mxu1 }
 0x133   :  { %7232 = vst [vmem:[#allocation57_spill] sm:$0xff] %v4739_v2 }
 0x134   :  { %7233 = vst [vmem:[#allocation58_spill] sm:$0xff] %v4741_v43 }
 0x135   :  { %v584_v34 = vpop.f32.mrf.mxu3 }
 0x13a   :  { %v4749_v0 = vpop.f32.mrf.mxu0  ;;  %v4751_v42 = vpop.f32.mrf.mxu1 }
 0x13b   :  { %7235 = vst [vmem:[#allocation60_spill] sm:$0xff] %v4749_v0 }
 0x13c   :  { %7236 = vst [vmem:[#allocation61_spill] sm:$0xff] %v4751_v42  ;;  %v196_v42 = vadd.f32 %v4476_v52, %v4762_v11 }
 0x142   :  { %v760_v5 = vpop.f32.mrf.mxu0  ;;  %v813_v29 = vpop.f32.mrf.mxu1 }
 0x143   :  { %v837_v2 = vadd.f32 %v760_v5, %v187_v39  ;;  %v937_v0 = vadd.f32 %v813_v29, %v576_v22  ;;  %v4773_v22 = vpop.permute.xlu0 %710  ;;  %v587_v29 = vpop.f32.mrf.mxu3 }
 0x145   :  { %v3542_v13 = vmul.f32 -1.442695, %v837_v2  ;;  %v3546_v1 = vmul.f32 -1.442695, %v937_v0 }
 0x147   :  { %3711 = vpow2.f32 %v3542_v13  ;;  %v582_v13 = vadd.f32 %v581_v21, %v4745_v35 }
 0x148   :  { %3713 = vpow2.f32 %v3546_v1 }
 0x14a   :  { %v763_v6 = vpop.f32.mrf.mxu0  ;;  %v816_v54 = vpop.f32.mrf.mxu1 }
 0x14b   :  { %v838_v51 = vadd.f32 %v763_v6, %v190_v23  ;;  %v938_v5 = vadd.f32 %v816_v54, %v579_v44  ;;  %v193_v54 = vadd.f32 %v4462_v49, %v4780_v63  ;;  %v4785_v6 = vpop.f32.mrf.mxu2  ;;  %v4794_v49 = vpop.permute.xlu0 %94 }
 0x14c   :  { %7242 = vst [vmem:[#allocation67_spill] sm:$0xff] %v4785_v6  ;;  %v590_v43 = vpop.f32.mrf.mxu3 }
 0x14d   :  { %v3712_v39 = vpop.eup %3711  ;;  %v3543_v0 = vmul.f32 -1.442695, %v838_v51  ;;  %v3547_v1 = vmul.f32 -1.442695, %v938_v5 }
 0x14e   :  { %v3714_v2 = vpop.eup %3713  ;;  %v4775_v17 = vadd.f32 1.0, %v3712_v39  ;;  %v4788_v39 = vpop.permute.xlu1 %99 }
 0x14f   :  { %v4778_v46 = vadd.f32 1.0, %v3714_v2  ;;  %3715 = vpow2.f32 %v3543_v0  ;;  %7243 = vst [vmem:[#allocation68_spill] sm:$0xff] %v4788_v39 }
 0x150   :  { %3717 = vrcp.f32 %v4775_v17  ;;  %v856_v58 = vand.u32 2147483647, %v4775_v17  ;;  %vm852_vm1 = vweird.f32 %v4775_v17 }
 0x151   :  { %3719 = vrcp.f32 %v4778_v46  ;;  %vm952_vm2 = vweird.f32 %v4778_v46 }
 0x152   :  { %3721 = vpow2.f32 %v3547_v1  ;;  %v766_v51 = vpop.f32.mrf.mxu0  ;;  %v819_v23 = vpop.f32.mrf.mxu1  ;;  %vm4839_vm4 = vcmp.eq.f32.partialorder %v856_v58, 8.507059e+37 }
 0x153   :  { %v877_v44 = vadd.f32 %v766_v51, %v193_v54  ;;  %v977_v5 = vadd.f32 %v819_v23, %v582_v13  ;;  %v4802_v13 = vadd.f32 %v4490_v55, %v4794_v49  ;;  %v4806_v54 = vadd.f32 %v4504_v59, %v4788_v39 }
 0x154   :  { %v585_v23 = vadd.f32 %v584_v34, %v4733_v41  ;;  %v4820_v59 = vadd.f32 %v590_v43, %v4758_v16  ;;  %v858_v34 = vand.u32 2147483648, %v4775_v17 }
 0x155   :  { %v3716_v21 = vpop.eup %3715  ;;  %v3544_v0 = vmul.f32 -1.442695, %v877_v44  ;;  %v3548_v2 = vmul.f32 -1.442695, %v977_v5  ;;  %v4813_v44 = vadd.f32 %v587_v29, %v4771_v57  ;;  %v956_v29 = vand.u32 2147483647, %v4778_v46 }
 0x156   :  { %v4790_v48 = vpop.eup %3717  ;;  %v4796_v6 = vadd.f32 1.0, %v3716_v21 }
 0x157   :  { %v4798_v1 = vpop.eup %3719  ;;  %3723 = vpow2.f32 %v3544_v0  ;;  %v848_v51 = vmul.f32 %v4790_v48, %v4775_v17  ;;  %vm853_vm3 = vweird.f32 %v4790_v48  ;;  %vm4845_vm6 = vcmp.eq.f32.partialorder %v956_v29, 8.507059e+37 }
 0x158   :  { %v3722_v52 = vpop.eup %3721  ;;  %3725 = vrcp.f32 %v4796_v6  ;;  %v948_v55 = vmul.f32 %v4798_v1, %v4778_v46  ;;  %vm953_vm5 = vweird.f32 %v4798_v1  ;;  %vm4856_vm7 = vmor %vm852_vm1, %vm853_vm3  ;;  %vm867_vm9 = vweird.f32 %v4796_v6 }
 0x159   :  { %v4817_v5 = vadd.f32 1.0, %v3722_v52  ;;  %3727 = vpow2.f32 %v3548_v2  ;;  %v849_v21 = vsub.f32 1.0, %v848_v51  ;;  %v4827_v2 = vpop.f32.mrf.mxu2  ;;  %v958_v51 = vand.u32 2147483648, %v4778_v46  ;;  %vm4872_vm8 = vmor %vm952_vm2, %vm953_vm5 }
 0x15a   :  { %v769_v0 = vpop.f32.mrf.mxu0  ;;  %v822_v8 = vpop.f32.mrf.mxu1  ;;  %v949_v28 = vsub.f32 1.0, %v948_v55  ;;  %7244 = vst [vmem:[#allocation69_spill] sm:$0xff] %v4827_v2 }
 0x15b   :  { %3729 = vrcp.f32 %v4817_v5  ;;  %v878_v40 = vadd.f32 %v769_v0, %v196_v42  ;;  %v978_v62 = vadd.f32 %v822_v8, %v585_v23  ;;  %v850_v52 = vmul.f32 %v4790_v48, %v849_v21 }
 0x15c   :  { %v950_v43 = vmul.f32 %v4798_v1, %v949_v28  ;;  %v971_v12 = vand.u32 2147483647, %v4817_v5  ;;  %vm967_vm13 = vweird.f32 %v4817_v5 }
 0x15d   :  { %v3724_v18 = vpop.eup %3723  ;;  %v3545_v55 = vmul.f32 -1.442695, %v878_v40  ;;  %v3549_v3 = vmul.f32 -1.442695, %v978_v62  ;;  %v851_v38 = vadd.f32 %v4790_v48, %v850_v52  ;;  %v859_v40 = vor.u32 1.1754944e-38, %v858_v34 }
 0x15e   :  { %v4835_v8 = vpop.eup %3725  ;;  %v4837_v42 = vadd.f32 1.0, %v3724_v18  ;;  %v951_v28 = vadd.f32 %v4798_v1, %v950_v43  ;;  %v959_v52 = vor.u32 1.1754944e-38, %v958_v51  ;;  %v871_v34 = vand.u32 2147483647, %v4796_v6  ;;  %v4863_v43 = vpop.permute.xlu2 %705 }
 0x15f   :  { %v3728_v21 = vpop.eup %3727  ;;  %3731 = vpow2.f32 %v3545_v55  ;;  %v863_v0 = vmul.f32 %v4835_v8, %v4796_v6  ;;  %7251 = vst [vmem:[#allocation70_spill] sm:$0xff] %v4863_v43  ;;  %v855_v55 = vsel %vm4856_vm7, %v4790_v48, %v851_v38  ;;  %v873_v48 = vand.u32 2147483648, %v4796_v6 }
 0x160   :  { %3733 = vrcp.f32 %v4837_v42  ;;  %v4852_v58 = vadd.f32 1.0, %v3728_v21  ;;  %v860_v7 = vsel %vm4839_vm4, %v859_v40, %v855_v55  ;;  %vm4890_vm10 = vcmp.eq.f32.partialorder %v871_v34, 8.507059e+37 }
 0x161   :  { %v4861_v29 = vpop.eup %3729  ;;  %3735 = vpow2.f32 %v3549_v3  ;;  %v864_v51 = vsub.f32 1.0, %v863_v0  ;;  %v955_v3 = vsel %vm4872_vm8, %v4798_v1, %v951_v28  ;;  %v973_v28 = vand.u32 2147483648, %v4817_v5  ;;  %v4901_v23 = vpop.f32.mrf.mxu2 }
 0x162   :  { %3737 = vrcp.f32 %v4852_v58  ;;  %v772_v21 = vpop.f32.mrf.mxu0  ;;  %v825_v2 = vpop.f32.mrf.mxu1  ;;  %v963_v38 = vmul.f32 %v4861_v29, %v4817_v5  ;;  %vm868_vm11 = vweird.f32 %v4835_v8  ;;  %7256 = vst [vmem:[#allocation71_spill] sm:$0xff] %v4901_v23  ;;  %vm968_vm12 = vweird.f32 %v4861_v29 }
 0x163   :  { %v917_v46 = vadd.f32 %v772_v21, %v4863_v43  ;;  %v1017_v18 = vadd.f32 %v825_v2, %v4764_v61  ;;  %v865_v0 = vmul.f32 %v4835_v8, %v864_v51  ;;  %v960_v21 = vsel %vm4845_vm6, %v959_v52, %v955_v3  ;;  %vm4923_vm15 = vmor %vm867_vm9, %vm868_vm11 }
 0x164   :  { %v964_v1 = vsub.f32 1.0, %v963_v38  ;;  %v874_v62 = vor.u32 1.1754944e-38, %v873_v48  ;;  %vm4910_vm14 = vcmp.eq.f32.partialorder %v971_v12, 8.507059e+37  ;;  %v974_v12 = vor.u32 1.1754944e-38, %v973_v28  ;;  %vm4936_vm1 = vmor %vm967_vm13, %vm968_vm12 }
 0x165   :  { %v3732_v17 = vpop.eup %3731  ;;  %v919_v57 = vmul.f32 %v917_v46, %v860_v7  ;;  %v866_v2 = vadd.f32 %v4835_v8, %v865_v0  ;;  %v1019_v34 = vmul.f32 %v1017_v18, %v960_v21  ;;  %vm892_vm2 = vweird.f32 %v4837_v42 }
 0x166   :  { %v4899_v51 = vpop.eup %3733  ;;  %v4903_v40 = vadd.f32 1.0, %v3732_v17  ;;  %v965_v55 = vmul.f32 %v4861_v29, %v964_v1  ;;  %vm992_vm3 = vweird.f32 %v4852_v58 }
 0x167   :  { %v3736_v38 = vpop.eup %3735  ;;  %v888_v7 = vmul.f32 %v4899_v51, %v4837_v42  ;;  %v921_v1 = vadd.f32 %v919_v57, %v4802_v13  ;;  %v870_v17 = vsel %vm4923_vm15, %v4835_v8, %v866_v2  ;;  %v1021_v28 = vadd.f32 %v1019_v34, %v4813_v44 }
 0x168   :  { %v4914_v3 = vpop.eup %3737  ;;  %3739 = vrcp.f32 %v4903_v40  ;;  %v4917_v46 = vadd.f32 1.0, %v3736_v38  ;;  %v966_v5 = vadd.f32 %v4861_v29, %v965_v55  ;;  %v896_v2 = vand.u32 2147483647, %v4837_v42 }
 0x169   :  { %v889_v48 = vsub.f32 1.0, %v888_v7  ;;  %v988_v0 = vmul.f32 %v4914_v3, %v4852_v58  ;;  %v898_v38 = vand.u32 2147483648, %v4837_v42  ;;  %v875_v7 = vsel %vm4890_vm10, %v874_v62, %v870_v17 }
 0x16a   :  { %3741 = vrcp.f32 %v4917_v46  ;;  %v775_v21 = vpop.f32.mrf.mxu0  ;;  %v828_v55 = vpop.f32.mrf.mxu1  ;;  %v970_v57 = vsel %vm4936_vm1, %v4861_v29, %v966_v5  ;;  %v996_v34 = vand.u32 2147483647, %v4852_v58  ;;  %vm4961_vm4 = vcmp.eq.f32.partialorder %v896_v2, 8.507059e+37 }
 0x16b   :  { %v989_v13 = vsub.f32 1.0, %v988_v0  ;;  %v918_v8 = vadd.f32 %v775_v21, %v4773_v22  ;;  %v1018_v44 = vadd.f32 %v828_v55, %v4747_v30  ;;  %3743 = vtanh.f32 %v921_v1 }
 0x16c   :  { %v975_v18 = vsel %vm4910_vm14, %v974_v12, %v970_v57  ;;  %v890_v5 = vmul.f32 %v4899_v51, %v889_v48  ;;  %3745 = vtanh.f32 %v1021_v28  ;;  %v911_v21 = vand.u32 2147483647, %v4903_v40  ;;  %v4965_v12 = vpop.f32.mrf.mxu2 }
 0x16d   :  { %v920_v29 = vmul.f32 %v918_v8, %v875_v7  ;;  %v1020_v6 = vmul.f32 %v1018_v44, %v975_v18  ;;  %v990_v16 = vmul.f32 %v4914_v3, %v989_v13  ;;  %v899_v1 = vor.u32 1.1754944e-38, %v898_v38  ;;  %7265 = vst [vmem:[#allocation72_spill] sm:$0xff] %v4965_v12 }
 0x16e   :  { %v3740_v0 = vpop.eup %3739  ;;  %v913_v28 = vand.u32 2147483648, %v4903_v40  ;;  %v891_v57 = vadd.f32 %v4899_v51, %v890_v5  ;;  %vm893_vm5 = vweird.f32 %v4899_v51  ;;  %vm993_vm6 = vweird.f32 %v4914_v3 }
 0x16f   :  { %v903_v62 = vmul.f32 %v3740_v0, %v4903_v40  ;;  %v922_v17 = vadd.f32 %v920_v29, %v4806_v54  ;;  %v1022_v48 = vadd.f32 %v1020_v6, %v4820_v59  ;;  %vm907_vm7 = vweird.f32 %v4903_v40  ;;  %vm4981_vm10 = vmor %vm892_vm2, %vm893_vm5 }
 0x170   :  { %v3742_v52 = vpop.eup %3741  ;;  %vm4974_vm8 = vcmp.eq.f32.partialorder %v911_v21, 8.507059e+37  ;;  %v991_v59 = vadd.f32 %v4914_v3, %v990_v16  ;;  %vm908_vm9 = vweird.f32 %v3740_v0  ;;  %v998_v29 = vand.u32 2147483648, %v4852_v58  ;;  %vm4995_vm11 = vmor %vm992_vm3, %vm993_vm6 }
 0x171   :  { %v904_v13 = vsub.f32 1.0, %v903_v62  ;;  %v1003_v8 = vmul.f32 %v3742_v52, %v4917_v46  ;;  %3747 = vtanh.f32 %v922_v17  ;;  %v3744_v2 = vpop.eup %3743  ;;  %v914_v5 = vor.u32 1.1754944e-38, %v913_v28  ;;  %vm909_vm13 = vmor %vm907_vm7, %vm908_vm9 }
 0x172   :  { %3749 = vtanh.f32 %v1022_v48  ;;  %v3746_v18 = vpop.eup %3745  ;;  %v1011_v6 = vand.u32 2147483647, %v4917_v46  ;;  %v1013_v21 = vand.u32 2147483648, %v4917_v46  ;;  %v895_v16 = vsel %vm4981_vm10, %v4899_v51, %v891_v57 }
 0x173   :  { %v1004_v38 = vsub.f32 1.0, %v1003_v8  ;;  %v905_v7 = vmul.f32 %v3740_v0, %v904_v13  ;;  %vm1008_vm12 = vweird.f32 %v3742_v52  ;;  %v995_v48 = vsel %vm4995_vm11, %v4914_v3, %v991_v59 }
 0x174   :  { %vm1007_vm14 = vweird.f32 %v4917_v46  ;;  %v925_v51 = vsub.f32 0.0, %v3744_v2  ;;  %vm997_vm15 = vcmp.eq.f32.partialorder %v996_v34, 8.507059e+37  ;;  %v999_v28 = vor.u32 1.1754944e-38, %v998_v29  ;;  %v5010_v29 = vpop.f32.mrf.mxu2 }
 0x175   :  { %v906_v62 = vadd.f32 %v3740_v0, %v905_v7  ;;  %v1005_v17 = vmul.f32 %v3742_v52, %v1004_v38  ;;  %v900_v8 = vsel %vm4961_vm4, %v899_v1, %v895_v16  ;;  %v1025_v38 = vsub.f32 0.0, %v3746_v18  ;;  %vm1009_vm1 = vmor %vm1007_vm14, %vm1008_vm12  ;;  %7272 = vst [vmem:[#allocation73_spill] sm:$0xff] %v5010_v29 }
 0x176   :  { %v1014_v40 = vor.u32 1.1754944e-38, %v1013_v21  ;;  %v1000_v59 = vsel %vm997_vm15, %v999_v28, %v995_v48  ;;  %vm1012_vm2 = vcmp.eq.f32.partialorder %v1011_v6, 8.507059e+37 }
 0x177   :  { %v3748_v58 = vpop.eup %3747  ;;  %v910_v57 = vsel %vm909_vm13, %v3740_v0, %v906_v62  ;;  %v1006_v13 = vadd.f32 %v3742_v52, %v1005_v17  ;;  %v927_v62 = vmul.f32 %v925_v51, %v900_v8  ;;  %v1027_v1 = vmul.f32 %v1025_v38, %v1000_v59 }
 0x178   :  { %v3750_v7 = vpop.eup %3749  ;;  %v915_v44 = vsel %vm4974_vm8, %v914_v5, %v910_v57  ;;  %v926_v3 = vsub.f32 0.0, %v3748_v58  ;;  %v243_v57 = vadd.f32 %v4450_v47, %v4737_v27  ;;  %v246_v47 = vadd.f32 %v4464_v50, %v4780_v63 }
 0x179   :  { %v1010_v46 = vsel %vm1009_vm1, %v3742_v52, %v1006_v13  ;;  %v1026_v34 = vsub.f32 0.0, %v3750_v7  ;;  %v5017_v54 = vadd.f32 %v3744_v2, %v927_v62  ;;  %v5020_v52 = vadd.f32 %v3746_v18, %v1027_v1 }
 0x17a   :  { %v928_v0 = vmul.f32 %v926_v3, %v915_v44  ;;  %v1015_v42 = vsel %vm1012_vm2, %v1014_v40, %v1010_v46  ;;  %v249_v50 = vadd.f32 %v4478_v53, %v4762_v11 }
 0x17b   :  { %v1028_v55 = vmul.f32 %v1026_v34, %v1015_v42  ;;  %7275 = vst [vmem:[#allocation76_spill] sm:$0xff] %v5017_v54 }
 0x17c   :  { %v5012_v16 = vadd.f32 %v3748_v58, %v928_v0  ;;  %7276 = vst [vmem:[#allocation77_spill] sm:$0xff] %v5020_v52  ;;  %v5028_v5 = vpop.f32.mrf.mxu2 }
 0x17d   :  { %v5014_v17 = vadd.f32 %v3750_v7, %v1028_v55  ;;  %7277 = vst [vmem:[#allocation78_spill] sm:$0xff] %v5028_v5 }
 0x17e   :  { %7273 = vst [vmem:[#allocation74_spill] sm:$0xff] %v5012_v16  ;;  %1049 = vmatpush.msra.mxu2 %v5012_v16 }
 0x17f   :  { %7274 = vst [vmem:[#allocation75_spill] sm:$0xff] %v5014_v17  ;;  %1084 = vmatpush.msra.mxu3 %v5014_v17 }
 0x180   :  { %1050 = vmatpush.msra.mxu2 %v5017_v54 }
 0x181   :  { %1085 = vmatpush.msra.mxu3 %v5020_v52  ;;  %3550 = vmatmul.msk.f32.vlgmr.msra.gmra.mxu2 %vm132_vm0, %v4562_v9 }
 0x182   :  { %3556 = vmatmul.msk.f32.vlgmr.msra.gmra.mxu3 %vm132_vm0, %v4567_v10 }
 0x184   :  { %v5034_v2 = vpop.f32.mrf.mxu2 }
 0x185   :  { %7278 = vst [vmem:[#allocation79_spill] sm:$0xff] %v5034_v2 }
 0x189   :  { %3551 = vmatmul.msk.f32.gmra.mxu2 %vm132_vm0, %v4584_v14 }
 0x18a   :  { %3557 = vmatmul.msk.f32.gmra.mxu3 %vm132_vm0, %v4589_v15 }
 0x18c   :  { %v5040_v9 = vpop.f32.mrf.mxu2 }
 0x18d   :  { %7279 = vst [vmem:[#allocation80_spill] sm:$0xff] %v5040_v9 }
 0x191   :  { %3552 = vmatmul.msk.f32.gmra.mxu2 %vm132_vm0, %v4604_v19 }
 0x192   :  { %3558 = vmatmul.msk.f32.gmra.mxu3 %vm132_vm0, %v4609_v20 }
 0x194   :  { %v5048_v10 = vpop.f32.mrf.mxu2 }
 0x195   :  { %7280 = vst [vmem:[#allocation81_spill] sm:$0xff] %v5048_v10 }
 0x199   :  { %3553 = vmatmul.msk.f32.gmra.mxu2 %vm132_vm0, %v4627_v25 }
 0x19a   :  { %3559 = vmatmul.msk.f32.gmra.mxu3 %vm132_vm0, %v4632_v26 }
 0x19c   :  { %v5056_v14 = vpop.f32.mrf.mxu2 }
 0x19d   :  { %7281 = vst [vmem:[#allocation82_spill] sm:$0xff] %v5056_v14 }
 0x1a1   :  { %3554 = vmatmul.msk.f32.gmra.mxu2 %vm132_vm0, %v4650_v31 }
 0x1a2   :  { %3560 = vmatmul.msk.f32.gmra.mxu3 %vm132_vm0, %v4655_v32  ;;  %v240_v32 = vadd.f32 %v4438_v45, %v4753_v33 }
 0x1a4   :  { %v5058_v15 = vpop.f32.mrf.mxu2 }
 0x1a5   :  { %7282 = vst [vmem:[#allocation83_spill] sm:$0xff] %v5058_v15 }
 0x1a9   :  { %3555 = vmatmul.msk.f32.gmra.mxu2 %vm132_vm0, %v4670_v36 }
 0x1aa   :  { %3561 = vmatmul.msk.f32.gmra.mxu3 %vm132_vm0, %v4675_v37 }
 0x1ac   :  { %v5060_v19 = vpop.f32.mrf.mxu2 }
 0x1ad   :  { %7283 = vst [vmem:[#allocation84_spill] sm:$0xff] %v5060_v19 }
 0x1b4   :  { %v522_v20 = vpop.f32.mrf.mxu2 }
 0x1b5   :  { %v523_v36 = vadd.f32 %v522_v20, %v4735_v4 }
 0x1bc   :  { %v525_v25 = vpop.f32.mrf.mxu2 }
 0x1bd   :  { %v526_v13 = vadd.f32 %v525_v25, %v4725_v24 }
 0x1c4   :  { %v528_v26 = vpop.f32.mrf.mxu2 }
 0x1c5   :  { %v529_v0 = vadd.f32 %v528_v26, %v4745_v35  ;;  %v5087_v26 = vadd.f32 %v4492_v56, %v4794_v49 }
 0x1cc   :  { %v531_v31 = vpop.f32.mrf.mxu2 }
 0x1d4   :  { %v534_v18 = vpop.f32.mrf.mxu2 }
 0x1dc   :  { %v537_v6 = vpop.f32.mrf.mxu2 }
 0x204   :  { %v1052_v21 = vpop.f32.mrf.mxu2 }
 0x205   :  { %v1111_v48 = vadd.f32 %v1052_v21, %v240_v32  ;;  %v1087_v37 = vpop.f32.mrf.mxu3 }
 0x206   :  { %v1211_v51 = vadd.f32 %v1087_v37, %v523_v36 }
 0x207   :  { %v3562_v28 = vmul.f32 -1.442695, %v1111_v48 }
 0x208   :  { %v3566_v58 = vmul.f32 -1.442695, %v1211_v51 }
 0x209   :  { %3751 = vpow2.f32 %v3562_v28  ;;  %v5093_v28 = vadd.f32 %v4506_v60, %v4788_v39 }
 0x20a   :  { %3753 = vpow2.f32 %v3566_v58  ;;  %v532_v58 = vadd.f32 %v531_v31, %v4733_v41 }
 0x20c   :  { %v1055_v8 = vpop.f32.mrf.mxu2 }
 0x20d   :  { %v1112_v38 = vadd.f32 %v1055_v8, %v243_v57  ;;  %v1090_v7 = vpop.f32.mrf.mxu3  ;;  %v7284_v57 = vld [vmem:[#allocation66_spill] sm:$0xff] }
 0x20e   :  { %v1212_v44 = vadd.f32 %v1090_v7, %v526_v13  ;;  %v5100_v13 = vadd.f32 %v534_v18, %v7284_v57 }
 0x20f   :  { %v3752_v45 = vpop.eup %3751  ;;  %v3563_v3 = vmul.f32 -1.442695, %v1112_v38  ;;  %v7285_v38 = vld [vmem:[#allocation63_spill] sm:$0xff] }
 0x210   :  { %v3754_v40 = vpop.eup %3753  ;;  %v5068_v59 = vadd.f32 1.0, %v3752_v45  ;;  %v3567_v46 = vmul.f32 -1.442695, %v1212_v44  ;;  %v5105_v7 = vadd.f32 %v537_v6, %v7285_v38 }
 0x211   :  { %v5070_v34 = vadd.f32 1.0, %v3754_v40  ;;  %3755 = vpow2.f32 %v3563_v3 }
 0x212   :  { %3757 = vrcp.f32 %v5068_v59  ;;  %vm1126_vm3 = vweird.f32 %v5068_v59  ;;  %v1130_v60 = vand.u32 2147483647, %v5068_v59  ;;  %v1132_v40 = vand.u32 2147483648, %v5068_v59 }
 0x213   :  { %3759 = vrcp.f32 %v5070_v34  ;;  %v1230_v6 = vand.u32 2147483647, %v5070_v34  ;;  %vm1226_vm5 = vweird.f32 %v5070_v34 }
 0x214   :  { %3761 = vpow2.f32 %v3567_v46  ;;  %v1058_v42 = vpop.f32.mrf.mxu2  ;;  %vm5124_vm7 = vcmp.eq.f32.partialorder %v1130_v60, 8.507059e+37 }
 0x215   :  { %v1151_v62 = vadd.f32 %v1058_v42, %v246_v47  ;;  %v1093_v55 = vpop.f32.mrf.mxu3  ;;  %vm5139_vm9 = vcmp.eq.f32.partialorder %v1230_v6, 8.507059e+37 }
 0x216   :  { %v1251_v1 = vadd.f32 %v1093_v55, %v529_v0  ;;  %v1232_v0 = vand.u32 2147483648, %v5070_v34 }
 0x217   :  { %v3756_v20 = vpop.eup %3755  ;;  %v3564_v25 = vmul.f32 -1.442695, %v1151_v62 }
 0x218   :  { %v5077_v32 = vpop.eup %3757  ;;  %v5079_v36 = vadd.f32 1.0, %v3756_v20  ;;  %v3568_v21 = vmul.f32 -1.442695, %v1251_v1  ;;  %v1233_v60 = vor.u32 1.1754944e-38, %v1232_v0 }
 0x219   :  { %v5081_v48 = vpop.eup %3759  ;;  %3763 = vpow2.f32 %v3564_v25  ;;  %v1122_v37 = vmul.f32 %v5077_v32, %v5068_v59  ;;  %vm1127_vm4 = vweird.f32 %v5077_v32 }
 0x21a   :  { %v3762_v51 = vpop.eup %3761  ;;  %3765 = vrcp.f32 %v5079_v36  ;;  %v1222_v53 = vmul.f32 %v5081_v48, %v5070_v34  ;;  %vm1227_vm6 = vweird.f32 %v5081_v48  ;;  %vm5135_vm8 = vmor %vm1126_vm3, %vm1127_vm4  ;;  %vm1141_vm11 = vweird.f32 %v5079_v36 }
 0x21b   :  { %v5102_v56 = vadd.f32 1.0, %v3762_v51  ;;  %3767 = vpow2.f32 %v3568_v21  ;;  %v1123_v8 = vsub.f32 1.0, %v1122_v37  ;;  %v1133_v51 = vor.u32 1.1754944e-38, %v1132_v40  ;;  %vm5150_vm10 = vmor %vm1226_vm5, %vm1227_vm6 }
 0x21c   :  { %v1061_v44 = vpop.f32.mrf.mxu2  ;;  %v1223_v31 = vsub.f32 1.0, %v1222_v53  ;;  %v1147_v0 = vand.u32 2147483648, %v5079_v36 }
 0x21d   :  { %3769 = vrcp.f32 %v5102_v56  ;;  %v1152_v45 = vadd.f32 %v1061_v44, %v249_v50  ;;  %v1096_v3 = vpop.f32.mrf.mxu3  ;;  %v1124_v18 = vmul.f32 %v5077_v32, %v1123_v8  ;;  %vm1241_vm14 = vweird.f32 %v5102_v56 }
 0x21e   :  { %v1252_v46 = vadd.f32 %v1096_v3, %v532_v58  ;;  %v1224_v47 = vmul.f32 %v5081_v48, %v1223_v31 }
 0x21f   :  { %v3764_v42 = vpop.eup %3763  ;;  %v3565_v62 = vmul.f32 -1.442695, %v1152_v45  ;;  %v1125_v55 = vadd.f32 %v5077_v32, %v1124_v18 }
 0x220   :  { %v5118_v1 = vpop.eup %3765  ;;  %v5120_v20 = vadd.f32 1.0, %v3764_v42  ;;  %v3569_v25 = vmul.f32 -1.442695, %v1252_v46  ;;  %v1225_v21 = vadd.f32 %v5081_v48, %v1224_v47  ;;  %v1145_v46 = vand.u32 2147483647, %v5079_v36 }
 0x221   :  { %v3768_v50 = vpop.eup %3767  ;;  %3771 = vpow2.f32 %v3565_v62  ;;  %v1137_v58 = vmul.f32 %v5118_v1, %v5079_v36  ;;  %v1129_v45 = vsel %vm5135_vm8, %v5077_v32, %v1125_v55  ;;  %v1245_v42 = vand.u32 2147483647, %v5102_v56 }
 0x222   :  { %3773 = vrcp.f32 %v5120_v20  ;;  %v5131_v53 = vadd.f32 1.0, %v3768_v50  ;;  %v1229_v40 = vsel %vm5150_vm10, %v5081_v48, %v1225_v21  ;;  %v1134_v62 = vsel %vm5124_vm7, %v1133_v51, %v1129_v45 }
 0x223   :  { %v5143_v31 = vpop.eup %3769  ;;  %3775 = vpow2.f32 %v3569_v25  ;;  %v1138_v3 = vsub.f32 1.0, %v1137_v58  ;;  %v1247_v25 = vand.u32 2147483648, %v5102_v56  ;;  %v1234_v58 = vsel %vm5139_vm9, %v1233_v60, %v1229_v40 }
 0x224   :  { %3777 = vrcp.f32 %v5131_v53  ;;  %v1064_v18 = vpop.f32.mrf.mxu2  ;;  %v1237_v32 = vmul.f32 %v5143_v31, %v5102_v56  ;;  %vm1142_vm12 = vweird.f32 %v5118_v1  ;;  %vm5178_vm13 = vcmp.eq.f32.partialorder %v1145_v46, 8.507059e+37 }
 0x225   :  { %v1191_v34 = vadd.f32 %v1064_v18, %v4863_v43  ;;  %v1099_v47 = vpop.f32.mrf.mxu3  ;;  %v1139_v6 = vmul.f32 %v5118_v1, %v1138_v3  ;;  %v1148_v60 = vor.u32 1.1754944e-38, %v1147_v0  ;;  %vm1242_vm15 = vweird.f32 %v5143_v31  ;;  %vm5194_vm1 = vmor %vm1141_vm11, %vm1142_vm12 }
 0x226   :  { %v1291_v55 = vadd.f32 %v1099_v47, %v4764_v61  ;;  %v1238_v48 = vsub.f32 1.0, %v1237_v32  ;;  %vm5198_vm2 = vcmp.eq.f32.partialorder %v1245_v42, 8.507059e+37  ;;  %v1248_v47 = vor.u32 1.1754944e-38, %v1247_v25  ;;  %vm1243_vm3 = vmor %vm1241_vm14, %vm1242_vm15 }
 0x227   :  { %v3772_v21 = vpop.eup %3771  ;;  %v1193_v50 = vmul.f32 %v1191_v34, %v1134_v62  ;;  %v1140_v8 = vadd.f32 %v5118_v1, %v1139_v6  ;;  %v1170_v25 = vand.u32 2147483647, %v5120_v20  ;;  %vm1166_vm4 = vweird.f32 %v5120_v20 }
 0x228   :  { %v5174_v59 = vpop.eup %3773  ;;  %v5176_v3 = vadd.f32 1.0, %v3772_v21  ;;  %v1293_v37 = vmul.f32 %v1291_v55, %v1234_v58  ;;  %v1239_v45 = vmul.f32 %v5143_v31, %v1238_v48  ;;  %v1172_v58 = vand.u32 2147483648, %v5120_v20 }
 0x229   :  { %v3776_v18 = vpop.eup %3775  ;;  %v1162_v44 = vmul.f32 %v5174_v59, %v5120_v20  ;;  %v1195_v0 = vadd.f32 %v1193_v50, %v5087_v26  ;;  %v1144_v62 = vsel %vm5194_vm1, %v5118_v1, %v1140_v8  ;;  %vm1266_vm5 = vweird.f32 %v5131_v53  ;;  %v5347_v20 = vld [vmem:[%s7130_s4 + $0x18] sm:$0xff] }
 0x22a   :  { %v5187_v40 = vpop.eup %3777  ;;  %3779 = vrcp.f32 %v5176_v3  ;;  %v5190_v32 = vadd.f32 1.0, %v3776_v18  ;;  %v1240_v36 = vadd.f32 %v5143_v31, %v1239_v45  ;;  %v1295_v42 = vadd.f32 %v1293_v37, %v5100_v13 }
 0x22b   :  { %v1262_v6 = vmul.f32 %v5187_v40, %v5131_v53  ;;  %v1163_v55 = vsub.f32 1.0, %v1162_v44  ;;  %v1149_v8 = vsel %vm5178_vm13, %v1148_v60, %v1144_v62  ;;  %v1185_v45 = vand.u32 2147483647, %v5176_v3 }
 0x22c   :  { %3781 = vrcp.f32 %v5190_v32  ;;  %v1067_v48 = vpop.f32.mrf.mxu2  ;;  %v1244_v1 = vsel %vm1243_vm3, %v5143_v31, %v1240_v36  ;;  %vm5228_vm6 = vcmp.eq.f32.partialorder %v1170_v25, 8.507059e+37  ;;  %v1270_v34 = vand.u32 2147483647, %v5131_v53 }
 0x22d   :  { %v1263_v26 = vsub.f32 1.0, %v1262_v6  ;;  %v1192_v21 = vadd.f32 %v1067_v48, %v4773_v22  ;;  %v1102_v50 = vpop.f32.mrf.mxu3  ;;  %3783 = vtanh.f32 %v1195_v0  ;;  %v1249_v37 = vsel %vm5198_vm2, %v1248_v47, %v1244_v1 }
 0x22e   :  { %v1292_v13 = vadd.f32 %v1102_v50, %v4747_v30  ;;  %3785 = vtanh.f32 %v1295_v42  ;;  %v1164_v44 = vmul.f32 %v5174_v59, %v1163_v55  ;;  %v1173_v0 = vor.u32 1.1754944e-38, %v1172_v58 }
 0x22f   :  { %v1194_v56 = vmul.f32 %v1192_v21, %v1149_v8  ;;  %v1264_v60 = vmul.f32 %v5187_v40, %v1263_v26  ;;  %v1187_v36 = vand.u32 2147483648, %v5176_v3  ;;  %vm1167_vm7 = vweird.f32 %v5174_v59 }
 0x230   :  { %v3780_v18 = vpop.eup %3779  ;;  %v1294_v31 = vmul.f32 %v1292_v13, %v1249_v37  ;;  %v1165_v55 = vadd.f32 %v5174_v59, %v1164_v44  ;;  %vm1267_vm8 = vweird.f32 %v5187_v40  ;;  %vm1181_vm9 = vweird.f32 %v5176_v3  ;;  %vm5250_vm12 = vmor %vm1166_vm4, %vm1167_vm7 }
 0x231   :  { %v1177_v46 = vmul.f32 %v3780_v18, %v5176_v3  ;;  %v1196_v6 = vadd.f32 %v1194_v56, %v5093_v28  ;;  %vm5243_vm10 = vcmp.eq.f32.partialorder %v1185_v45, 8.507059e+37  ;;  %vm1182_vm11 = vweird.f32 %v3780_v18  ;;  %vm5264_vm13 = vmor %vm1266_vm5, %vm1267_vm8 }
 0x232   :  { %v3782_v47 = vpop.eup %3781  ;;  %v1296_v62 = vadd.f32 %v1294_v31, %v5105_v7  ;;  %v1265_v7 = vadd.f32 %v5187_v40, %v1264_v60  ;;  %v1272_v1 = vand.u32 2147483648, %v5131_v53  ;;  %v1188_v8 = vor.u32 1.1754944e-38, %v1187_v36  ;;  %vm1183_vm15 = vmor %vm1181_vm9, %vm1182_vm11 }
 0x233   :  { %v1178_v42 = vsub.f32 1.0, %v1177_v46  ;;  %v1277_v48 = vmul.f32 %v3782_v47, %v5190_v32  ;;  %3787 = vtanh.f32 %v1196_v6  ;;  %v3784_v25 = vpop.eup %3783  ;;  %v1285_v13 = vand.u32 2147483647, %v5190_v32 }
 0x234   :  { %3789 = vtanh.f32 %v1296_v62  ;;  %v3786_v58 = vpop.eup %3785  ;;  %v1287_v56 = vand.u32 2147483648, %v5190_v32  ;;  %v1169_v37 = vsel %vm5250_vm12, %v5174_v59, %v1165_v55  ;;  %vm1282_vm14 = vweird.f32 %v3782_v47 }
 0x235   :  { %v1278_v26 = vsub.f32 1.0, %v1277_v48  ;;  %v1179_v21 = vmul.f32 %v3780_v18, %v1178_v42  ;;  %v1269_v44 = vsel %vm5264_vm13, %v5187_v40, %v1265_v7  ;;  %vm1281_vm1 = vweird.f32 %v5190_v32 }
 0x236   :  { %v1199_v59 = vsub.f32 %v5017_v54, %v3784_v25  ;;  %vm1271_vm2 = vcmp.eq.f32.partialorder %v1270_v34, 8.507059e+37  ;;  %v1273_v53 = vor.u32 1.1754944e-38, %v1272_v1  ;;  %v1174_v62 = vsel %vm5228_vm6, %v1173_v0, %v1169_v37  ;;  %vm1283_vm3 = vmor %vm1281_vm1, %vm1282_vm14  ;;  %v5340_v37 = vld [vmem:[%s7129_s3 + $0x18] sm:$0xff] }
 0x237   :  { %v1180_v45 = vadd.f32 %v3780_v18, %v1179_v21  ;;  %v1279_v31 = vmul.f32 %v3782_v47, %v1278_v26  ;;  %v1299_v36 = vsub.f32 %v5020_v52, %v3786_v58  ;;  %v1288_v32 = vor.u32 1.1754944e-38, %v1287_v56  ;;  %v5333_v56 = vld [vmem:[%s7130_s4 + $0x10] sm:$0xff] }
 0x238   :  { %v1274_v42 = vsel %vm1271_vm2, %v1273_v53, %v1269_v44  ;;  %vm1286_vm4 = vcmp.eq.f32.partialorder %v1285_v13, 8.507059e+37  ;;  %v1201_v51 = vmul.f32 %v1199_v59, %v1174_v62  ;;  %v5326_v13 = vld [vmem:[%s7129_s3 + $0x10] sm:$0xff]  ;;  %v5368_v44 = vld [vmem:[%s7129_s3 + $0x28] sm:$0xff]  ;;  %v7312_v53 = vld [vmem:[#allocation47_spill] sm:$0xff] }
 0x239   :  { %v3788_v60 = vpop.eup %3787  ;;  %v1184_v46 = vsel %vm1183_vm15, %v3780_v18, %v1180_v45  ;;  %v1280_v6 = vadd.f32 %v3782_v47, %v1279_v31  ;;  %v1301_v26 = vmul.f32 %v1299_v36, %v1274_v42  ;;  %v5354_v45 = vld [vmem:[%s7129_s3 + $0x20] sm:$0xff]  ;;  %v5375_v59 = vld [vmem:[%s7130_s4 + $0x28] sm:$0xff]  ;;  %v7314_v42 = vld [vmem:[#allocation51_spill] sm:$0xff] }
 0x23a   :  { %v3790_v55 = vpop.eup %3789  ;;  %v1189_v40 = vsel %vm5243_vm10, %v1188_v8, %v1184_v46  ;;  %v1200_v3 = vsub.f32 %v5012_v16, %v3788_v60  ;;  %v5288_v28 = vadd.f32 %v3784_v25, %v1201_v51  ;;  %v5305_v25 = vld [vmem:[%s7130_s4] sm:$0xff]  ;;  %v5319_v8 = vld [vmem:[%s7130_s4 + $0x8] sm:$0xff]  ;;  %v7313_v46 = vld [vmem:[#allocation46_spill] sm:$0xff] }
 0x23b   :  { %v1284_v34 = vsel %vm1283_vm3, %v3782_v47, %v1280_v6  ;;  %v1300_v18 = vsub.f32 %v5014_v17, %v3790_v55  ;;  %v5291_v1 = vadd.f32 %v3786_v58, %v1301_v26  ;;  %v5298_v47 = vld [vmem:[%s7129_s3] sm:$0xff]  ;;  %v5312_v58 = vld [vmem:[%s7129_s3 + $0x8] sm:$0xff]  ;;  %v470_v6 = vadd.f32 %v7313_v46, %v4735_v4 }
 0x23c   :  { %v1202_v48 = vmul.f32 %v1200_v3, %v1189_v40  ;;  %v1289_v7 = vsel %vm1286_vm4, %v1288_v32, %v1284_v34  ;;  %7310 = vst [vmem:[#allocation85_spill] sm:$0xff] %v5288_v28  ;;  %v5361_v31 = vld [vmem:[%s7130_s4 + $0x20] sm:$0xff]  ;;  %v296_v34 = vadd.f32 %v7314_v42, %v4737_v27  ;;  %v7323_v16 = vld [vmem:[#allocation61_spill] sm:$0xff] }
 0x23d   :  { %v1302_v0 = vmul.f32 %v1300_v18, %v1289_v7  ;;  %7311 = vst [vmem:[#allocation86_spill] sm:$0xff] %v5291_v1  ;;  %v7315_v18 = vld [vmem:[#allocation50_spill] sm:$0xff] }
 0x23e   :  { %v5283_v21 = vadd.f32 %v3788_v60, %v1202_v48  ;;  %v293_v60 = vadd.f32 %v7312_v53, %v4753_v33  ;;  %v473_v48 = vadd.f32 %v7315_v18, %v4725_v24 }
 0x23f   :  { %v5285_v50 = vadd.f32 %v3790_v55, %v1302_v0 }
 0x240   :  { %7308 = vst [vmem:[#allocation66_spill] sm:$0xff] %v5283_v21  ;;  %1323 = vmatpush.msrb.mxu0 %v5283_v21 }
 0x241   :  { %7309 = vst [vmem:[#allocation63_spill] sm:$0xff] %v5285_v50  ;;  %1358 = vmatpush.msrb.mxu1 %v5285_v50 }
 0x242   :  { %1324 = vmatpush.msrb.mxu0 %v5288_v28 }
 0x243   :  { %1359 = vmatpush.msrb.mxu1 %v5291_v1  ;;  %3570 = vmatmul.msk.f32.vlgmr.msrb.gmra.mxu0 %vm132_vm0, %v5298_v47 }
 0x244   :  { %3576 = vmatmul.msk.f32.vlgmr.msrb.gmra.mxu1 %vm132_vm0, %v5305_v25 }
 0x24b   :  { %3571 = vmatmul.msk.f32.gmra.mxu0 %vm132_vm0, %v5312_v58 }
 0x24c   :  { %3577 = vmatmul.msk.f32.gmra.mxu1 %vm132_vm0, %v5319_v8 }
 0x253   :  { %3572 = vmatmul.msk.f32.gmra.mxu0 %vm132_vm0, %v5326_v13 }
 0x254   :  { %3578 = vmatmul.msk.f32.gmra.mxu1 %vm132_vm0, %v5333_v56 }
 0x25b   :  { %3573 = vmatmul.msk.f32.gmra.mxu0 %vm132_vm0, %v5340_v37 }
 0x25c   :  { %3579 = vmatmul.msk.f32.gmra.mxu1 %vm132_vm0, %v5347_v20 }
 0x263   :  { %3574 = vmatmul.msk.f32.gmra.mxu0 %vm132_vm0, %v5354_v45 }
 0x264   :  { %3580 = vmatmul.msk.f32.gmra.mxu1 %vm132_vm0, %v5361_v31 }
 0x26b   :  { %3575 = vmatmul.msk.f32.gmra.mxu0 %vm132_vm0, %v5368_v44 }
 0x26c   :  { %3581 = vmatmul.msk.f32.gmra.mxu1 %vm132_vm0, %v5375_v59 }
 0x2c0   :  { %v1326_v62 = vpop.f32.mrf.mxu0 }
 0x2c1   :  { %v1385_v36 = vadd.f32 %v1326_v62, %v293_v60  ;;  %v1361_v55 = vpop.f32.mrf.mxu1 }
 0x2c2   :  { %v1485_v40 = vadd.f32 %v1361_v55, %v470_v6 }
 0x2c3   :  { %v3582_v3 = vmul.f32 -1.442695, %v1385_v36  ;;  %v7316_v36 = vld [vmem:[#allocation54_spill] sm:$0xff] }
 0x2c4   :  { %v3586_v32 = vmul.f32 -1.442695, %v1485_v40  ;;  %v299_v55 = vadd.f32 %v7316_v36, %v4780_v63  ;;  %v7317_v40 = vld [vmem:[#allocation53_spill] sm:$0xff] }
 0x2c5   :  { %3791 = vpow2.f32 %v3582_v3  ;;  %v476_v3 = vadd.f32 %v7317_v40, %v4745_v35 }
 0x2c6   :  { %3793 = vpow2.f32 %v3586_v32 }
 0x2c8   :  { %v1329_v7 = vpop.f32.mrf.mxu0 }
 0x2c9   :  { %v1386_v51 = vadd.f32 %v1329_v7, %v296_v34  ;;  %v1364_v0 = vpop.f32.mrf.mxu1 }
 0x2ca   :  { %v1486_v26 = vadd.f32 %v1364_v0, %v473_v48 }
 0x2cb   :  { %v3792_v53 = vpop.eup %3791  ;;  %v3583_v46 = vmul.f32 -1.442695, %v1386_v51 }
 0x2cc   :  { %v3794_v54 = vpop.eup %3793  ;;  %v5387_v60 = vadd.f32 1.0, %v3792_v53  ;;  %v3587_v6 = vmul.f32 -1.442695, %v1486_v26  ;;  %v7318_v53 = vld [vmem:[#allocation59_spill] sm:$0xff] }
 0x2cd   :  { %v5389_v62 = vadd.f32 1.0, %v3794_v54  ;;  %3795 = vpow2.f32 %v3583_v46  ;;  %v302_v46 = vadd.f32 %v7318_v53, %v4762_v11  ;;  %v7322_v53 = vld [vmem:[#allocation58_spill] sm:$0xff] }
 0x2ce   :  { %3797 = vrcp.f32 %v5387_v60  ;;  %vm1400_vm5 = vweird.f32 %v5387_v60 }
 0x2cf   :  { %3799 = vrcp.f32 %v5389_v62  ;;  %vm1500_vm9 = vweird.f32 %v5389_v62 }
 0x2d0   :  { %3801 = vpow2.f32 %v3587_v6  ;;  %v1332_v32 = vpop.f32.mrf.mxu0 }
 0x2d1   :  { %v1425_v42 = vadd.f32 %v1332_v32, %v299_v55  ;;  %v1367_v34 = vpop.f32.mrf.mxu1  ;;  %v7319_v55 = vld [vmem:[#allocation62_spill] sm:$0xff] }
 0x2d2   :  { %v1525_v18 = vadd.f32 %v1367_v34, %v476_v3  ;;  %v5409_v40 = vadd.f32 %v7319_v55, %v4794_v49  ;;  %v7320_v3 = vld [vmem:[#allocation65_spill] sm:$0xff]  ;;  %v7321_v34 = vld [vmem:[#allocation56_spill] sm:$0xff]  ;;  %v5424_v55 = vadd.f32 %v7322_v53, %v7284_v57  ;;  %v1406_v53 = vand.u32 2147483648, %v5387_v60 }
 0x2d3   :  { %v3796_v48 = vpop.eup %3795  ;;  %v3584_v7 = vmul.f32 -1.442695, %v1425_v42  ;;  %v5413_v32 = vadd.f32 %v7320_v3, %v4788_v39  ;;  %v5428_v3 = vadd.f32 %v7323_v16, %v7285_v38  ;;  %v1504_v16 = vand.u32 2147483647, %v5389_v62 }
 0x2d4   :  { %v5397_v54 = vpop.eup %3797  ;;  %v5399_v51 = vadd.f32 1.0, %v3796_v48  ;;  %v3588_v0 = vmul.f32 -1.442695, %v1525_v18  ;;  %v479_v18 = vadd.f32 %v7321_v34, %v4733_v41 }
 0x2d5   :  { %v5401_v26 = vpop.eup %3799  ;;  %3803 = vpow2.f32 %v3584_v7  ;;  %v1396_v6 = vmul.f32 %v5397_v54, %v5387_v60  ;;  %vm1401_vm6 = vweird.f32 %v5397_v54  ;;  %vm5462_vm11 = vcmp.eq.f32.partialorder %v1504_v16, 8.507059e+37 }
 0x2d6   :  { %v3802_v36 = vpop.eup %3801  ;;  %3805 = vrcp.f32 %v5399_v51  ;;  %v1496_v42 = vmul.f32 %v5401_v26, %v5389_v62  ;;  %vm1501_vm7 = vweird.f32 %v5401_v26  ;;  %vm5458_vm10 = vmor %vm1400_vm5, %vm1401_vm6  ;;  %vm1415_vm13 = vweird.f32 %v5399_v51 }
 0x2d7   :  { %v5420_v48 = vadd.f32 1.0, %v3802_v36  ;;  %3807 = vpow2.f32 %v3588_v0  ;;  %v1397_v7 = vsub.f32 1.0, %v1396_v6  ;;  %v1404_v0 = vand.u32 2147483647, %v5387_v60  ;;  %vm5471_vm12 = vmor %vm1500_vm9, %vm1501_vm7 }
 0x2d8   :  { %v1335_v52 = vpop.f32.mrf.mxu0  ;;  %v1497_v17 = vsub.f32 1.0, %v1496_v42 }
 0x2d9   :  { %3809 = vrcp.f32 %v5420_v48  ;;  %v1426_v19 = vadd.f32 %v1335_v52, %v302_v46  ;;  %v1370_v34 = vpop.f32.mrf.mxu1  ;;  %v1398_v36 = vmul.f32 %v5397_v54, %v1397_v7  ;;  %v1506_v52 = vand.u32 2147483648, %v5389_v62 }
 0x2da   :  { %v1526_v6 = vadd.f32 %v1370_v34, %v479_v18  ;;  %v1498_v15 = vmul.f32 %v5401_v26, %v1497_v17  ;;  %vm5446_vm8 = vcmp.eq.f32.partialorder %v1404_v0, 8.507059e+37  ;;  %vm1515_vm1 = vweird.f32 %v5420_v48 }
 0x2db   :  { %v3804_v14 = vpop.eup %3803  ;;  %v3585_v10 = vmul.f32 -1.442695, %v1426_v19  ;;  %v1399_v9 = vadd.f32 %v5397_v54, %v1398_v36  ;;  %v1507_v60 = vor.u32 1.1754944e-38, %v1506_v52  ;;  %v1419_v52 = vand.u32 2147483647, %v5399_v51 }
 0x2dc   :  { %v5440_v46 = vpop.eup %3805  ;;  %v5442_v42 = vadd.f32 1.0, %v3804_v14  ;;  %v3589_v7 = vmul.f32 -1.442695, %v1526_v6  ;;  %v1499_v18 = vadd.f32 %v5401_v26, %v1498_v15 }
 0x2dd   :  { %v3808_v17 = vpop.eup %3807  ;;  %3811 = vpow2.f32 %v3585_v10  ;;  %v1411_v19 = vmul.f32 %v5440_v46, %v5399_v51  ;;  %v1407_v10 = vor.u32 1.1754944e-38, %v1406_v53  ;;  %v1403_v62 = vsel %vm5458_vm10, %v5397_v54, %v1399_v9 }
 0x2de   :  { %3813 = vrcp.f32 %v5442_v42  ;;  %v5454_v14 = vadd.f32 1.0, %v3808_v17  ;;  %v1503_v16 = vsel %vm5471_vm12, %v5401_v26, %v1499_v18  ;;  %v1519_v18 = vand.u32 2147483647, %v5420_v48 }
 0x2df   :  { %v5466_v0 = vpop.eup %3809  ;;  %3815 = vpow2.f32 %v3589_v7  ;;  %v1412_v17 = vsub.f32 1.0, %v1411_v19  ;;  %v1421_v19 = vand.u32 2147483648, %v5399_v51  ;;  %v1408_v2 = vsel %vm5446_vm8, %v1407_v10, %v1403_v62 }
 0x2e0   :  { %3817 = vrcp.f32 %v5454_v14  ;;  %v1338_v53 = vpop.f32.mrf.mxu0  ;;  %v1511_v7 = vmul.f32 %v5466_v0, %v5420_v48  ;;  %vm1416_vm14 = vweird.f32 %v5440_v46  ;;  %v1521_v62 = vand.u32 2147483648, %v5420_v48 }
 0x2e1   :  { %v1465_v9 = vadd.f32 %v1338_v53, %v4863_v43  ;;  %v1373_v54 = vpop.f32.mrf.mxu1  ;;  %v1413_v15 = vmul.f32 %v5440_v46, %v1412_v17  ;;  %v1508_v53 = vsel %vm5462_vm11, %v1507_v60, %v1503_v16  ;;  %vm5502_vm15 = vcmp.eq.f32.partialorder %v1419_v52, 8.507059e+37  ;;  %vm5514_vm2 = vmor %vm1415_vm13, %vm1416_vm14 }
 0x2e2   :  { %v1565_v6 = vadd.f32 %v1373_v54, %v4764_v61  ;;  %v1512_v26 = vsub.f32 1.0, %v1511_v7  ;;  %v1422_v60 = vor.u32 1.1754944e-38, %v1421_v19  ;;  %vm1516_vm3 = vweird.f32 %v5466_v0 }
 0x2e3   :  { %v3812_v5 = vpop.eup %3811  ;;  %v1467_v29 = vmul.f32 %v1465_v9, %v1408_v2  ;;  %v1414_v12 = vadd.f32 %v5440_v46, %v1413_v15  ;;  %vm5519_vm4 = vcmp.eq.f32.partialorder %v1519_v18, 8.507059e+37  ;;  %vm1440_vm5 = vweird.f32 %v5442_v42  ;;  %vm1517_vm7 = vmor %vm1515_vm1, %vm1516_vm3 }
 0x2e4   :  { %v5494_v17 = vpop.eup %3813  ;;  %v5496_v23 = vadd.f32 1.0, %v3812_v5  ;;  %v1567_v34 = vmul.f32 %v1565_v6, %v1508_v53  ;;  %v1513_v10 = vmul.f32 %v5466_v0, %v1512_v26  ;;  %v1522_v53 = vor.u32 1.1754944e-38, %v1521_v62 }
 0x2e5   :  { %v3816_v7 = vpop.eup %3815  ;;  %v1436_v2 = vmul.f32 %v5494_v17, %v5442_v42  ;;  %v1469_v19 = vadd.f32 %v1467_v29, %v5409_v40  ;;  %v1418_v51 = vsel %vm5514_vm2, %v5440_v46, %v1414_v12  ;;  %vm1540_vm6 = vweird.f32 %v5454_v14 }
 0x2e6   :  { %v5507_v16 = vpop.eup %3817  ;;  %3819 = vrcp.f32 %v5496_v23  ;;  %v5510_v5 = vadd.f32 1.0, %v3816_v7  ;;  %v1569_v6 = vadd.f32 %v1567_v34, %v5424_v55  ;;  %v1514_v18 = vadd.f32 %v5466_v0, %v1513_v10 }
 0x2e7   :  { %v1437_v15 = vsub.f32 1.0, %v1436_v2  ;;  %v1536_v52 = vmul.f32 %v5507_v16, %v5454_v14  ;;  %v1444_v12 = vand.u32 2147483647, %v5442_v42  ;;  %v1423_v40 = vsel %vm5502_vm15, %v1422_v60, %v1418_v51 }
 0x2e8   :  { %3821 = vrcp.f32 %v5510_v5  ;;  %v1341_v26 = vpop.f32.mrf.mxu0  ;;  %v1518_v55 = vsel %vm1517_vm7, %v5466_v0, %v1514_v18  ;;  %v1446_v34 = vand.u32 2147483648, %v5442_v42  ;;  %v1544_v9 = vand.u32 2147483647, %v5454_v14 }
 0x2e9   :  { %v1438_v7 = vmul.f32 %v5494_v17, %v1437_v15  ;;  %v1537_v2 = vsub.f32 1.0, %v1536_v52  ;;  %v1466_v61 = vadd.f32 %v1341_v26, %v4773_v22  ;;  %v1376_v29 = vpop.f32.mrf.mxu1  ;;  %3823 = vtanh.f32 %v1469_v19 }
 0x2ea   :  { %v1566_v46 = vadd.f32 %v1376_v29, %v4747_v30  ;;  %v1523_v62 = vsel %vm5519_vm4, %v1522_v53, %v1518_v55  ;;  %3825 = vtanh.f32 %v1569_v6  ;;  %v1546_v36 = vand.u32 2147483648, %v5454_v14 }
 0x2eb   :  { %v1468_v10 = vmul.f32 %v1466_v61, %v1423_v40  ;;  %v1538_v15 = vmul.f32 %v5507_v16, %v1537_v2  ;;  %v1439_v51 = vadd.f32 %v5494_v17, %v1438_v7  ;;  %vm1441_vm8 = vweird.f32 %v5494_v17 }
 0x2ec   :  { %v3820_v48 = vpop.eup %3819  ;;  %v1568_v52 = vmul.f32 %v1566_v46, %v1523_v62  ;;  %vm1455_vm9 = vweird.f32 %v5496_v23  ;;  %v1459_v19 = vand.u32 2147483647, %v5496_v23  ;;  %vm5558_vm10 = vcmp.eq.f32.partialorder %v1444_v12, 8.507059e+37  ;;  %vm5567_vm13 = vmor %vm1440_vm5, %vm1441_vm8 }
 0x2ed   :  { %v1451_v0 = vmul.f32 %v3820_v48, %v5496_v23  ;;  %v1470_v60 = vadd.f32 %v1468_v10, %v5413_v32  ;;  %vm1555_vm11 = vweird.f32 %v5510_v5  ;;  %vm1456_vm12 = vweird.f32 %v3820_v48 }
 0x2ee   :  { %v3822_v61 = vpop.eup %3821  ;;  %v1570_v54 = vadd.f32 %v1568_v52, %v5428_v3  ;;  %v1461_v32 = vand.u32 2147483648, %v5496_v23  ;;  %v1539_v53 = vadd.f32 %v5507_v16, %v1538_v15  ;;  %v1443_v12 = vsel %vm5567_vm13, %v5494_v17, %v1439_v51  ;;  %vm1457_vm3 = vmor %vm1455_vm9, %vm1456_vm12 }
 0x2ef   :  { %v1452_v26 = vsub.f32 1.0, %v1451_v0  ;;  %v1551_v18 = vmul.f32 %v3822_v61, %v5510_v5  ;;  %3827 = vtanh.f32 %v1470_v60  ;;  %v3824_v7 = vpop.eup %3823  ;;  %vm1541_vm14 = vweird.f32 %v5507_v16 }
 0x2f0   :  { %3829 = vtanh.f32 %v1570_v54  ;;  %v3826_v40 = vpop.eup %3825  ;;  %vm5576_vm15 = vcmp.eq.f32.partialorder %v1459_v19, 8.507059e+37  ;;  %v1559_v42 = vand.u32 2147483647, %v5510_v5  ;;  %v1561_v46 = vand.u32 2147483648, %v5510_v5  ;;  %vm5584_vm1 = vmor %vm1540_vm6, %vm1541_vm14 }
 0x2f1   :  { %v1453_v2 = vmul.f32 %v3820_v48, %v1452_v26  ;;  %v1552_v29 = vsub.f32 1.0, %v1551_v18  ;;  %v1447_v10 = vor.u32 1.1754944e-38, %v1446_v34  ;;  %vm1556_vm2 = vweird.f32 %v3822_v61 }
 0x2f2   :  { %v1543_v52 = vsel %vm5584_vm1, %v5507_v16, %v1539_v53  ;;  %v1462_v0 = vor.u32 1.1754944e-38, %v1461_v32  ;;  %v1473_v14 = vsub.f32 %v5288_v28, %v3824_v7  ;;  %v1547_v60 = vor.u32 1.1754944e-38, %v1546_v36  ;;  %vm1557_vm5 = vmor %vm1555_vm11, %vm1556_vm2 }
 0x2f3   :  { %v1553_v15 = vmul.f32 %v3822_v61, %v1552_v29  ;;  %v1454_v17 = vadd.f32 %v3820_v48, %v1453_v2  ;;  %v1448_v34 = vsel %vm5558_vm10, %v1447_v10, %v1443_v12  ;;  %vm1545_vm4 = vcmp.eq.f32.partialorder %v1544_v9, 8.507059e+37 }
 0x2f4   :  { %v1573_v26 = vsub.f32 %v5291_v1, %v3826_v40  ;;  %v1562_v6 = vor.u32 1.1754944e-38, %v1561_v46  ;;  %v1548_v32 = vsel %vm1545_vm4, %v1547_v60, %v1543_v52  ;;  %vm1560_vm6 = vcmp.eq.f32.partialorder %v1559_v42, 8.507059e+37  ;;  %v7353_v60 = vld [vmem:[#allocation49_spill] sm:$0xff] }
 0x2f5   :  { %v3828_v51 = vpop.eup %3827  ;;  %v1458_v54 = vsel %vm1457_vm3, %v3820_v48, %v1454_v17  ;;  %v1554_v19 = vadd.f32 %v3822_v61, %v1553_v15  ;;  %v1475_v53 = vmul.f32 %v1473_v14, %v1448_v34  ;;  %v7352_v34 = vld [vmem:[#allocation5_spill] sm:$0xff] }
 0x2f6   :  { %v3830_v18 = vpop.eup %3829  ;;  %v1463_v16 = vsel %vm5576_vm15, %v1462_v0, %v1458_v54  ;;  %v1474_v23 = vsub.f32 %v5283_v21, %v3828_v51  ;;  %v1575_v29 = vmul.f32 %v1573_v26, %v1548_v32  ;;  %v349_v14 = vadd.f32 %v7352_v34, %v4737_v27 }
 0x2f7   :  { %v1558_v3 = vsel %vm1557_vm5, %v3822_v61, %v1554_v19  ;;  %v1574_v48 = vsub.f32 %v5285_v50, %v3830_v18  ;;  %v5610_v10 = vadd.f32 %v3824_v7, %v1475_v53  ;;  %v7350_v61 = vld [vmem:[#allocation4_spill] sm:$0xff] }
 0x2f8   :  { %v1476_v36 = vmul.f32 %v1474_v23, %v1463_v16  ;;  %v1563_v9 = vsel %vm1560_vm6, %v1562_v6, %v1558_v3  ;;  %v5613_v5 = vadd.f32 %v3826_v40, %v1575_v29  ;;  %v346_v7 = vadd.f32 %v7350_v61, %v4753_v33  ;;  %v7351_v40 = vld [vmem:[#allocation45_spill] sm:$0xff]  ;;  %v7355_v53 = vld [vmem:[#allocation52_spill] sm:$0xff] }
 0x2f9   :  { %v1576_v2 = vmul.f32 %v1574_v48, %v1563_v9  ;;  %7348 = vst [vmem:[#allocation51_spill] sm:$0xff] %v5610_v10  ;;  %v417_v42 = vadd.f32 %v7351_v40, %v4735_v4 }
 0x2fa   :  { %v5605_v12 = vadd.f32 %v3828_v51, %v1476_v36  ;;  %7349 = vst [vmem:[#allocation50_spill] sm:$0xff] %v5613_v5  ;;  %v420_v51 = vadd.f32 %v7353_v60, %v4725_v24  ;;  %v7354_v36 = vld [vmem:[#allocation6_spill] sm:$0xff] }
 0x2fb   :  { %v5607_v55 = vadd.f32 %v3830_v18, %v1576_v2  ;;  %v352_v9 = vadd.f32 %v7354_v36, %v4780_v63  ;;  %v423_v2 = vadd.f32 %v7355_v53, %v4745_v35  ;;  %v7360_v36 = vld [vmem:[#allocation57_spill] sm:$0xff]  ;;  %v7361_v53 = vld [vmem:[#allocation60_spill] sm:$0xff] }
 0x2fc   :  { %7346 = vst [vmem:[#allocation47_spill] sm:$0xff] %v5605_v12  ;;  %1597 = vmatpush.msrb.mxu2 %v5605_v12 }
 0x2fd   :  { %7347 = vst [vmem:[#allocation46_spill] sm:$0xff] %v5607_v55  ;;  %1632 = vmatpush.msrb.mxu3 %v5607_v55 }
 0x2fe   :  { %1598 = vmatpush.msrb.mxu2 %v5610_v10 }
 0x2ff   :  { %1633 = vmatpush.msrb.mxu3 %v5613_v5  ;;  %3590 = vmatmul.msk.f32.vlgmr.msrb.gmra.mxu2 %vm132_vm0, %v5298_v47 }
 0x300   :  { %3596 = vmatmul.msk.f32.vlgmr.msrb.gmra.mxu3 %vm132_vm0, %v5305_v25 }
 0x307   :  { %3591 = vmatmul.msk.f32.gmra.mxu2 %vm132_vm0, %v5312_v58 }
 0x308   :  { %3597 = vmatmul.msk.f32.gmra.mxu3 %vm132_vm0, %v5319_v8 }
 0x30f   :  { %3592 = vmatmul.msk.f32.gmra.mxu2 %vm132_vm0, %v5326_v13 }
 0x310   :  { %3598 = vmatmul.msk.f32.gmra.mxu3 %vm132_vm0, %v5333_v56 }
 0x317   :  { %3593 = vmatmul.msk.f32.gmra.mxu2 %vm132_vm0, %v5340_v37 }
 0x318   :  { %3599 = vmatmul.msk.f32.gmra.mxu3 %vm132_vm0, %v5347_v20 }
 0x31f   :  { %3594 = vmatmul.msk.f32.gmra.mxu2 %vm132_vm0, %v5354_v45 }
 0x320   :  { %3600 = vmatmul.msk.f32.gmra.mxu3 %vm132_vm0, %v5361_v31 }
 0x327   :  { %3595 = vmatmul.msk.f32.gmra.mxu2 %vm132_vm0, %v5368_v44 }
 0x328   :  { %3601 = vmatmul.msk.f32.gmra.mxu3 %vm132_vm0, %v5375_v59 }
 0x382   :  { %v1600_v46 = vpop.f32.mrf.mxu2 }
 0x383   :  { %v1659_v62 = vadd.f32 %v1600_v46, %v346_v7  ;;  %v1635_v15 = vpop.f32.mrf.mxu3 }
 0x384   :  { %v1759_v17 = vadd.f32 %v1635_v15, %v417_v42 }
 0x385   :  { %v3602_v52 = vmul.f32 -1.442695, %v1659_v62 }
 0x386   :  { %v3606_v0 = vmul.f32 -1.442695, %v1759_v17 }
 0x387   :  { %3831 = vpow2.f32 %v3602_v52 }
 0x388   :  { %3833 = vpow2.f32 %v3606_v0  ;;  %v7356_v0 = vld [vmem:[#allocation7_spill] sm:$0xff] }
 0x389   :  { %v355_v34 = vadd.f32 %v7356_v0, %v4762_v11 }
 0x38a   :  { %v1603_v54 = vpop.f32.mrf.mxu2 }
 0x38b   :  { %v1660_v19 = vadd.f32 %v1603_v54, %v349_v14  ;;  %v1638_v26 = vpop.f32.mrf.mxu3 }
 0x38c   :  { %v1760_v18 = vadd.f32 %v1638_v26, %v420_v51  ;;  %v7357_v51 = vld [vmem:[#allocation8_spill] sm:$0xff] }
 0x38d   :  { %v3832_v16 = vpop.eup %3831  ;;  %v3603_v23 = vmul.f32 -1.442695, %v1660_v19  ;;  %v5671_v54 = vadd.f32 %v7357_v51, %v4794_v49  ;;  %v7358_v19 = vld [vmem:[#allocation11_spill] sm:$0xff] }
 0x38e   :  { %v3834_v6 = vpop.eup %3833  ;;  %v5649_v32 = vadd.f32 1.0, %v3832_v16  ;;  %v3607_v3 = vmul.f32 -1.442695, %v1760_v18  ;;  %v5675_v26 = vadd.f32 %v7358_v19, %v4788_v39  ;;  %v7359_v16 = vld [vmem:[#allocation55_spill] sm:$0xff] }
 0x38f   :  { %v5651_v48 = vadd.f32 1.0, %v3834_v6  ;;  %3835 = vpow2.f32 %v3603_v23  ;;  %v426_v23 = vadd.f32 %v7359_v16, %v4733_v41 }
 0x390   :  { %3837 = vrcp.f32 %v5649_v32  ;;  %vm1674_vm7 = vweird.f32 %v5649_v32  ;;  %v1680_v0 = vand.u32 2147483648, %v5649_v32 }
 0x391   :  { %3839 = vrcp.f32 %v5651_v48  ;;  %vm1774_vm11 = vweird.f32 %v5651_v48 }
 0x392   :  { %3841 = vpow2.f32 %v3607_v3  ;;  %v1606_v29 = vpop.f32.mrf.mxu2 }
 0x393   :  { %v1699_v61 = vadd.f32 %v1606_v29, %v352_v9  ;;  %v1641_v7 = vpop.f32.mrf.mxu3  ;;  %v5686_v9 = vadd.f32 %v7360_v36, %v7284_v57 }
 0x394   :  { %v1799_v40 = vadd.f32 %v1641_v7, %v423_v2  ;;  %v5690_v2 = vadd.f32 %v7361_v53, %v7285_v38 }
 0x395   :  { %v3836_v42 = vpop.eup %3835  ;;  %v3604_v46 = vmul.f32 -1.442695, %v1699_v61 }
 0x396   :  { %v5659_v62 = vpop.eup %3837  ;;  %v5661_v15 = vadd.f32 1.0, %v3836_v42  ;;  %v3608_v17 = vmul.f32 -1.442695, %v1799_v40 }
 0x397   :  { %v5663_v52 = vpop.eup %3839  ;;  %3843 = vpow2.f32 %v3604_v46  ;;  %v1670_v14 = vmul.f32 %v5659_v62, %v5649_v32  ;;  %v1678_v46 = vand.u32 2147483647, %v5649_v32  ;;  %vm1675_vm8 = vweird.f32 %v5659_v62 }
 0x398   :  { %v3842_v60 = vpop.eup %3841  ;;  %3845 = vrcp.f32 %v5661_v15  ;;  %v1770_v18 = vmul.f32 %v5663_v52, %v5651_v48  ;;  %vm1775_vm9 = vweird.f32 %v5663_v52  ;;  %vm5720_vm12 = vmor %vm1674_vm7, %vm1675_vm8  ;;  %vm1689_vm15 = vweird.f32 %v5661_v15 }
 0x399   :  { %v5682_v6 = vadd.f32 1.0, %v3842_v60  ;;  %3847 = vpow2.f32 %v3608_v17  ;;  %v1671_v3 = vsub.f32 1.0, %v1670_v14  ;;  %v1778_v60 = vand.u32 2147483647, %v5651_v48  ;;  %vm5733_vm14 = vmor %vm1774_vm11, %vm1775_vm9 }
 0x39a   :  { %v1609_v29 = vpop.f32.mrf.mxu2  ;;  %v1771_v61 = vsub.f32 1.0, %v1770_v18  ;;  %vm5708_vm10 = vcmp.eq.f32.partialorder %v1678_v46, 8.507059e+37 }
 0x39b   :  { %3849 = vrcp.f32 %v5682_v6  ;;  %v1700_v7 = vadd.f32 %v1609_v29, %v355_v34  ;;  %v1644_v40 = vpop.f32.mrf.mxu3  ;;  %v1672_v42 = vmul.f32 %v5659_v62, %v1671_v3  ;;  %v1780_v34 = vand.u32 2147483648, %v5651_v48 }
 0x39c   :  { %v1800_v17 = vadd.f32 %v1644_v40, %v426_v23  ;;  %v1772_v14 = vmul.f32 %v5663_v52, %v1771_v61  ;;  %vm5724_vm13 = vcmp.eq.f32.partialorder %v1778_v60, 8.507059e+37  ;;  %v7370_v40 = vld [vmem:[#allocation64_spill] sm:$0xff]  ;;  %vm1789_vm3 = vweird.f32 %v5682_v6 }
 0x39d   :  { %v3844_v51 = vpop.eup %3843  ;;  %v3605_v19 = vmul.f32 -1.442695, %v1700_v7  ;;  %v1673_v16 = vadd.f32 %v5659_v62, %v1672_v42  ;;  %v1681_v42 = vor.u32 1.1754944e-38, %v1680_v0  ;;  %v1781_v32 = vor.u32 1.1754944e-38, %v1780_v34 }
 0x39e   :  { %v5702_v18 = vpop.eup %3845  ;;  %v5704_v3 = vadd.f32 1.0, %v3844_v51  ;;  %v3609_v36 = vmul.f32 -1.442695, %v1800_v17  ;;  %v1773_v23 = vadd.f32 %v5663_v52, %v1772_v14  ;;  %v1693_v34 = vand.u32 2147483647, %v5661_v15 }
 0x39f   :  { %v3848_v53 = vpop.eup %3847  ;;  %3851 = vpow2.f32 %v3605_v19  ;;  %v1685_v61 = vmul.f32 %v5702_v18, %v5661_v15  ;;  %v1677_v48 = vsel %vm5720_vm12, %v5659_v62, %v1673_v16  ;;  %vm1690_vm1 = vweird.f32 %v5702_v18 }
 0x3a0   :  { %3853 = vrcp.f32 %v5704_v3  ;;  %v5716_v7 = vadd.f32 1.0, %v3848_v53  ;;  %v1777_v60 = vsel %vm5733_vm14, %v5663_v52, %v1773_v23  ;;  %v1695_v53 = vand.u32 2147483648, %v5661_v15  ;;  %vm5776_vm4 = vmor %vm1689_vm15, %vm1690_vm1 }
 0x3a1   :  { %v5728_v17 = vpop.eup %3849  ;;  %3855 = vpow2.f32 %v3609_v36  ;;  %v1686_v51 = vsub.f32 1.0, %v1685_v61  ;;  %v1682_v61 = vsel %vm5708_vm10, %v1681_v42, %v1677_v48  ;;  %v1793_v23 = vand.u32 2147483647, %v5682_v6 }
 0x3a2   :  { %3857 = vrcp.f32 %v5716_v7  ;;  %v1612_v0 = vpop.f32.mrf.mxu2  ;;  %v1785_v19 = vmul.f32 %v5728_v17, %v5682_v6  ;;  %v1795_v48 = vand.u32 2147483648, %v5682_v6  ;;  %vm5764_vm2 = vcmp.eq.f32.partialorder %v1693_v34, 8.507059e+37 }
 0x3a3   :  { %v1739_v62 = vadd.f32 %v1612_v0, %v4863_v43  ;;  %v1647_v16 = vpop.f32.mrf.mxu3  ;;  %v1687_v36 = vmul.f32 %v5702_v18, %v1686_v51  ;;  %v1782_v0 = vsel %vm5724_vm13, %v1781_v32, %v1777_v60  ;;  %v1696_v32 = vor.u32 1.1754944e-38, %v1695_v53 }
 0x3a4   :  { %v1839_v14 = vadd.f32 %v1647_v16, %v7370_v40  ;;  %v1786_v52 = vsub.f32 1.0, %v1785_v19  ;;  %vm1790_vm5 = vweird.f32 %v5728_v17  ;;  %vm5781_vm6 = vcmp.eq.f32.partialorder %v1793_v23, 8.507059e+37 }
 0x3a5   :  { %v3852_v1 = vpop.eup %3851  ;;  %v1741_v50 = vmul.f32 %v1739_v62, %v1682_v61  ;;  %v1688_v28 = vadd.f32 %v5702_v18, %v1687_v36  ;;  %vm1714_vm7 = vweird.f32 %v5704_v3  ;;  %vm1814_vm8 = vweird.f32 %v5716_v7  ;;  %vm1791_vm9 = vmor %vm1789_vm3, %vm1790_vm5 }
 0x3a6   :  { %v5756_v51 = vpop.eup %3853  ;;  %v5758_v21 = vadd.f32 1.0, %v3852_v1  ;;  %v1841_v29 = vmul.f32 %v1839_v14, %v1782_v0  ;;  %v1787_v42 = vmul.f32 %v5728_v17, %v1786_v52  ;;  %v1796_v0 = vor.u32 1.1754944e-38, %v1795_v48 }
 0x3a7   :  { %v3856_v19 = vpop.eup %3855  ;;  %v1710_v62 = vmul.f32 %v5756_v51, %v5704_v3  ;;  %v1743_v61 = vadd.f32 %v1741_v50, %v5671_v54  ;;  %v1692_v15 = vsel %vm5776_vm4, %v5702_v18, %v1688_v28  ;;  %v1718_v28 = vand.u32 2147483647, %v5704_v3 }
 0x3a8   :  { %v5769_v60 = vpop.eup %3857  ;;  %3859 = vrcp.f32 %v5758_v21  ;;  %v5772_v1 = vadd.f32 1.0, %v3856_v19  ;;  %v1843_v14 = vadd.f32 %v1841_v29, %v5686_v9  ;;  %v1788_v23 = vadd.f32 %v5728_v17, %v1787_v42 }
 0x3a9   :  { %v1711_v34 = vsub.f32 1.0, %v1710_v62  ;;  %v1810_v53 = vmul.f32 %v5769_v60, %v5716_v7  ;;  %v1697_v54 = vsel %vm5764_vm2, %v1696_v32, %v1692_v15  ;;  %v1720_v29 = vand.u32 2147483648, %v5704_v3 }
 0x3aa   :  { %3861 = vrcp.f32 %v5772_v1  ;;  %v1615_v52 = vpop.f32.mrf.mxu2  ;;  %v1792_v9 = vsel %vm1791_vm9, %v5728_v17, %v1788_v23  ;;  %v1818_v16 = vand.u32 2147483647, %v5716_v7  ;;  %v1820_v46 = vand.u32 2147483648, %v5716_v7 }
 0x3ab   :  { %v1712_v19 = vmul.f32 %v5756_v51, %v1711_v34  ;;  %v1811_v62 = vsub.f32 1.0, %v1810_v53  ;;  %v1740_v40 = vadd.f32 %v1615_v52, %v4773_v22  ;;  %v1650_v50 = vpop.f32.mrf.mxu3  ;;  %3863 = vtanh.f32 %v1743_v61 }
 0x3ac   :  { %v1840_v18 = vadd.f32 %v1650_v50, %v4747_v30  ;;  %v1797_v48 = vsel %vm5781_vm6, %v1796_v0, %v1792_v9  ;;  %3865 = vtanh.f32 %v1843_v14  ;;  %vm1715_vm10 = vweird.f32 %v5756_v51 }
 0x3ad   :  { %v1742_v42 = vmul.f32 %v1740_v40, %v1697_v54  ;;  %v1812_v34 = vmul.f32 %v5769_v60, %v1811_v62  ;;  %v1713_v15 = vadd.f32 %v5756_v51, %v1712_v19  ;;  %vm1729_vm11 = vweird.f32 %v5758_v21  ;;  %vm5829_vm15 = vmor %vm1714_vm7, %vm1715_vm10 }
 0x3ae   :  { %v3860_v6 = vpop.eup %3859  ;;  %v1842_v53 = vmul.f32 %v1840_v18, %v1797_v48  ;;  %v1733_v61 = vand.u32 2147483647, %v5758_v21  ;;  %vm5820_vm12 = vcmp.eq.f32.partialorder %v1718_v28, 8.507059e+37  ;;  %vm1829_vm13 = vweird.f32 %v5772_v1 }
 0x3af   :  { %v1725_v17 = vmul.f32 %v3860_v6, %v5758_v21  ;;  %v1744_v32 = vadd.f32 %v1742_v42, %v5675_v26  ;;  %vm1730_vm14 = vweird.f32 %v3860_v6  ;;  %v1735_v26 = vand.u32 2147483648, %v5758_v21 }
 0x3b0   :  { %v3862_v40 = vpop.eup %3861  ;;  %v1844_v36 = vadd.f32 %v1842_v53, %v5690_v2  ;;  %v1813_v0 = vadd.f32 %v5769_v60, %v1812_v34  ;;  %v1717_v28 = vsel %vm5829_vm15, %v5756_v51, %v1713_v15  ;;  %vm1815_vm1 = vweird.f32 %v5769_v60  ;;  %vm1731_vm5 = vmor %vm1729_vm11, %vm1730_vm14 }
 0x3b1   :  { %v1726_v52 = vsub.f32 1.0, %v1725_v17  ;;  %v1825_v23 = vmul.f32 %v3862_v40, %v5772_v1  ;;  %3867 = vtanh.f32 %v1744_v32  ;;  %v3864_v19 = vpop.eup %3863  ;;  %vm5838_vm2 = vcmp.eq.f32.partialorder %v1733_v61, 8.507059e+37  ;;  %vm5846_vm3 = vmor %vm1814_vm8, %vm1815_vm1 }
 0x3b2   :  { %3869 = vtanh.f32 %v1844_v36  ;;  %v3866_v54 = vpop.eup %3865  ;;  %v1833_v3 = vand.u32 2147483647, %v5772_v1  ;;  %v1835_v18 = vand.u32 2147483648, %v5772_v1  ;;  %v1721_v42 = vor.u32 1.1754944e-38, %v1720_v29 }
 0x3b3   :  { %v1727_v62 = vmul.f32 %v3860_v6, %v1726_v52  ;;  %v1826_v50 = vsub.f32 1.0, %v1825_v23  ;;  %vm1830_vm4 = vweird.f32 %v3862_v40  ;;  %v1817_v53 = vsel %vm5846_vm3, %v5769_v60, %v1813_v0 }
 0x3b4   :  { %v1736_v17 = vor.u32 1.1754944e-38, %v1735_v26  ;;  %v1722_v29 = vsel %vm5820_vm12, %v1721_v42, %v1717_v28  ;;  %v1747_v7 = vsub.f32 %v5610_v10, %v3864_v19  ;;  %v1821_v32 = vor.u32 1.1754944e-38, %v1820_v46  ;;  %vm1831_vm7 = vmor %vm1829_vm13, %vm1830_vm4 }
 0x3b5   :  { %v1827_v34 = vmul.f32 %v3862_v40, %v1826_v50  ;;  %v1728_v51 = vadd.f32 %v3860_v6, %v1727_v62  ;;  %vm1819_vm6 = vcmp.eq.f32.partialorder %v1818_v16, 8.507059e+37  ;;  %v1847_v52 = vsub.f32 %v5613_v5, %v3866_v54 }
 0x3b6   :  { %v1836_v14 = vor.u32 1.1754944e-38, %v1835_v18  ;;  %v1822_v26 = vsel %vm1819_vm6, %v1821_v32, %v1817_v53  ;;  %vm1834_vm8 = vcmp.eq.f32.partialorder %v1833_v3, 8.507059e+37  ;;  %v1749_v0 = vmul.f32 %v1747_v7, %v1722_v29  ;;  %v7393_v32 = vld [vmem:[#allocation33_spill] sm:$0xff] }
 0x3b7   :  { %v3868_v15 = vpop.eup %3867  ;;  %v1732_v36 = vsel %vm1731_vm5, %v3860_v6, %v1728_v51  ;;  %v1828_v61 = vadd.f32 %v3862_v40, %v1827_v34  ;;  %v1849_v50 = vmul.f32 %v1847_v52, %v1822_v26 }
 0x3b8   :  { %v3870_v23 = vpop.eup %3869  ;;  %v1737_v60 = vsel %vm5838_vm2, %v1736_v17, %v1732_v36  ;;  %v1748_v21 = vsub.f32 %v5605_v12, %v3868_v15  ;;  %v5872_v42 = vadd.f32 %v3864_v19, %v1749_v0  ;;  %v7392_v19 = vld [vmem:[#allocation17_spill] sm:$0xff]  ;;  %v7394_v36 = vld [vmem:[#allocation20_spill] sm:$0xff]  ;;  %v7395_v0 = vld [vmem:[#allocation23_spill] sm:$0xff] }
 0x3b9   :  { %v1832_v2 = vsel %vm1831_vm7, %v3862_v40, %v1828_v61  ;;  %v1848_v6 = vsub.f32 %v5607_v55, %v3870_v23  ;;  %v5875_v1 = vadd.f32 %v3866_v54, %v1849_v50  ;;  %v370_v61 = vadd.f32 %v7394_v36, %v4745_v35 }
 0x3ba   :  { %v1750_v46 = vmul.f32 %v1748_v21, %v1737_v60  ;;  %v1837_v16 = vsel %vm1834_vm8, %v1836_v14, %v1832_v2  ;;  %7387 = vst [vmem:[#allocation59_spill] sm:$0xff] %v5872_v42 }
 0x3bb   :  { %v1850_v62 = vmul.f32 %v1848_v6, %v1837_v16  ;;  %7388 = vst [vmem:[#allocation62_spill] sm:$0xff] %v5875_v1 }
 0x3bc   :  { %v5867_v28 = vadd.f32 %v3868_v15, %v1750_v46  ;;  %v405_v15 = vadd.f32 %v7393_v32, %v4780_v63 }
 0x3bd   :  { %v5869_v9 = vadd.f32 %v3870_v23, %v1850_v62  ;;  %v373_v62 = vadd.f32 %v7395_v0, %v4733_v41 }
 0x3be   :  { %7385 = vst [vmem:[#allocation54_spill] sm:$0xff] %v5867_v28  ;;  %1871 = vmatpush.msra.mxu0 %v5867_v28 }
 0x3bf   :  { %7386 = vst [vmem:[#allocation53_spill] sm:$0xff] %v5869_v9  ;;  %1906 = vmatpush.msra.mxu1 %v5869_v9 }
 0x3c0   :  { %1872 = vmatpush.msra.mxu0 %v5872_v42 }
 0x3c1   :  { %1907 = vmatpush.msra.mxu1 %v5875_v1  ;;  %3610 = vmatmul.msk.f32.vlgmr.msra.gmra.mxu0 %vm132_vm0, %v5298_v47  ;;  %v7389_v47 = vld [vmem:[#allocation27_spill] sm:$0xff] }
 0x3c2   :  { %3616 = vmatmul.msk.f32.vlgmr.msra.gmra.mxu1 %vm132_vm0, %v5305_v25  ;;  %v399_v25 = vadd.f32 %v7389_v47, %v4753_v33 }
 0x3c9   :  { %3611 = vmatmul.msk.f32.gmra.mxu0 %vm132_vm0, %v5312_v58  ;;  %v7390_v58 = vld [vmem:[#allocation14_spill] sm:$0xff] }
 0x3ca   :  { %3617 = vmatmul.msk.f32.gmra.mxu1 %vm132_vm0, %v5319_v8  ;;  %v364_v8 = vadd.f32 %v7390_v58, %v4735_v4 }
 0x3d1   :  { %3612 = vmatmul.msk.f32.gmra.mxu0 %vm132_vm0, %v5326_v13 }
 0x3d2   :  { %3618 = vmatmul.msk.f32.gmra.mxu1 %vm132_vm0, %v5333_v56 }
 0x3d9   :  { %3613 = vmatmul.msk.f32.gmra.mxu0 %vm132_vm0, %v5340_v37 }
 0x3da   :  { %3619 = vmatmul.msk.f32.gmra.mxu1 %vm132_vm0, %v5347_v20 }
 0x3e1   :  { %3614 = vmatmul.msk.f32.gmra.mxu0 %vm132_vm0, %v5354_v45 }
 0x3e2   :  { %3620 = vmatmul.msk.f32.gmra.mxu1 %vm132_vm0, %v5361_v31  ;;  %v7391_v31 = vld [vmem:[#allocation30_spill] sm:$0xff] }
 0x3e9   :  { %3615 = vmatmul.msk.f32.gmra.mxu0 %vm132_vm0, %v5368_v44  ;;  %v402_v44 = vadd.f32 %v7391_v31, %v4737_v27  ;;  %v7399_v31 = vld [vmem:[#allocation39_spill] sm:$0xff] }
 0x3ea   :  { %3621 = vmatmul.msk.f32.gmra.mxu1 %vm132_vm0, %v5375_v59  ;;  %v367_v59 = vadd.f32 %v7392_v19, %v4725_v24  ;;  %v7400_v19 = vld [vmem:[#allocation42_spill] sm:$0xff] }
 0x43e   :  { %v1874_v13 = vpop.f32.mrf.mxu0 }
 0x43f   :  { %v1933_v56 = vadd.f32 %v1874_v13, %v399_v25  ;;  %v1909_v37 = vpop.f32.mrf.mxu1  ;;  %v7396_v25 = vld [vmem:[#allocation26_spill] sm:$0xff] }
 0x440   :  { %v2033_v20 = vadd.f32 %v1909_v37, %v364_v8  ;;  %v5933_v58 = vadd.f32 %v7396_v25, %v7284_v57  ;;  %v7397_v8 = vld [vmem:[#allocation29_spill] sm:$0xff]  ;;  %v7398_v37 = vld [vmem:[#allocation36_spill] sm:$0xff] }
 0x441   :  { %v3622_v45 = vmul.f32 -1.442695, %v1933_v56  ;;  %v5937_v13 = vadd.f32 %v7397_v8, %v7285_v38 }
 0x442   :  { %v3626_v40 = vmul.f32 -1.442695, %v2033_v20  ;;  %v408_v20 = vadd.f32 %v7398_v37, %v4762_v11 }
 0x443   :  { %3871 = vpow2.f32 %v3622_v45 }
 0x444   :  { %3873 = vpow2.f32 %v3626_v40 }
 0x446   :  { %v1877_v54 = vpop.f32.mrf.mxu0 }
 0x447   :  { %v1934_v3 = vadd.f32 %v1877_v54, %v402_v44  ;;  %v1912_v18 = vpop.f32.mrf.mxu1  ;;  %v5948_v44 = vadd.f32 %v7399_v31, %v4794_v49 }
 0x448   :  { %v2034_v48 = vadd.f32 %v1912_v18, %v367_v59  ;;  %v5952_v59 = vadd.f32 %v7400_v19, %v4788_v39 }
 0x449   :  { %v3872_v34 = vpop.eup %3871  ;;  %v3623_v51 = vmul.f32 -1.442695, %v1934_v3 }
 0x44a   :  { %v3874_v53 = vpop.eup %3873  ;;  %v5911_v17 = vadd.f32 1.0, %v3872_v34  ;;  %v3627_v29 = vmul.f32 -1.442695, %v2034_v48 }
 0x44b   :  { %v5913_v7 = vadd.f32 1.0, %v3874_v53  ;;  %3875 = vpow2.f32 %v3623_v51 }
 0x44c   :  { %3877 = vrcp.f32 %v5911_v17  ;;  %vm1948_vm9 = vweird.f32 %v5911_v17  ;;  %v1952_v51 = vand.u32 2147483647, %v5911_v17 }
 0x44d   :  { %3879 = vrcp.f32 %v5913_v7  ;;  %vm2048_vm13 = vweird.f32 %v5913_v7 }
 0x44e   :  { %3881 = vpow2.f32 %v3627_v29  ;;  %v1880_v52 = vpop.f32.mrf.mxu0  ;;  %v1954_v29 = vand.u32 2147483648, %v5911_v17  ;;  %vm5970_vm12 = vcmp.eq.f32.partialorder %v1952_v51, 8.507059e+37  ;;  %v7409_v51 = vld [vmem:[#allocation64_spill] sm:$0xff] }
 0x44f   :  { %v1973_v23 = vadd.f32 %v1880_v52, %v405_v15  ;;  %v1915_v60 = vpop.f32.mrf.mxu1  ;;  %v2052_v15 = vand.u32 2147483647, %v5913_v7 }
 0x450   :  { %v2073_v21 = vadd.f32 %v1915_v60, %v370_v61  ;;  %v1955_v25 = vor.u32 1.1754944e-38, %v1954_v29 }
 0x451   :  { %v3876_v14 = vpop.eup %3875  ;;  %v3624_v26 = vmul.f32 -1.442695, %v1973_v23  ;;  %v2054_v23 = vand.u32 2147483648, %v5913_v7  ;;  %vm5986_vm15 = vcmp.eq.f32.partialorder %v2052_v15, 8.507059e+37 }
 0x452   :  { %v5921_v2 = vpop.eup %3877  ;;  %v5923_v6 = vadd.f32 1.0, %v3876_v14  ;;  %v3628_v46 = vmul.f32 -1.442695, %v2073_v21 }
 0x453   :  { %v5925_v16 = vpop.eup %3879  ;;  %3883 = vpow2.f32 %v3624_v26  ;;  %v1944_v50 = vmul.f32 %v5921_v2, %v5911_v17  ;;  %vm1949_vm10 = vweird.f32 %v5921_v2  ;;  %v2055_v17 = vor.u32 1.1754944e-38, %v2054_v23 }
 0x454   :  { %v3882_v47 = vpop.eup %3881  ;;  %3885 = vrcp.f32 %v5923_v6  ;;  %v2044_v56 = vmul.f32 %v5925_v16, %v5913_v7  ;;  %vm2049_vm11 = vweird.f32 %v5925_v16  ;;  %vm5982_vm14 = vmor %vm1948_vm9, %vm1949_vm10  ;;  %vm1963_vm2 = vweird.f32 %v5923_v6 }
 0x455   :  { %v5944_v45 = vadd.f32 1.0, %v3882_v47  ;;  %3887 = vpow2.f32 %v3628_v46  ;;  %v1945_v40 = vsub.f32 1.0, %v1944_v50  ;;  %vm5995_vm1 = vmor %vm2048_vm13, %vm2049_vm11 }
 0x456   :  { %v1883_v54 = vpop.f32.mrf.mxu0  ;;  %v2045_v3 = vsub.f32 1.0, %v2044_v56 }
 0x457   :  { %3889 = vrcp.f32 %v5944_v45  ;;  %v1974_v18 = vadd.f32 %v1883_v54, %v408_v20  ;;  %v1918_v48 = vpop.f32.mrf.mxu1  ;;  %v1946_v34 = vmul.f32 %v5921_v2, %v1945_v40  ;;  %v2067_v29 = vand.u32 2147483647, %v5944_v45 }
 0x458   :  { %v2074_v53 = vadd.f32 %v1918_v48, %v373_v62  ;;  %v2046_v32 = vmul.f32 %v5925_v16, %v2045_v3  ;;  %v1969_v48 = vand.u32 2147483648, %v5923_v6  ;;  %vm2063_vm5 = vweird.f32 %v5944_v45 }
 0x459   :  { %v3884_v36 = vpop.eup %3883  ;;  %v3625_v61 = vmul.f32 -1.442695, %v1974_v18  ;;  %v1947_v52 = vadd.f32 %v5921_v2, %v1946_v34  ;;  %v1967_v18 = vand.u32 2147483647, %v5923_v6  ;;  %vm6043_vm8 = vcmp.eq.f32.partialorder %v2067_v29, 8.507059e+37 }
 0x45a   :  { %v5964_v60 = vpop.eup %3885  ;;  %v5966_v21 = vadd.f32 1.0, %v3884_v36  ;;  %v3629_v14 = vmul.f32 -1.442695, %v2074_v53  ;;  %v2047_v26 = vadd.f32 %v5925_v16, %v2046_v32 }
 0x45b   :  { %v3888_v46 = vpop.eup %3887  ;;  %3891 = vpow2.f32 %v3625_v61  ;;  %v1959_v62 = vmul.f32 %v5964_v60, %v5923_v6  ;;  %v1951_v7 = vsel %vm5982_vm14, %v5921_v2, %v1947_v52  ;;  %vm1964_vm3 = vweird.f32 %v5964_v60 }
 0x45c   :  { %3893 = vrcp.f32 %v5966_v21  ;;  %v5978_v50 = vadd.f32 1.0, %v3888_v46  ;;  %v2051_v31 = vsel %vm5995_vm1, %v5925_v16, %v2047_v26  ;;  %v1956_v34 = vsel %vm5970_vm12, %v1955_v25, %v1951_v7  ;;  %vm6038_vm6 = vmor %vm1963_vm2, %vm1964_vm3 }
 0x45d   :  { %v5990_v56 = vpop.eup %3889  ;;  %3895 = vpow2.f32 %v3629_v14  ;;  %v1960_v20 = vsub.f32 1.0, %v1959_v62  ;;  %v2056_v36 = vsel %vm5986_vm15, %v2055_v17, %v2051_v31  ;;  %v2069_v46 = vand.u32 2147483648, %v5944_v45 }
 0x45e   :  { %3897 = vrcp.f32 %v5978_v50  ;;  %v1886_v40 = vpop.f32.mrf.mxu0  ;;  %v2059_v19 = vmul.f32 %v5990_v56, %v5944_v45  ;;  %vm6026_vm4 = vcmp.eq.f32.partialorder %v1967_v18, 8.507059e+37  ;;  %v1970_v25 = vor.u32 1.1754944e-38, %v1969_v48 }
 0x45f   :  { %v2013_v2 = vadd.f32 %v1886_v40, %v4863_v43  ;;  %v1921_v54 = vpop.f32.mrf.mxu1  ;;  %v1961_v3 = vmul.f32 %v5964_v60, %v1960_v20  ;;  %vm2064_vm7 = vweird.f32 %v5990_v56  ;;  %vm1988_vm9 = vweird.f32 %v5966_v21 }
 0x460   :  { %v2113_v53 = vadd.f32 %v1921_v54, %v7409_v51  ;;  %v2060_v16 = vsub.f32 1.0, %v2059_v19  ;;  %vm2088_vm10 = vweird.f32 %v5978_v50  ;;  %vm2065_vm11 = vmor %vm2063_vm5, %vm2064_vm7  ;;  %v1994_v29 = vand.u32 2147483648, %v5966_v21 }
 0x461   :  { %v3892_v32 = vpop.eup %3891  ;;  %v2015_v15 = vmul.f32 %v2013_v2, %v1956_v34  ;;  %v1962_v61 = vadd.f32 %v5964_v60, %v1961_v3  ;;  %v2070_v3 = vor.u32 1.1754944e-38, %v2069_v46 }
 0x462   :  { %v6018_v52 = vpop.eup %3893  ;;  %v6020_v23 = vadd.f32 1.0, %v3892_v32  ;;  %v2115_v14 = vmul.f32 %v2113_v53, %v2056_v36  ;;  %v2061_v26 = vmul.f32 %v5990_v56, %v2060_v16  ;;  %v2092_v36 = vand.u32 2147483647, %v5978_v50 }
 0x463   :  { %v3896_v0 = vpop.eup %3895  ;;  %v1984_v62 = vmul.f32 %v6018_v52, %v5966_v21  ;;  %v2017_v31 = vadd.f32 %v2015_v15, %v5948_v44  ;;  %v1966_v6 = vsel %vm6038_vm6, %v5964_v60, %v1962_v61  ;;  %v1992_v60 = vand.u32 2147483647, %v5966_v21 }
 0x464   :  { %v6031_v8 = vpop.eup %3897  ;;  %3899 = vrcp.f32 %v6020_v23  ;;  %v6034_v7 = vadd.f32 1.0, %v3896_v0  ;;  %v2117_v19 = vadd.f32 %v2115_v14, %v5933_v58  ;;  %v2062_v54 = vadd.f32 %v5990_v56, %v2061_v26 }
 0x465   :  { %v1985_v20 = vsub.f32 1.0, %v1984_v62  ;;  %v2084_v40 = vmul.f32 %v6031_v8, %v5978_v50  ;;  %v1971_v58 = vsel %vm6026_vm4, %v1970_v25, %v1966_v6  ;;  %v2094_v26 = vand.u32 2147483648, %v5978_v50 }
 0x466   :  { %3901 = vrcp.f32 %v6034_v7  ;;  %v1889_v2 = vpop.f32.mrf.mxu0  ;;  %v2066_v53 = vsel %vm2065_vm11, %v5990_v56, %v2062_v54  ;;  %vm1989_vm12 = vweird.f32 %v6018_v52  ;;  %vm2003_vm13 = vweird.f32 %v6020_v23 }
 0x467   :  { %v1986_v18 = vmul.f32 %v6018_v52, %v1985_v20  ;;  %v2085_v48 = vsub.f32 1.0, %v2084_v40  ;;  %v2014_v34 = vadd.f32 %v1889_v2, %v4773_v22  ;;  %v1924_v44 = vpop.f32.mrf.mxu1  ;;  %3903 = vtanh.f32 %v2017_v31  ;;  %vm6091_vm2 = vmor %vm1988_vm9, %vm1989_vm12 }
 0x468   :  { %v2114_v16 = vadd.f32 %v1924_v44, %v4747_v30  ;;  %v2071_v15 = vsel %vm6043_vm8, %v2070_v3, %v2066_v53  ;;  %3905 = vtanh.f32 %v2117_v19  ;;  %v2007_v25 = vand.u32 2147483647, %v6020_v23  ;;  %v6200_v3 = vld [vmem:[%s7129_s3 + $0x20] sm:$0xff] }
 0x469   :  { %v2016_v32 = vmul.f32 %v2014_v34, %v1971_v58  ;;  %v2086_v61 = vmul.f32 %v6031_v8, %v2085_v48  ;;  %v1987_v0 = vadd.f32 %v6018_v52, %v1986_v18  ;;  %vm6082_vm14 = vcmp.eq.f32.partialorder %v1992_v60, 8.507059e+37  ;;  %v7426_v34 = vld [vmem:[#allocation28_spill] sm:$0xff] }
 0x46a   :  { %v3900_v45 = vpop.eup %3899  ;;  %v2116_v14 = vmul.f32 %v2114_v16, %v2071_v15  ;;  %vm2103_vm15 = vweird.f32 %v6034_v7  ;;  %vm2089_vm3 = vweird.f32 %v6031_v8  ;;  %vm6100_vm4 = vcmp.eq.f32.partialorder %v2007_v25, 8.507059e+37 }
 0x46b   :  { %v1999_v56 = vmul.f32 %v3900_v45, %v6020_v23  ;;  %v2018_v46 = vadd.f32 %v2016_v32, %v5952_v59  ;;  %vm2004_vm1 = vweird.f32 %v3900_v45  ;;  %v2009_v59 = vand.u32 2147483648, %v6020_v23  ;;  %vm6108_vm5 = vmor %vm2088_vm10, %vm2089_vm3 }
 0x46c   :  { %v3902_v62 = vpop.eup %3901  ;;  %v2118_v47 = vadd.f32 %v2116_v14, %v5937_v13  ;;  %v2087_v40 = vadd.f32 %v6031_v8, %v2086_v61  ;;  %v1991_v2 = vsel %vm6091_vm2, %v6018_v52, %v1987_v0  ;;  %v2107_v21 = vand.u32 2147483647, %v6034_v7  ;;  %vm2005_vm7 = vmor %vm2003_vm13, %vm2004_vm1  ;;  %v6151_v13 = vld [vmem:[%s7130_s4] sm:$0xff] }
 0x46d   :  { %v2000_v17 = vsub.f32 1.0, %v1999_v56  ;;  %v2099_v20 = vmul.f32 %v3902_v62, %v6034_v7  ;;  %3907 = vtanh.f32 %v2018_v46  ;;  %v3904_v31 = vpop.eup %3903  ;;  %v2109_v18 = vand.u32 2147483648, %v6034_v7 }
 0x46e   :  { %3909 = vtanh.f32 %v2118_v47  ;;  %v3906_v54 = vpop.eup %3905  ;;  %v1995_v48 = vor.u32 1.1754944e-38, %v1994_v29  ;;  %vm2104_vm6 = vweird.f32 %v3902_v62  ;;  %v2091_v60 = vsel %vm6108_vm5, %v6031_v8, %v2087_v40  ;;  %v6158_v40 = vld [vmem:[%s7129_s3 + $0x8] sm:$0xff] }
 0x46f   :  { %v2001_v6 = vmul.f32 %v3900_v45, %v2000_v17  ;;  %v2100_v19 = vsub.f32 1.0, %v2099_v20  ;;  %v2010_v58 = vor.u32 1.1754944e-38, %v2009_v59  ;;  %v2021_v50 = vsub.f32 %v5872_v42, %v3904_v31  ;;  %vm2105_vm9 = vmor %vm2103_vm15, %vm2104_vm6 }
 0x470   :  { %v1996_v53 = vsel %vm6082_vm14, %v1995_v48, %v1991_v2  ;;  %v2095_v16 = vor.u32 1.1754944e-38, %v2094_v26  ;;  %vm2093_vm8 = vcmp.eq.f32.partialorder %v2092_v36, 8.507059e+37  ;;  %v2121_v61 = vsub.f32 %v5875_v1, %v3906_v54  ;;  %v6186_v2 = vld [vmem:[%s7129_s3 + $0x18] sm:$0xff]  ;;  %v6221_v48 = vld [vmem:[%s7130_s4 + $0x28] sm:$0xff] }
 0x471   :  { %v2101_v44 = vmul.f32 %v3902_v62, %v2100_v19  ;;  %v2002_v52 = vadd.f32 %v3900_v45, %v2001_v6  ;;  %v2110_v56 = vor.u32 1.1754944e-38, %v2109_v18  ;;  %vm2108_vm10 = vcmp.eq.f32.partialorder %v2107_v21, 8.507059e+37  ;;  %v6172_v6 = vld [vmem:[%s7129_s3 + $0x10] sm:$0xff]  ;;  %v6207_v21 = vld [vmem:[%s7130_s4 + $0x20] sm:$0xff]  ;;  %v6214_v18 = vld [vmem:[%s7129_s3 + $0x28] sm:$0xff] }
 0x472   :  { %v2096_v46 = vsel %vm2093_vm8, %v2095_v16, %v2091_v60  ;;  %v2023_v47 = vmul.f32 %v2021_v50, %v1996_v53  ;;  %v6179_v19 = vld [vmem:[%s7130_s4 + $0x10] sm:$0xff] }
 0x473   :  { %v3908_v29 = vpop.eup %3907  ;;  %v2006_v32 = vsel %vm2005_vm7, %v3900_v45, %v2002_v52  ;;  %v2102_v15 = vadd.f32 %v3902_v62, %v2101_v44  ;;  %v2123_v37 = vmul.f32 %v2121_v61, %v2096_v46  ;;  %v452_v44 = vadd.f32 %v7426_v34, %v4753_v33  ;;  %v7427_v52 = vld [vmem:[#allocation67_spill] sm:$0xff]  ;;  %v7430_v34 = vld [vmem:[#allocation34_spill] sm:$0xff] }
 0x474   :  { %v3910_v14 = vpop.eup %3909  ;;  %v2011_v8 = vsel %vm6100_vm4, %v2010_v58, %v2006_v32  ;;  %v2022_v23 = vsub.f32 %v5867_v28, %v3908_v29  ;;  %v6134_v59 = vadd.f32 %v3904_v31, %v2023_v47  ;;  %v6165_v31 = vld [vmem:[%s7130_s4 + $0x8] sm:$0xff]  ;;  %v311_v60 = vadd.f32 %v7427_v52, %v4735_v4  ;;  %v7431_v52 = vld [vmem:[#allocation71_spill] sm:$0xff] }
 0x475   :  { %v2106_v0 = vsel %vm2105_vm9, %v3902_v62, %v2102_v15  ;;  %v2122_v45 = vsub.f32 %v5869_v9, %v3910_v14  ;;  %v6137_v7 = vadd.f32 %v3906_v54, %v2123_v37  ;;  %v6144_v62 = vld [vmem:[%s7129_s3] sm:$0xff]  ;;  %v6193_v54 = vld [vmem:[%s7130_s4 + $0x18] sm:$0xff] }
 0x476   :  { %v2024_v26 = vmul.f32 %v2022_v23, %v2011_v8  ;;  %v2111_v36 = vsel %vm2108_vm10, %v2110_v56, %v2106_v0  ;;  %7425 = vst [vmem:[#allocation56_spill] sm:$0xff] %v6134_v59  ;;  %v7428_v15 = vld [vmem:[#allocation31_spill] sm:$0xff] }
 0x477   :  { %v2124_v25 = vmul.f32 %v2122_v45, %v2111_v36  ;;  %v455_v61 = vadd.f32 %v7428_v15, %v4737_v27 }
 0x478   :  { %v6129_v17 = vadd.f32 %v3908_v29, %v2024_v26 }
 0x479   :  { %v6131_v20 = vadd.f32 %v3910_v14, %v2124_v25  ;;  %v7429_v14 = vld [vmem:[#allocation69_spill] sm:$0xff] }
 0x47a   :  { %7424 = vst [vmem:[#allocation65_spill] sm:$0xff] %v6129_v17  ;;  %2145 = vmatpush.msra.mxu2 %v6129_v17  ;;  %v314_v8 = vadd.f32 %v7429_v14, %v4725_v24 }
 0x47b   :  { %2180 = vmatpush.msra.mxu3 %v6131_v20 }
 0x47c   :  { %2146 = vmatpush.msra.mxu2 %v6134_v59 }
 0x47d   :  { %2181 = vmatpush.msra.mxu3 %v6137_v7  ;;  %3630 = vmatmul.msk.f32.vlgmr.msra.gmra.mxu2 %vm132_vm0, %v6144_v62 }
 0x47e   :  { %3636 = vmatmul.msk.f32.vlgmr.msra.gmra.mxu3 %vm132_vm0, %v6151_v13 }
 0x485   :  { %3631 = vmatmul.msk.f32.gmra.mxu2 %vm132_vm0, %v6158_v40 }
 0x486   :  { %3637 = vmatmul.msk.f32.gmra.mxu3 %vm132_vm0, %v6165_v31 }
 0x48d   :  { %3632 = vmatmul.msk.f32.gmra.mxu2 %vm132_vm0, %v6172_v6 }
 0x48e   :  { %3638 = vmatmul.msk.f32.gmra.mxu3 %vm132_vm0, %v6179_v19 }
 0x495   :  { %3633 = vmatmul.msk.f32.gmra.mxu2 %vm132_vm0, %v6186_v2 }
 0x496   :  { %3639 = vmatmul.msk.f32.gmra.mxu3 %vm132_vm0, %v6193_v54 }
 0x49d   :  { %3634 = vmatmul.msk.f32.gmra.mxu2 %vm132_vm0, %v6200_v3 }
 0x49e   :  { %3640 = vmatmul.msk.f32.gmra.mxu3 %vm132_vm0, %v6207_v21 }
 0x4a5   :  { %3635 = vmatmul.msk.f32.gmra.mxu2 %vm132_vm0, %v6214_v18 }
 0x4a6   :  { %3641 = vmatmul.msk.f32.gmra.mxu3 %vm132_vm0, %v6221_v48 }
 0x500   :  { %v2148_v58 = vpop.f32.mrf.mxu2 }
 0x501   :  { %v2207_v53 = vadd.f32 %v2148_v58, %v452_v44  ;;  %v2183_v50 = vpop.f32.mrf.mxu3  ;;  %v458_v44 = vadd.f32 %v7430_v34, %v4780_v63 }
 0x502   :  { %v2307_v16 = vadd.f32 %v2183_v50, %v311_v60  ;;  %v317_v60 = vadd.f32 %v7431_v52, %v4745_v35 }
 0x503   :  { %v3642_v29 = vmul.f32 -1.442695, %v2207_v53 }
 0x504   :  { %v3646_v32 = vmul.f32 -1.442695, %v2307_v16 }
 0x505   :  { %3911 = vpow2.f32 %v3642_v29 }
 0x506   :  { %3913 = vpow2.f32 %v3646_v32 }
 0x508   :  { %v2151_v23 = vpop.f32.mrf.mxu2 }
 0x509   :  { %v2208_v56 = vadd.f32 %v2151_v23, %v455_v61  ;;  %v2186_v46 = vpop.f32.mrf.mxu3  ;;  %v7432_v23 = vld [vmem:[#allocation72_spill] sm:$0xff] }
 0x50a   :  { %v2308_v0 = vadd.f32 %v2186_v46, %v314_v8 }
 0x50b   :  { %v3912_v45 = vpop.eup %3911  ;;  %v3643_v26 = vmul.f32 -1.442695, %v2208_v56  ;;  %v320_v56 = vadd.f32 %v7432_v23, %v4733_v41 }
 0x50c   :  { %v3914_v36 = vpop.eup %3913  ;;  %v6233_v47 = vadd.f32 1.0, %v3912_v45  ;;  %v3647_v25 = vmul.f32 -1.442695, %v2308_v0  ;;  %v7433_v45 = vld [vmem:[#allocation73_spill] sm:$0xff] }
 0x50d   :  { %v6235_v37 = vadd.f32 1.0, %v3914_v36  ;;  %3915 = vpow2.f32 %v3643_v26  ;;  %v6255_v26 = vadd.f32 %v7433_v45, %v7284_v57  ;;  %v7434_v36 = vld [vmem:[#allocation78_spill] sm:$0xff] }
 0x50e   :  { %3917 = vrcp.f32 %v6233_v47  ;;  %vm2222_vm11 = vweird.f32 %v6233_v47 }
 0x50f   :  { %3919 = vrcp.f32 %v6235_v37  ;;  %vm2322_vm15 = vweird.f32 %v6235_v37 }
 0x510   :  { %3921 = vpow2.f32 %v3647_v25  ;;  %v2154_v58 = vpop.f32.mrf.mxu2  ;;  %v6259_v25 = vadd.f32 %v7434_v36, %v7285_v38 }
 0x511   :  { %v2247_v53 = vadd.f32 %v2154_v58, %v458_v44  ;;  %v2189_v50 = vpop.f32.mrf.mxu3  ;;  %v7435_v44 = vld [vmem:[#allocation37_spill] sm:$0xff] }
 0x512   :  { %v2347_v16 = vadd.f32 %v2189_v50, %v317_v60  ;;  %v461_v52 = vadd.f32 %v7435_v44, %v4762_v11  ;;  %v2228_v44 = vand.u32 2147483648, %v6233_v47 }
 0x513   :  { %v3916_v29 = vpop.eup %3915  ;;  %v3644_v32 = vmul.f32 -1.442695, %v2247_v53  ;;  %v7436_v53 = vld [vmem:[#allocation40_spill] sm:$0xff] }
 0x514   :  { %v6243_v15 = vpop.eup %3917  ;;  %v6245_v61 = vadd.f32 1.0, %v3916_v29  ;;  %v3648_v14 = vmul.f32 -1.442695, %v2347_v16  ;;  %v6270_v50 = vadd.f32 %v7436_v53, %v4794_v49  ;;  %v7437_v16 = vld [vmem:[#allocation43_spill] sm:$0xff] }
 0x515   :  { %v6247_v8 = vpop.eup %3919  ;;  %3923 = vpow2.f32 %v3644_v32  ;;  %v2218_v46 = vmul.f32 %v6243_v15, %v6233_v47  ;;  %v6274_v29 = vadd.f32 %v7437_v16, %v4788_v39  ;;  %v2326_v16 = vand.u32 2147483647, %v6235_v37 }
 0x516   :  { %v3922_v0 = vpop.eup %3921  ;;  %3925 = vrcp.f32 %v6245_v61  ;;  %v2318_v34 = vmul.f32 %v6247_v8, %v6235_v37  ;;  %vm2223_vm12 = vweird.f32 %v6243_v15  ;;  %vm2323_vm13 = vweird.f32 %v6247_v8 }
 0x517   :  { %v6266_v60 = vadd.f32 1.0, %v3922_v0  ;;  %3927 = vpow2.f32 %v3648_v14  ;;  %v2219_v58 = vsub.f32 1.0, %v2218_v46  ;;  %v2226_v14 = vand.u32 2147483647, %v6233_v47  ;;  %vm6304_vm1 = vmor %vm2222_vm11, %vm2223_vm12 }
 0x518   :  { %v2157_v32 = vpop.f32.mrf.mxu2  ;;  %v2319_v23 = vsub.f32 1.0, %v2318_v34  ;;  %v2328_v34 = vand.u32 2147483648, %v6235_v37  ;;  %vm6308_vm2 = vcmp.eq.f32.partialorder %v2326_v16, 8.507059e+37  ;;  %vm6317_vm3 = vmor %vm2322_vm15, %vm2323_vm13  ;;  %vm2237_vm4 = vweird.f32 %v6245_v61 }
 0x519   :  { %3929 = vrcp.f32 %v6266_v60  ;;  %v2248_v45 = vadd.f32 %v2157_v32, %v461_v52  ;;  %v2192_v36 = vpop.f32.mrf.mxu3  ;;  %v2220_v0 = vmul.f32 %v6243_v15, %v2219_v58  ;;  %vm6292_vm14 = vcmp.eq.f32.partialorder %v2226_v14, 8.507059e+37 }
 0x51a   :  { %v2348_v46 = vadd.f32 %v2192_v36, %v320_v56  ;;  %v2320_v53 = vmul.f32 %v6247_v8, %v2319_v23  ;;  %v2329_v47 = vor.u32 1.1754944e-38, %v2328_v34  ;;  %v2241_v34 = vand.u32 2147483647, %v6245_v61 }
 0x51b   :  { %v3924_v1 = vpop.eup %3923  ;;  %v3645_v9 = vmul.f32 -1.442695, %v2248_v45  ;;  %v2221_v5 = vadd.f32 %v6243_v15, %v2220_v0  ;;  %vm2337_vm7 = vweird.f32 %v6266_v60 }
 0x51c   :  { %v6286_v52 = vpop.eup %3925  ;;  %v6288_v58 = vadd.f32 1.0, %v3924_v1  ;;  %v3649_v32 = vmul.f32 -1.442695, %v2348_v46  ;;  %v2321_v56 = vadd.f32 %v6247_v8, %v2320_v53  ;;  %vm6348_vm6 = vcmp.eq.f32.partialorder %v2241_v34, 8.507059e+37 }
 0x51d   :  { %v3928_v23 = vpop.eup %3927  ;;  %3931 = vpow2.f32 %v3645_v9  ;;  %v2233_v45 = vmul.f32 %v6286_v52, %v6245_v61  ;;  %v2229_v9 = vor.u32 1.1754944e-38, %v2228_v44  ;;  %v2225_v37 = vsel %vm6304_vm1, %v6243_v15, %v2221_v5 }
 0x51e   :  { %3933 = vrcp.f32 %v6288_v58  ;;  %v6300_v1 = vadd.f32 1.0, %v3928_v23  ;;  %v2325_v16 = vsel %vm6317_vm3, %v6247_v8, %v2321_v56  ;;  %v2341_v56 = vand.u32 2147483647, %v6266_v60 }
 0x51f   :  { %v6312_v46 = vpop.eup %3929  ;;  %3935 = vpow2.f32 %v3649_v32  ;;  %v2234_v23 = vsub.f32 1.0, %v2233_v45  ;;  %v2243_v45 = vand.u32 2147483648, %v6245_v61  ;;  %v2230_v42 = vsel %vm6292_vm14, %v2229_v9, %v2225_v37 }
 0x520   :  { %3937 = vrcp.f32 %v6300_v1  ;;  %v2160_v44 = vpop.f32.mrf.mxu2  ;;  %v2333_v32 = vmul.f32 %v6312_v46, %v6266_v60  ;;  %vm2238_vm5 = vweird.f32 %v6286_v52  ;;  %v2343_v37 = vand.u32 2147483648, %v6266_v60 }
 0x521   :  { %v2287_v5 = vadd.f32 %v2160_v44, %v4863_v43  ;;  %v2195_v15 = vpop.f32.mrf.mxu3  ;;  %v2235_v0 = vmul.f32 %v6286_v52, %v2234_v23  ;;  %v2330_v44 = vsel %vm6308_vm2, %v2329_v47, %v2325_v16  ;;  %v2244_v47 = vor.u32 1.1754944e-38, %v2243_v45  ;;  %vm6360_vm8 = vmor %vm2237_vm4, %vm2238_vm5 }
 0x522   :  { %v2387_v53 = vadd.f32 %v2195_v15, %v7409_v51  ;;  %v2334_v8 = vsub.f32 1.0, %v2333_v32  ;;  %vm2338_vm9 = vweird.f32 %v6312_v46  ;;  %vm6365_vm10 = vcmp.eq.f32.partialorder %v2341_v56, 8.507059e+37 }
 0x523   :  { %v3932_v10 = vpop.eup %3931  ;;  %v2289_v55 = vmul.f32 %v2287_v5, %v2230_v42  ;;  %v2236_v28 = vadd.f32 %v6286_v52, %v2235_v0  ;;  %vm2262_vm11 = vweird.f32 %v6288_v58  ;;  %vm2362_vm12 = vweird.f32 %v6300_v1  ;;  %vm2339_vm13 = vmor %vm2337_vm7, %vm2338_vm9 }
 0x524   :  { %v6340_v23 = vpop.eup %3933  ;;  %v6342_v12 = vadd.f32 1.0, %v3932_v10  ;;  %v2389_v36 = vmul.f32 %v2387_v53, %v2330_v44  ;;  %v2335_v9 = vmul.f32 %v6312_v46, %v2334_v8  ;;  %v2344_v44 = vor.u32 1.1754944e-38, %v2343_v37 }
 0x525   :  { %v3936_v32 = vpop.eup %3935  ;;  %v2258_v42 = vmul.f32 %v6340_v23, %v6288_v58  ;;  %v2291_v45 = vadd.f32 %v2289_v55, %v6270_v50  ;;  %v2240_v61 = vsel %vm6360_vm8, %v6286_v52, %v2236_v28  ;;  %v2266_v28 = vand.u32 2147483647, %v6288_v58 }
 0x526   :  { %v6353_v16 = vpop.eup %3937  ;;  %3939 = vrcp.f32 %v6342_v12  ;;  %v6356_v10 = vadd.f32 1.0, %v3936_v32  ;;  %v2391_v53 = vadd.f32 %v2389_v36, %v6255_v26  ;;  %v2336_v56 = vadd.f32 %v6312_v46, %v2335_v9 }
 0x527   :  { %v2259_v0 = vsub.f32 1.0, %v2258_v42  ;;  %v2358_v34 = vmul.f32 %v6353_v16, %v6300_v1  ;;  %v2245_v26 = vsel %vm6348_vm6, %v2244_v47, %v2240_v61  ;;  %v2268_v36 = vand.u32 2147483648, %v6288_v58 }
 0x528   :  { %3941 = vrcp.f32 %v6356_v10  ;;  %v2163_v8 = vpop.f32.mrf.mxu2  ;;  %v2340_v50 = vsel %vm2339_vm13, %v6312_v46, %v2336_v56  ;;  %v2366_v5 = vand.u32 2147483647, %v6300_v1  ;;  %v2368_v14 = vand.u32 2147483648, %v6300_v1 }
 0x529   :  { %v2260_v32 = vmul.f32 %v6340_v23, %v2259_v0  ;;  %v2359_v42 = vsub.f32 1.0, %v2358_v34  ;;  %v2288_v51 = vadd.f32 %v2163_v8, %v4773_v22  ;;  %v2198_v55 = vpop.f32.mrf.mxu3  ;;  %3943 = vtanh.f32 %v2291_v45 }
 0x52a   :  { %v2388_v52 = vadd.f32 %v2198_v55, %v4747_v30  ;;  %v2345_v37 = vsel %vm6365_vm10, %v2344_v44, %v2340_v50  ;;  %3945 = vtanh.f32 %v2391_v53  ;;  %vm2263_vm14 = vweird.f32 %v6340_v23 }
 0x52b   :  { %v2290_v9 = vmul.f32 %v2288_v51, %v2245_v26  ;;  %v2360_v0 = vmul.f32 %v6353_v16, %v2359_v42  ;;  %v2261_v61 = vadd.f32 %v6340_v23, %v2260_v32  ;;  %vm2277_vm15 = vweird.f32 %v6342_v12  ;;  %vm6413_vm4 = vmor %vm2262_vm11, %vm2263_vm14 }
 0x52c   :  { %v3940_v60 = vpop.eup %3939  ;;  %v2390_v34 = vmul.f32 %v2388_v52, %v2345_v37  ;;  %v2281_v45 = vand.u32 2147483647, %v6342_v12  ;;  %vm6404_vm1 = vcmp.eq.f32.partialorder %v2266_v28, 8.507059e+37  ;;  %vm2377_vm2 = vweird.f32 %v6356_v10 }
 0x52d   :  { %v2273_v46 = vmul.f32 %v3940_v60, %v6342_v12  ;;  %v2292_v47 = vadd.f32 %v2290_v9, %v6274_v29  ;;  %vm2278_vm3 = vweird.f32 %v3940_v60  ;;  %v2283_v29 = vand.u32 2147483648, %v6342_v12 }
 0x52e   :  { %v3942_v51 = vpop.eup %3941  ;;  %v2392_v15 = vadd.f32 %v2390_v34, %v6259_v25  ;;  %v2361_v44 = vadd.f32 %v6353_v16, %v2360_v0  ;;  %v2265_v28 = vsel %vm6413_vm4, %v6340_v23, %v2261_v61  ;;  %vm2363_vm5 = vweird.f32 %v6353_v16  ;;  %vm2279_vm9 = vmor %vm2277_vm15, %vm2278_vm3 }
 0x52f   :  { %v2274_v8 = vsub.f32 1.0, %v2273_v46  ;;  %v2373_v56 = vmul.f32 %v3942_v51, %v6356_v10  ;;  %3947 = vtanh.f32 %v2292_v47  ;;  %v3944_v32 = vpop.eup %3943  ;;  %vm6422_vm6 = vcmp.eq.f32.partialorder %v2281_v45, 8.507059e+37  ;;  %vm6430_vm7 = vmor %vm2362_vm12, %vm2363_vm5 }
 0x530   :  { %3949 = vtanh.f32 %v2392_v15  ;;  %v3946_v26 = vpop.eup %3945  ;;  %v2381_v58 = vand.u32 2147483647, %v6356_v10  ;;  %v2383_v52 = vand.u32 2147483648, %v6356_v10  ;;  %v2269_v9 = vor.u32 1.1754944e-38, %v2268_v36 }
 0x531   :  { %v2275_v42 = vmul.f32 %v3940_v60, %v2274_v8  ;;  %v2374_v55 = vsub.f32 1.0, %v2373_v56  ;;  %vm2378_vm8 = vweird.f32 %v3942_v51  ;;  %v2365_v34 = vsel %vm6430_vm7, %v6353_v16, %v2361_v44 }
 0x532   :  { %v2284_v46 = vor.u32 1.1754944e-38, %v2283_v29  ;;  %v2270_v36 = vsel %vm6404_vm1, %v2269_v9, %v2265_v28  ;;  %v2295_v1 = vsub.f32 %v6134_v59, %v3944_v32  ;;  %v2369_v47 = vor.u32 1.1754944e-38, %v2368_v14  ;;  %vm2379_vm11 = vmor %vm2377_vm2, %vm2378_vm8 }
 0x533   :  { %v2375_v0 = vmul.f32 %v3942_v51, %v2374_v55  ;;  %v2276_v23 = vadd.f32 %v3940_v60, %v2275_v42  ;;  %vm2367_vm10 = vcmp.eq.f32.partialorder %v2366_v5, 8.507059e+37  ;;  %v2395_v8 = vsub.f32 %v6137_v7, %v3946_v26 }
 0x534   :  { %v2384_v53 = vor.u32 1.1754944e-38, %v2383_v52  ;;  %v2370_v29 = vsel %vm2367_vm10, %v2369_v47, %v2365_v34  ;;  %vm2382_vm12 = vcmp.eq.f32.partialorder %v2381_v58, 8.507059e+37  ;;  %v2297_v44 = vmul.f32 %v2295_v1, %v2270_v36  ;;  %v7462_v36 = vld [vmem:[#allocation80_spill] sm:$0xff]  ;;  %v7463_v47 = vld [vmem:[#allocation13_spill] sm:$0xff] }
 0x535   :  { %v3948_v61 = vpop.eup %3947  ;;  %v2280_v15 = vsel %vm2279_vm9, %v3940_v60, %v2276_v23  ;;  %v2376_v45 = vadd.f32 %v3942_v51, %v2375_v0  ;;  %v2397_v55 = vmul.f32 %v2395_v8, %v2370_v29  ;;  %v508_v1 = vadd.f32 %v7462_v36, %v4737_v27 }
 0x536   :  { %v3950_v56 = vpop.eup %3949  ;;  %v2285_v16 = vsel %vm6422_vm6, %v2284_v46, %v2280_v15  ;;  %v2296_v12 = vsub.f32 %v6129_v17, %v3948_v61  ;;  %v6456_v9 = vadd.f32 %v3944_v32, %v2297_v44  ;;  %v7465_v44 = vld [vmem:[#allocation16_spill] sm:$0xff] }
 0x537   :  { %v2380_v25 = vsel %vm2379_vm11, %v3942_v51, %v2376_v45  ;;  %v2396_v60 = vsub.f32 %v6131_v20, %v3950_v56  ;;  %v6459_v10 = vadd.f32 %v3946_v26, %v2397_v55  ;;  %v7460_v51 = vld [vmem:[#allocation79_spill] sm:$0xff]  ;;  %v7461_v26 = vld [vmem:[#allocation10_spill] sm:$0xff] }
 0x538   :  { %v2298_v14 = vmul.f32 %v2296_v12, %v2285_v16  ;;  %v2385_v5 = vsel %vm2382_vm12, %v2384_v53, %v2380_v25  ;;  %v505_v32 = vadd.f32 %v7460_v51, %v4753_v33  ;;  %v258_v58 = vadd.f32 %v7461_v26, %v4735_v4 }
 0x539   :  { %v2398_v42 = vmul.f32 %v2396_v60, %v2385_v5 }
 0x53a   :  { %v6451_v28 = vadd.f32 %v3948_v61, %v2298_v14  ;;  %v261_v61 = vadd.f32 %v7463_v47, %v4725_v24  ;;  %v7464_v14 = vld [vmem:[#allocation81_spill] sm:$0xff] }
 0x53b   :  { %v6453_v50 = vadd.f32 %v3950_v56, %v2398_v42  ;;  %v511_v5 = vadd.f32 %v7464_v14, %v4780_v63  ;;  %v264_v42 = vadd.f32 %v7465_v44, %v4745_v35  ;;  %v7470_v14 = vld [vmem:[#allocation83_spill] sm:$0xff]  ;;  %v7471_v44 = vld [vmem:[#allocation84_spill] sm:$0xff] }
 0x53c   :  { %2419 = vmatpush.msrb.mxu0 %v6451_v28 }
 0x53d   :  { %2454 = vmatpush.msrb.mxu1 %v6453_v50 }
 0x53e   :  { %2420 = vmatpush.msrb.mxu0 %v6456_v9 }
 0x53f   :  { %2455 = vmatpush.msrb.mxu1 %v6459_v10  ;;  %3650 = vmatmul.msk.f32.vlgmr.msrb.gmra.mxu0 %vm132_vm0, %v6144_v62 }
 0x540   :  { %3656 = vmatmul.msk.f32.vlgmr.msrb.gmra.mxu1 %vm132_vm0, %v6151_v13 }
 0x547   :  { %3651 = vmatmul.msk.f32.gmra.mxu0 %vm132_vm0, %v6158_v40 }
 0x548   :  { %3657 = vmatmul.msk.f32.gmra.mxu1 %vm132_vm0, %v6165_v31 }
 0x54f   :  { %3652 = vmatmul.msk.f32.gmra.mxu0 %vm132_vm0, %v6172_v6 }
 0x550   :  { %3658 = vmatmul.msk.f32.gmra.mxu1 %vm132_vm0, %v6179_v19 }
 0x557   :  { %3653 = vmatmul.msk.f32.gmra.mxu0 %vm132_vm0, %v6186_v2 }
 0x558   :  { %3659 = vmatmul.msk.f32.gmra.mxu1 %vm132_vm0, %v6193_v54 }
 0x55f   :  { %3654 = vmatmul.msk.f32.gmra.mxu0 %vm132_vm0, %v6200_v3 }
 0x560   :  { %3660 = vmatmul.msk.f32.gmra.mxu1 %vm132_vm0, %v6207_v21 }
 0x567   :  { %3655 = vmatmul.msk.f32.gmra.mxu0 %vm132_vm0, %v6214_v18 }
 0x568   :  { %3661 = vmatmul.msk.f32.gmra.mxu1 %vm132_vm0, %v6221_v48 }
 0x5bc   :  { %v2422_v52 = vpop.f32.mrf.mxu0 }
 0x5bd   :  { %v2481_v37 = vadd.f32 %v2422_v52, %v505_v32  ;;  %v2457_v0 = vpop.f32.mrf.mxu1 }
 0x5be   :  { %v2581_v23 = vadd.f32 %v2457_v0, %v258_v58 }
 0x5bf   :  { %v3662_v34 = vmul.f32 -1.442695, %v2481_v37 }
 0x5c0   :  { %v3666_v46 = vmul.f32 -1.442695, %v2581_v23 }
 0x5c1   :  { %3951 = vpow2.f32 %v3662_v34 }
 0x5c2   :  { %3953 = vpow2.f32 %v3666_v46  ;;  %v7466_v46 = vld [vmem:[#allocation19_spill] sm:$0xff] }
 0x5c3   :  { %v267_v36 = vadd.f32 %v7466_v46, %v4733_v41 }
 0x5c4   :  { %v2425_v15 = vpop.f32.mrf.mxu0 }
 0x5c5   :  { %v2482_v45 = vadd.f32 %v2425_v15, %v508_v1  ;;  %v2460_v8 = vpop.f32.mrf.mxu1 }
 0x5c6   :  { %v2582_v56 = vadd.f32 %v2460_v8, %v261_v61  ;;  %v7467_v61 = vld [vmem:[#allocation22_spill] sm:$0xff] }
 0x5c7   :  { %v3952_v16 = vpop.eup %3951  ;;  %v3663_v12 = vmul.f32 -1.442695, %v2482_v45  ;;  %v6517_v15 = vadd.f32 %v7467_v61, %v7284_v57  ;;  %v7468_v45 = vld [vmem:[#allocation25_spill] sm:$0xff] }
 0x5c8   :  { %v3954_v53 = vpop.eup %3953  ;;  %v6495_v29 = vadd.f32 1.0, %v3952_v16  ;;  %v3667_v25 = vmul.f32 -1.442695, %v2582_v56  ;;  %v6521_v8 = vadd.f32 %v7468_v45, %v7285_v38  ;;  %v7469_v16 = vld [vmem:[#allocation82_spill] sm:$0xff] }
 0x5c9   :  { %v6497_v60 = vadd.f32 1.0, %v3954_v53  ;;  %3955 = vpow2.f32 %v3663_v12  ;;  %v514_v12 = vadd.f32 %v7469_v16, %v4762_v11 }
 0x5ca   :  { %3957 = vrcp.f32 %v6495_v29  ;;  %vm2496_vm13 = vweird.f32 %v6495_v29  ;;  %v2502_v46 = vand.u32 2147483648, %v6495_v29 }
 0x5cb   :  { %3959 = vrcp.f32 %v6497_v60  ;;  %vm2596_vm2 = vweird.f32 %v6497_v60 }
 0x5cc   :  { %3961 = vpow2.f32 %v3667_v25  ;;  %v2428_v55 = vpop.f32.mrf.mxu0 }
 0x5cd   :  { %v2521_v51 = vadd.f32 %v2428_v55, %v511_v5  ;;  %v2463_v32 = vpop.f32.mrf.mxu1  ;;  %v6532_v5 = vadd.f32 %v7470_v14, %v4794_v49 }
 0x5ce   :  { %v2621_v26 = vadd.f32 %v2463_v32, %v264_v42  ;;  %v6536_v42 = vadd.f32 %v7471_v44, %v4788_v39 }
 0x5cf   :  { %v3956_v58 = vpop.eup %3955  ;;  %v3664_v52 = vmul.f32 -1.442695, %v2521_v51 }
 0x5d0   :  { %v6505_v37 = vpop.eup %3957  ;;  %v6507_v0 = vadd.f32 1.0, %v3956_v58  ;;  %v3668_v23 = vmul.f32 -1.442695, %v2621_v26 }
 0x5d1   :  { %v6509_v34 = vpop.eup %3959  ;;  %3963 = vpow2.f32 %v3664_v52  ;;  %v2492_v1 = vmul.f32 %v6505_v37, %v6495_v29  ;;  %v2500_v52 = vand.u32 2147483647, %v6495_v29  ;;  %vm2497_vm14 = vweird.f32 %v6505_v37 }
 0x5d2   :  { %v3962_v47 = vpop.eup %3961  ;;  %3965 = vrcp.f32 %v6507_v0  ;;  %v2592_v56 = vmul.f32 %v6509_v34, %v6497_v60  ;;  %vm2597_vm15 = vweird.f32 %v6509_v34  ;;  %vm6566_vm3 = vmor %vm2496_vm13, %vm2497_vm14  ;;  %vm2511_vm6 = vweird.f32 %v6507_v0 }
 0x5d3   :  { %v6528_v53 = vadd.f32 1.0, %v3962_v47  ;;  %3967 = vpow2.f32 %v3668_v23  ;;  %v2493_v25 = vsub.f32 1.0, %v2492_v1  ;;  %v2600_v47 = vand.u32 2147483647, %v6497_v60  ;;  %vm6579_vm5 = vmor %vm2596_vm2, %vm2597_vm15 }
 0x5d4   :  { %v2431_v55 = vpop.f32.mrf.mxu0  ;;  %v2593_v51 = vsub.f32 1.0, %v2592_v56  ;;  %v2602_v56 = vand.u32 2147483648, %v6497_v60  ;;  %vm6554_vm1 = vcmp.eq.f32.partialorder %v2500_v52, 8.507059e+37 }
 0x5d5   :  { %3969 = vrcp.f32 %v6528_v53  ;;  %v2522_v32 = vadd.f32 %v2431_v55, %v514_v12  ;;  %v2466_v26 = vpop.f32.mrf.mxu1  ;;  %v2494_v58 = vmul.f32 %v6505_v37, %v2493_v25  ;;  %vm6570_vm4 = vcmp.eq.f32.partialorder %v2600_v47, 8.507059e+37 }
 0x5d6   :  { %v2622_v23 = vadd.f32 %v2466_v26, %v267_v36  ;;  %v2594_v1 = vmul.f32 %v6509_v34, %v2593_v51  ;;  %v2603_v29 = vor.u32 1.1754944e-38, %v2602_v56  ;;  %v2515_v56 = vand.u32 2147483647, %v6507_v0  ;;  %v7480_v26 = vld [vmem:[#allocation64_spill] sm:$0xff] }
 0x5d7   :  { %v3964_v61 = vpop.eup %3963  ;;  %v3665_v45 = vmul.f32 -1.442695, %v2522_v32  ;;  %v2495_v16 = vadd.f32 %v6505_v37, %v2494_v58  ;;  %v2503_v58 = vor.u32 1.1754944e-38, %v2502_v46  ;;  %vm2611_vm9 = vweird.f32 %v6528_v53 }
 0x5d8   :  { %v6548_v12 = vpop.eup %3965  ;;  %v6550_v25 = vadd.f32 1.0, %v3964_v61  ;;  %v3669_v14 = vmul.f32 -1.442695, %v2622_v23  ;;  %v2595_v36 = vadd.f32 %v6509_v34, %v2594_v1  ;;  %vm6610_vm8 = vcmp.eq.f32.partialorder %v2515_v56, 8.507059e+37 }
 0x5d9   :  { %v3968_v44 = vpop.eup %3967  ;;  %3971 = vpow2.f32 %v3665_v45  ;;  %v2507_v51 = vmul.f32 %v6548_v12, %v6507_v0  ;;  %v2499_v60 = vsel %vm6566_vm3, %v6505_v37, %v2495_v16  ;;  %vm2512_vm7 = vweird.f32 %v6548_v12 }
 0x5da   :  { %3973 = vrcp.f32 %v6550_v25  ;;  %v6562_v32 = vadd.f32 1.0, %v3968_v44  ;;  %v2599_v47 = vsel %vm6579_vm5, %v6509_v34, %v2595_v36  ;;  %v2517_v44 = vand.u32 2147483648, %v6507_v0  ;;  %vm6622_vm10 = vmor %vm2511_vm6, %vm2512_vm7 }
 0x5db   :  { %v6574_v23 = vpop.eup %3969  ;;  %3975 = vpow2.f32 %v3669_v14  ;;  %v2508_v61 = vsub.f32 1.0, %v2507_v51  ;;  %v2504_v51 = vsel %vm6554_vm1, %v2503_v58, %v2499_v60  ;;  %v2615_v36 = vand.u32 2147483647, %v6528_v53 }
 0x5dc   :  { %3977 = vrcp.f32 %v6562_v32  ;;  %v2434_v46 = vpop.f32.mrf.mxu0  ;;  %v2607_v45 = vmul.f32 %v6574_v23, %v6528_v53  ;;  %v2617_v60 = vand.u32 2147483648, %v6528_v53  ;;  %vm2612_vm11 = vweird.f32 %v6574_v23 }
 0x5dd   :  { %v2561_v37 = vadd.f32 %v2434_v46, %v4863_v43  ;;  %v2469_v16 = vpop.f32.mrf.mxu1  ;;  %v2509_v14 = vmul.f32 %v6548_v12, %v2508_v61  ;;  %v2604_v46 = vsel %vm6570_vm4, %v2603_v29, %v2599_v47  ;;  %v2518_v29 = vor.u32 1.1754944e-38, %v2517_v44  ;;  %vm2613_vm15 = vmor %vm2611_vm9, %vm2612_vm11 }
 0x5de   :  { %v2661_v1 = vadd.f32 %v2469_v16, %v7480_v26  ;;  %v2608_v34 = vsub.f32 1.0, %v2607_v45  ;;  %vm6627_vm12 = vcmp.eq.f32.partialorder %v2615_v36, 8.507059e+37  ;;  %vm2536_vm13 = vweird.f32 %v6550_v25 }
 0x5df   :  { %v3972_v59 = vpop.eup %3971  ;;  %v2563_v17 = vmul.f32 %v2561_v37, %v2504_v51  ;;  %v2510_v39 = vadd.f32 %v6548_v12, %v2509_v14  ;;  %vm2636_vm14 = vweird.f32 %v6562_v32  ;;  %v2640_v16 = vand.u32 2147483647, %v6562_v32 }
 0x5e0   :  { %v6602_v61 = vpop.eup %3973  ;;  %v6604_v43 = vadd.f32 1.0, %v3972_v59  ;;  %v2663_v55 = vmul.f32 %v2661_v1, %v2604_v46  ;;  %v2609_v58 = vmul.f32 %v6574_v23, %v2608_v34  ;;  %v2618_v46 = vor.u32 1.1754944e-38, %v2617_v60 }
 0x5e1   :  { %v3976_v45 = vpop.eup %3975  ;;  %v2532_v37 = vmul.f32 %v6602_v61, %v6550_v25  ;;  %v2565_v51 = vadd.f32 %v2563_v17, %v6532_v5  ;;  %v2514_v0 = vsel %vm6622_vm10, %v6548_v12, %v2510_v39  ;;  %v2540_v39 = vand.u32 2147483647, %v6550_v25 }
 0x5e2   :  { %v6615_v47 = vpop.eup %3977  ;;  %3979 = vrcp.f32 %v6604_v43  ;;  %v6618_v59 = vadd.f32 1.0, %v3976_v45  ;;  %v2665_v1 = vadd.f32 %v2663_v55, %v6517_v15  ;;  %v2610_v36 = vadd.f32 %v6574_v23, %v2609_v58 }
 0x5e3   :  { %v2533_v56 = vsub.f32 1.0, %v2532_v37  ;;  %v2632_v44 = vmul.f32 %v6615_v47, %v6562_v32  ;;  %v2519_v15 = vsel %vm6610_vm8, %v2518_v29, %v2514_v0  ;;  %v2542_v55 = vand.u32 2147483648, %v6550_v25 }
 0x5e4   :  { %3981 = vrcp.f32 %v6618_v59  ;;  %v2437_v34 = vpop.f32.mrf.mxu0  ;;  %v2614_v5 = vsel %vm2613_vm15, %v6574_v23, %v2610_v36  ;;  %v2642_v52 = vand.u32 2147483648, %v6562_v32  ;;  %vm2537_vm1 = vweird.f32 %v6602_v61 }
 0x5e5   :  { %v2534_v45 = vmul.f32 %v6602_v61, %v2533_v56  ;;  %v2633_v37 = vsub.f32 1.0, %v2632_v44  ;;  %v2562_v26 = vadd.f32 %v2437_v34, %v4773_v22  ;;  %v2472_v17 = vpop.f32.mrf.mxu1  ;;  %3983 = vtanh.f32 %v2565_v51  ;;  %vm6675_vm6 = vmor %vm2536_vm13, %vm2537_vm1 }
 0x5e6   :  { %v2662_v12 = vadd.f32 %v2472_v17, %v4747_v30  ;;  %v2619_v60 = vsel %vm6627_vm12, %v2618_v46, %v2614_v5  ;;  %3985 = vtanh.f32 %v2665_v1  ;;  %vm2551_vm2 = vweird.f32 %v6604_v43 }
 0x5e7   :  { %v2564_v58 = vmul.f32 %v2562_v26, %v2519_v15  ;;  %v2634_v56 = vmul.f32 %v6615_v47, %v2633_v37  ;;  %v2535_v0 = vadd.f32 %v6602_v61, %v2534_v45  ;;  %v2555_v51 = vand.u32 2147483647, %v6604_v43 }
 0x5e8   :  { %v3980_v53 = vpop.eup %3979  ;;  %v2664_v44 = vmul.f32 %v2662_v12, %v2619_v60  ;;  %vm6666_vm3 = vcmp.eq.f32.partialorder %v2540_v39, 8.507059e+37  ;;  %vm2651_vm4 = vweird.f32 %v6618_v59  ;;  %vm2637_vm7 = vweird.f32 %v6615_v47  ;;  %v7501_v60 = vld [vmem:[#allocation59_spill] sm:$0xff] }
 0x5e9   :  { %v2547_v23 = vmul.f32 %v3980_v53, %v6604_v43  ;;  %v2566_v29 = vadd.f32 %v2564_v58, %v6536_v42  ;;  %vm2552_vm5 = vweird.f32 %v3980_v53  ;;  %v2557_v42 = vand.u32 2147483648, %v6604_v43  ;;  %vm6692_vm9 = vmor %vm2636_vm14, %vm2637_vm7 }
 0x5ea   :  { %v3982_v26 = vpop.eup %3981  ;;  %v2666_v14 = vadd.f32 %v2664_v44, %v6521_v8  ;;  %v2635_v46 = vadd.f32 %v6615_v47, %v2634_v56  ;;  %v2539_v39 = vsel %vm6675_vm6, %v6602_v61, %v2535_v0  ;;  %vm6684_vm8 = vcmp.eq.f32.partialorder %v2555_v51, 8.507059e+37  ;;  %vm2553_vm11 = vmor %vm2551_vm2, %vm2552_vm5 }
 0x5eb   :  { %v2548_v34 = vsub.f32 1.0, %v2547_v23  ;;  %v2647_v36 = vmul.f32 %v3982_v26, %v6618_v59  ;;  %3987 = vtanh.f32 %v2566_v29  ;;  %v3984_v45 = vpop.eup %3983  ;;  %v2655_v25 = vand.u32 2147483647, %v6618_v59 }
 0x5ec   :  { %3989 = vtanh.f32 %v2666_v14  ;;  %v3986_v15 = vpop.eup %3985  ;;  %v2657_v12 = vand.u32 2147483648, %v6618_v59  ;;  %v2543_v58 = vor.u32 1.1754944e-38, %v2542_v55  ;;  %vm2652_vm10 = vweird.f32 %v3982_v26 }
 0x5ed   :  { %v2549_v37 = vmul.f32 %v3980_v53, %v2548_v34  ;;  %v2648_v17 = vsub.f32 1.0, %v2647_v36  ;;  %v2639_v44 = vsel %vm6692_vm9, %v6615_v47, %v2635_v46  ;;  %v2558_v23 = vor.u32 1.1754944e-38, %v2557_v42  ;;  %vm2653_vm13 = vmor %vm2651_vm4, %vm2652_vm10 }
 0x5ee   :  { %v2544_v55 = vsel %vm6666_vm3, %v2543_v58, %v2539_v39  ;;  %v2569_v32 = vsub.f32 %v6456_v9, %v3984_v45  ;;  %v2643_v29 = vor.u32 1.1754944e-38, %v2642_v52  ;;  %vm2641_vm12 = vcmp.eq.f32.partialorder %v2640_v16, 8.507059e+37 }
 0x5ef   :  { %v2649_v56 = vmul.f32 %v3982_v26, %v2648_v17  ;;  %v2550_v61 = vadd.f32 %v3980_v53, %v2549_v37  ;;  %v2669_v34 = vsub.f32 %v6459_v10, %v3986_v15  ;;  %v2658_v1 = vor.u32 1.1754944e-38, %v2657_v12  ;;  %v7500_v12 = vld [vmem:[#allocation51_spill] sm:$0xff] }
 0x5f0   :  { %v2644_v42 = vsel %vm2641_vm12, %v2643_v29, %v2639_v44  ;;  %vm2656_vm14 = vcmp.eq.f32.partialorder %v2655_v25, 8.507059e+37  ;;  %v2571_v46 = vmul.f32 %v2569_v32, %v2544_v55  ;;  %vm2999_vm15 = vcmask 261120   ;;  %v7499_v25 = vld [vmem:[#allocation46_spill] sm:$0xff]  ;;  %v7504_v44 = vld [vmem:[#allocation75_spill] sm:$0xff]  ;;  %v6761_v55 = vld [vmem:[%s7131_s6 + $0x8] sm:$0xff] }
 0x5f1   :  { %v3988_v0 = vpop.eup %3987  ;;  %v2554_v14 = vsel %vm2553_vm11, %v3980_v53, %v2550_v61  ;;  %v2650_v51 = vadd.f32 %v3982_v26, %v2649_v56  ;;  %v2671_v17 = vmul.f32 %v2669_v34, %v2644_v42  ;;  %v7502_v56 = vld [vmem:[#allocation50_spill] sm:$0xff]  ;;  %v7503_v61 = vld [vmem:[#allocation63_spill] sm:$0xff]  ;;  %v7506_v32 = vld [vmem:[#allocation77_spill] sm:$0xff] }
 0x5f2   :  { %v3990_v36 = vpop.eup %3989  ;;  %v2559_v47 = vsel %vm6684_vm8, %v2558_v23, %v2554_v14  ;;  %v2570_v43 = vsub.f32 %v6451_v28, %v3988_v0  ;;  %v6718_v58 = vadd.f32 %v3984_v45, %v2571_v46  ;;  %v6737_v45 = vld [vmem:[%s7131_s6] sm:$0xff]  ;;  %v7505_v23 = vld [vmem:[#allocation86_spill] sm:$0xff]  ;;  %v7510_v14 = vld [vmem:[#allocation35_spill] sm:$0xff] }
 0x5f3   :  { %v2654_v8 = vsel %vm2653_vm13, %v3982_v26, %v2650_v51  ;;  %v2670_v53 = vsub.f32 %v6453_v50, %v3990_v36  ;;  %v6722_v59 = vadd.f32 %v3986_v15, %v2671_v17  ;;  %v7495_v26 = vld [vmem:[#allocation66_spill] sm:$0xff]  ;;  %v7509_v29 = vld [vmem:[#allocation12_spill] sm:$0xff]  ;;  %v561_v51 = vadd.f32 %v7510_v14, %v4737_v27 }
 0x5f4   :  { %v2572_v52 = vmul.f32 %v2570_v43, %v2559_v47  ;;  %v2659_v16 = vsel %vm2656_vm14, %v2658_v1, %v2654_v8  ;;  %v7498_v15 = vld [vmem:[#allocation54_spill] sm:$0xff] }
 0x5f5   :  { %v2672_v37 = vmul.f32 %v2670_v53, %v2659_v16 }
 0x5f6   :  { %v6713_v39 = vadd.f32 %v3988_v0, %v2572_v52  ;;  %v208_v0 = vadd.f32 %v7509_v29, %v4725_v24  ;;  %v7511_v24 = vld [vmem:[#allocation15_spill] sm:$0xff]  ;;  %v7512_v52 = vld [vmem:[#allocation38_spill] sm:$0xff] }
 0x5f7   :  { %v6715_v5 = vadd.f32 %v3990_v36, %v2672_v37  ;;  %v211_v27 = vadd.f32 %v7511_v24, %v4745_v35  ;;  %v564_v16 = vadd.f32 %v7512_v52, %v4780_v63 }
 0x5f8   :  { %2693 = vmatpush.msrb.mxu2 %v6713_v39 }
 0x5f9   :  { %2728 = vmatpush.msrb.mxu3 %v6715_v5  ;;  %3041 = vmatpush.msra.mxu1 %v6715_v5 }
 0x5fa   :  { %2694 = vmatpush.msrb.mxu2 %v6718_v58 }
 0x5fb   :  { %2729 = vmatpush.msrb.mxu3 %v6722_v59  ;;  %3042 = vmatpush.msra.mxu1 %v6722_v59 }
 0x5fc   :  { %3670 = vmatmul.msk.f32.vlgmr.msrb.gmra.mxu2 %vm132_vm0, %v6144_v62  ;;  %3676 = vmatmul.msk.f32.vlgmr.msrb.gmra.mxu3 %vm132_vm0, %v6151_v13  ;;  %v7496_v62 = vld [vmem:[#allocation85_spill] sm:$0xff]  ;;  %v7497_v13 = vld [vmem:[#allocation47_spill] sm:$0xff] }
 0x5fd   :  { %3064 = vmatpush.msra.mxu2 %v6453_v50  ;;  %3087 = vmatpush.msra.mxu3 %v6131_v20 }
 0x5fe   :  { %3043 = vmatpush.msra.mxu1 %v7495_v26 }
 0x5ff   :  { %3065 = vmatpush.msra.mxu2 %v6459_v10  ;;  %3088 = vmatpush.msra.mxu3 %v6137_v7 }
 0x600   :  { %3044 = vmatpush.msra.mxu1 %v7496_v62 }
 0x601   :  { %3692 = vmatmul.msk.f32.vlgmr.msra.gmra.mxu1 %vm2999_vm15, %v6737_v45  ;;  %3066 = vmatpush.msra.mxu2 %v7497_v13 }
 0x602   :  { %3089 = vmatpush.msra.mxu3 %v7498_v15  ;;  %3133 = vmatpush.msrb.mxu1 %v7499_v25 }
 0x603   :  { %3067 = vmatpush.msra.mxu2 %v7500_v12 }
 0x604   :  { %3090 = vmatpush.msra.mxu3 %v7501_v60  ;;  %3134 = vmatpush.msrb.mxu1 %v7502_v56 }
 0x605   :  { %3156 = vmatpush.msrb.mxu2 %v7503_v61  ;;  %3677 = vmatmul.msk.f32.gmra.mxu3 %vm132_vm0, %v6165_v31 }
 0x606   :  { %3179 = vmatpush.msrb.mxu3 %v7504_v44  ;;  %3671 = vmatmul.msk.f32.gmra.mxu2 %vm132_vm0, %v6158_v40  ;;  %v7507_v40 = vld [vmem:[#allocation9_spill] sm:$0xff] }
 0x607   :  { %3135 = vmatpush.msrb.mxu1 %v6451_v28  ;;  %3157 = vmatpush.msrb.mxu2 %v7505_v23  ;;  %v205_v31 = vadd.f32 %v7507_v40, %v4735_v4 }
 0x608   :  { %3180 = vmatpush.msrb.mxu3 %v7506_v32 }
 0x609   :  { %3136 = vmatpush.msrb.mxu1 %v6456_v9  ;;  %3158 = vmatpush.msrb.mxu2 %v6713_v39 }
 0x60a   :  { %3693 = vmatmul.msk.f32.gmra.mxu1 %vm2999_vm15, %v6761_v55 }
 0x60b   :  { %3159 = vmatpush.msrb.mxu2 %v6718_v58 }
 0x60d   :  { %3678 = vmatmul.msk.f32.gmra.mxu3 %vm132_vm0, %v6179_v19 }
 0x60e   :  { %3672 = vmatmul.msk.f32.gmra.mxu2 %vm132_vm0, %v6172_v6  ;;  %v7508_v6 = vld [vmem:[#allocation32_spill] sm:$0xff] }
 0x60f   :  { %v558_v19 = vadd.f32 %v7508_v6, %v4753_v33 }
 0x612   :  { %3700 = vmatmul.msk.f32.vlgmr.msrb.gmra.mxu1 %vm2999_vm15, %v6737_v45 }
 0x615   :  { %3679 = vmatmul.msk.f32.gmra.mxu3 %vm132_vm0, %v6193_v54 }
 0x616   :  { %3673 = vmatmul.msk.f32.gmra.mxu2 %vm132_vm0, %v6186_v2 }
 0x61a   :  { %3701 = vmatmul.msk.f32.gmra.mxu1 %vm2999_vm15, %v6761_v55 }
 0x61d   :  { %3680 = vmatmul.msk.f32.gmra.mxu3 %vm132_vm0, %v6207_v21 }
 0x61e   :  { %3674 = vmatmul.msk.f32.gmra.mxu2 %vm132_vm0, %v6200_v3 }
 0x625   :  { %3681 = vmatmul.msk.f32.gmra.mxu3 %vm132_vm0, %v6221_v48 }
 0x626   :  { %3675 = vmatmul.msk.f32.gmra.mxu2 %vm132_vm0, %v6214_v18 }
 0x62d   :  { %3696 = vmatmul.msk.f32.vlgmr.msra.gmra.mxu3 %vm2999_vm15, %v6737_v45 }
 0x62e   :  { %3694 = vmatmul.msk.f32.vlgmr.msra.gmra.mxu2 %vm2999_vm15, %v6737_v45 }
 0x635   :  { %3697 = vmatmul.msk.f32.gmra.mxu3 %vm2999_vm15, %v6761_v55 }
 0x636   :  { %3695 = vmatmul.msk.f32.gmra.mxu2 %vm2999_vm15, %v6761_v55 }
 0x63e   :  { %3702 = vmatmul.msk.f32.vlgmr.msrb.gmra.mxu2 %vm2999_vm15, %v6737_v45 }
 0x646   :  { %3703 = vmatmul.msk.f32.gmra.mxu2 %vm2999_vm15, %v6761_v55 }
 0x67f   :  { %v2696_v2 = vpop.f32.mrf.mxu2  ;;  %v2731_v54 = vpop.f32.mrf.mxu3 }
 0x680   :  { %v2755_v3 = vadd.f32 %v2696_v2, %v558_v19  ;;  %v2855_v21 = vadd.f32 %v2731_v54, %v205_v31 }
 0x682   :  { %v3682_v18 = vmul.f32 -1.442695, %v2755_v3  ;;  %v3686_v48 = vmul.f32 -1.442695, %v2855_v21 }
 0x684   :  { %3991 = vpow2.f32 %v3682_v18 }
 0x685   :  { %3993 = vpow2.f32 %v3686_v48 }
 0x688   :  { %v2734_v36 = vpop.f32.mrf.mxu3 }
 0x689   :  { %v2699_v34 = vpop.f32.mrf.mxu2  ;;  %v2856_v43 = vadd.f32 %v2734_v36, %v208_v0  ;;  %v7513_v0 = vld [vmem:[#allocation18_spill] sm:$0xff] }
 0x68a   :  { %v3992_v4 = vpop.eup %3991  ;;  %v2756_v47 = vadd.f32 %v2699_v34, %v561_v51  ;;  %v214_v14 = vadd.f32 %v7513_v0, %v4733_v41  ;;  %v7514_v51 = vld [vmem:[#allocation41_spill] sm:$0xff]  ;;  %v7516_v41 = vld [vmem:[#allocation24_spill] sm:$0xff] }
 0x68b   :  { %v3994_v33 = vpop.eup %3993  ;;  %v6809_v1 = vadd.f32 1.0, %v3992_v4  ;;  %v3687_v53 = vmul.f32 -1.442695, %v2856_v43  ;;  %v567_v34 = vadd.f32 %v7514_v51, %v4762_v11  ;;  %v7517_v11 = vld [vmem:[#allocation44_spill] sm:$0xff] }
 0x68c   :  { %v6811_v42 = vadd.f32 1.0, %v3994_v33  ;;  %v3683_v8 = vmul.f32 -1.442695, %v2756_v47  ;;  %v6849_v52 = vadd.f32 %v7517_v11, %v4794_v49 }
 0x68d   :  { %3995 = vrcp.f32 %v6809_v1  ;;  %vm2770_vm2 = vweird.f32 %v6809_v1 }
 0x68e   :  { %3997 = vrcp.f32 %v6811_v42  ;;  %vm2870_vm4 = vweird.f32 %v6811_v42 }
 0x68f   :  { %3999 = vpow2.f32 %v3683_v8 }
 0x690   :  { %4001 = vpow2.f32 %v3687_v53  ;;  %v2737_v37 = vpop.f32.mrf.mxu3  ;;  %v7515_v53 = vld [vmem:[#allocation21_spill] sm:$0xff] }
 0x691   :  { %v2702_v46 = vpop.f32.mrf.mxu2  ;;  %v2895_v40 = vadd.f32 %v2737_v37, %v211_v27  ;;  %v6841_v24 = vadd.f32 %v7515_v53, %v7284_v57  ;;  %v6845_v27 = vadd.f32 %v7516_v41, %v7285_v38  ;;  %v7525_v53 = vld [vmem:[#allocation64_spill] sm:$0xff] }
 0x692   :  { %v2795_v17 = vadd.f32 %v2702_v46, %v564_v16  ;;  %v2774_v16 = vand.u32 2147483647, %v6809_v1 }
 0x693   :  { %v6819_v31 = vpop.eup %3995  ;;  %v3688_v2 = vmul.f32 -1.442695, %v2895_v40 }
 0x694   :  { %v6821_v6 = vpop.eup %3997  ;;  %v3684_v19 = vmul.f32 -1.442695, %v2795_v17  ;;  %v2766_v54 = vmul.f32 %v6819_v31, %v6809_v1  ;;  %vm2771_vm0 = vweird.f32 %v6819_v31  ;;  %v2776_v17 = vand.u32 2147483648, %v6809_v1 }
 0x695   :  { %v4000_v3 = vpop.eup %3999  ;;  %v2866_v35 = vmul.f32 %v6821_v6, %v6811_v42  ;;  %vm2871_vm1 = vweird.f32 %v6821_v6  ;;  %vm6870_vm3 = vmor %vm2770_vm2, %vm2771_vm0  ;;  %vm6879_vm5 = vcmp.eq.f32.partialorder %v2774_v16, 8.507059e+37 }
 0x696   :  { %v4002_v21 = vpop.eup %4001  ;;  %v6827_v63 = vadd.f32 1.0, %v4000_v3  ;;  %4003 = vpow2.f32 %v3684_v19  ;;  %v2767_v18 = vsub.f32 1.0, %v2766_v54  ;;  %v2876_v3 = vand.u32 2147483648, %v6811_v42  ;;  %vm6885_vm6 = vmor %vm2870_vm4, %vm2871_vm1 }
 0x697   :  { %v6829_v48 = vadd.f32 1.0, %v4002_v21  ;;  %4005 = vpow2.f32 %v3688_v2  ;;  %v2867_v29 = vsub.f32 1.0, %v2866_v35  ;;  %v2777_v0 = vor.u32 1.1754944e-38, %v2776_v17 }
 0x698   :  { %4007 = vrcp.f32 %v6827_v63  ;;  %v2740_v4 = vpop.f32.mrf.mxu3  ;;  %v2768_v47 = vmul.f32 %v6819_v31, %v2767_v18  ;;  %v2874_v18 = vand.u32 2147483647, %v6811_v42  ;;  %vm2785_vm10 = vweird.f32 %v6827_v63 }
 0x699   :  { %4009 = vrcp.f32 %v6829_v48  ;;  %v2705_v36 = vpop.f32.mrf.mxu2  ;;  %v2868_v43 = vmul.f32 %v6821_v6, %v2867_v29  ;;  %v2896_v8 = vadd.f32 %v2740_v4, %v214_v14  ;;  %v2891_v1 = vand.u32 2147483648, %v6829_v48 }
 0x69a   :  { %v2796_v33 = vadd.f32 %v2705_v36, %v567_v34  ;;  %v2769_v38 = vadd.f32 %v6819_v31, %v2768_v47  ;;  %vm2875_vm7 = vcmp.eq.f32.partialorder %v2874_v18, 8.507059e+37  ;;  %vm2885_vm12 = vweird.f32 %v6829_v48 }
 0x69b   :  { %v3689_v19 = vmul.f32 -1.442695, %v2896_v8  ;;  %v2869_v2 = vadd.f32 %v6821_v6, %v2868_v43  ;;  %v7524_v43 = vld [vmem:[#allocation70_spill] sm:$0xff]  ;;  %v2877_v8 = vor.u32 1.1754944e-38, %v2876_v3 }
 0x69c   :  { %v4004_v46 = vpop.eup %4003  ;;  %v3685_v37 = vmul.f32 -1.442695, %v2796_v33  ;;  %v2773_v34 = vsel %vm6870_vm3, %v6819_v31, %v2769_v38 }
 0x69d   :  { %v4006_v57 = vpop.eup %4005  ;;  %v6855_v40 = vadd.f32 1.0, %v4004_v46  ;;  %v2873_v4 = vsel %vm6885_vm6, %v6821_v6, %v2869_v2  ;;  %v2789_v46 = vand.u32 2147483647, %v6827_v63  ;;  %v2778_v17 = vsel %vm6879_vm5, %v2777_v0, %v2773_v34  ;;  %v7529_v34 = vld [vmem:[#allocation48_spill] sm:$0xff] }
 0x69e   :  { %v6859_v49 = vpop.eup %4007  ;;  %v6861_v54 = vadd.f32 1.0, %v4006_v57  ;;  %4011 = vpow2.f32 %v3685_v37  ;;  %v2791_v37 = vand.u32 2147483648, %v6827_v63  ;;  %v2878_v57 = vsel %vm2875_vm7, %v2877_v8, %v2873_v4 }
 0x69f   :  { %v6865_v35 = vpop.eup %4009  ;;  %4013 = vrcp.f32 %v6855_v40  ;;  %v2781_v29 = vmul.f32 %v6859_v49, %v6827_v63  ;;  %vm2786_vm8 = vweird.f32 %v6859_v49  ;;  %v2889_v63 = vand.u32 2147483647, %v6829_v48 }
 0x6a0   :  { %4015 = vrcp.f32 %v6861_v54  ;;  %v2881_v51 = vmul.f32 %v6865_v35, %v6829_v48  ;;  %v2743_v36 = vpop.f32.mrf.mxu3  ;;  %vm2886_vm9 = vweird.f32 %v6865_v35  ;;  %vm6922_vm11 = vmor %vm2785_vm10, %vm2786_vm8  ;;  %vm2790_vm13 = vcmp.eq.f32.partialorder %v2789_v46, 8.507059e+37 }
 0x6a1   :  { %4017 = vpow2.f32 %v3689_v19  ;;  %v2708_v42 = vpop.f32.mrf.mxu2  ;;  %v2782_v47 = vsub.f32 1.0, %v2781_v29  ;;  %v2935_v41 = vadd.f32 %v2743_v36, %v7525_v53  ;;  %vm6937_vm14 = vmor %vm2885_vm12, %vm2886_vm9  ;;  %v2792_v53 = vor.u32 1.1754944e-38, %v2791_v37 }
 0x6a2   :  { %v2835_v33 = vadd.f32 %v2708_v42, %v7524_v43  ;;  %v2882_v11 = vsub.f32 1.0, %v2881_v51  ;;  %v7528_v42 = vld [vmem:[#allocation68_spill] sm:$0xff]  ;;  %v2892_v46 = vor.u32 1.1754944e-38, %v2891_v1  ;;  %vm2890_vm0 = vcmp.eq.f32.partialorder %v2889_v63, 8.507059e+37 }
 0x6a3   :  { %v2783_v16 = vmul.f32 %v6859_v49, %v2782_v47  ;;  %v2937_v18 = vmul.f32 %v2935_v41, %v2878_v57  ;;  %v573_v36 = vadd.f32 %v7529_v34, %v7528_v42  ;;  %vm2910_vm1 = vweird.f32 %v6861_v54  ;;  %v7541_v34 = vld [vmem:[#allocation74_spill] sm:$0xff] }
 0x6a4   :  { %v4012_v31 = vpop.eup %4011  ;;  %v2883_v6 = vmul.f32 %v6865_v35, %v2882_v11  ;;  %v2837_v2 = vmul.f32 %v2835_v33, %v2778_v17  ;;  %v2914_v37 = vand.u32 2147483647, %v6861_v54  ;;  %v2916_v43 = vand.u32 2147483648, %v6861_v54 }
 0x6a5   :  { %v6906_v19 = vpop.eup %4013  ;;  %v6908_v38 = vadd.f32 1.0, %v4012_v31  ;;  %v2784_v3 = vadd.f32 %v6859_v49, %v2783_v16 }
 0x6a6   :  { %v6912_v21 = vpop.eup %4015  ;;  %v2884_v29 = vadd.f32 %v6865_v35, %v2883_v6  ;;  %v2806_v33 = vmul.f32 %v6906_v19, %v6855_v40  ;;  %v2839_v48 = vadd.f32 %v2837_v2, %v6849_v52  ;;  %vm6984_vm10 = vcmp.eq.f32.partialorder %v2914_v37, 8.507059e+37 }
 0x6a7   :  { %v4018_v0 = vpop.eup %4017  ;;  %v2906_v14 = vmul.f32 %v6912_v21, %v6861_v54  ;;  %4019 = vrcp.f32 %v6908_v38  ;;  %v2788_v47 = vsel %vm6922_vm11, %v6859_v49, %v2784_v3  ;;  %v2939_v49 = vadd.f32 %v2937_v18, %v6841_v24 }
 0x6a8   :  { %v6930_v4 = vadd.f32 1.0, %v4018_v0  ;;  %v2746_v41 = vpop.f32.mrf.mxu3  ;;  %v2888_v11 = vsel %vm6937_vm14, %v6865_v35, %v2884_v29  ;;  %v2793_v17 = vsel %vm2790_vm13, %v2792_v53, %v2788_v47  ;;  %v2807_v35 = vsub.f32 1.0, %v2806_v33 }
 0x6a9   :  { %v2711_v8 = vpop.f32.mrf.mxu2  ;;  %v2907_v31 = vsub.f32 1.0, %v2906_v14  ;;  %v2936_v57 = vadd.f32 %v2746_v41, %v4747_v30  ;;  %v2893_v6 = vsel %vm2890_vm0, %v2892_v46, %v2888_v11  ;;  %v2829_v1 = vand.u32 2147483647, %v6908_v38  ;;  %v3046_v41 = vpop.f32.mrf.mxu1 }
 0x6aa   :  { %4021 = vrcp.f32 %v6930_v4  ;;  %v2836_v16 = vadd.f32 %v2711_v8, %v4773_v22  ;;  %v2929_v24 = vand.u32 2147483647, %v6930_v4  ;;  %v2931_v29 = vand.u32 2147483648, %v6930_v4  ;;  %v7545_v8 = vld [vmem:[#allocation65_spill] sm:$0xff] }
 0x6ab   :  { %4023 = vtanh.f32 %v2839_v48  ;;  %v2938_v3 = vmul.f32 %v2936_v57, %v2893_v6  ;;  %vm2925_vm2 = vweird.f32 %v6930_v4  ;;  %v2831_v0 = vand.u32 2147483648, %v6908_v38 }
 0x6ac   :  { %v2838_v52 = vmul.f32 %v2836_v16, %v2793_v17  ;;  %4025 = vtanh.f32 %v2939_v49  ;;  %v2908_v14 = vmul.f32 %v6912_v21, %v2907_v31  ;;  %vm2825_vm3 = vweird.f32 %v6908_v38 }
 0x6ad   :  { %v4020_v2 = vpop.eup %4019  ;;  %v2940_v30 = vadd.f32 %v2938_v3, %v6845_v27  ;;  %vm2911_vm4 = vweird.f32 %v6912_v21  ;;  %vm6964_vm5 = vcmp.eq.f32.partialorder %v2929_v24, 8.507059e+37  ;;  %vm6970_vm7 = vcmp.eq.f32.partialorder %v2829_v1, 8.507059e+37 }
 0x6ae   :  { %v2821_v22 = vmul.f32 %v4020_v2, %v6908_v38  ;;  %v2840_v18 = vadd.f32 %v2838_v52, %v573_v36  ;;  %v2909_v27 = vadd.f32 %v6912_v21, %v2908_v14  ;;  %v2932_v36 = vor.u32 1.1754944e-38, %v2931_v29  ;;  %vm6976_vm8 = vmor %vm2910_vm1, %vm2911_vm4 }
 0x6af   :  { %vm2826_vm6 = vweird.f32 %v4020_v2  ;;  %v2832_v53 = vor.u32 1.1754944e-38, %v2831_v0  ;;  %v2808_v11 = vmul.f32 %v6906_v19, %v2807_v35  ;;  %v2917_v54 = vor.u32 1.1754944e-38, %v2916_v43 }
 0x6b0   :  { %v4022_v51 = vpop.eup %4021  ;;  %v2822_v63 = vsub.f32 1.0, %v2821_v22  ;;  %4027 = vtanh.f32 %v2840_v18  ;;  %v2913_v46 = vsel %vm6976_vm8, %v6912_v21, %v2909_v27  ;;  %vm2827_vm11 = vmor %vm2825_vm3, %vm2826_vm6  ;;  %vm2811_vm12 = vweird.f32 %v6906_v19 }
 0x6b1   :  { %v2921_v42 = vmul.f32 %v4022_v51, %v6930_v4  ;;  %4029 = vtanh.f32 %v2940_v30  ;;  %v4024_v33 = vpop.eup %4023  ;;  %vm2926_vm9 = vweird.f32 %v4022_v51  ;;  %v2809_v57 = vadd.f32 %v6906_v19, %v2808_v11  ;;  %v3069_v11 = vpop.f32.mrf.mxu2 }
 0x6b2   :  { %v2823_v47 = vmul.f32 %v4020_v2, %v2822_v63  ;;  %v4026_v49 = vpop.eup %4025  ;;  %vm2810_vm13 = vweird.f32 %v6855_v40  ;;  %v2814_v35 = vand.u32 2147483647, %v6855_v40  ;;  %v2816_v21 = vand.u32 2147483648, %v6855_v40  ;;  %vm2927_vm0 = vmor %vm2925_vm2, %vm2926_vm9 }
 0x6b3   :  { %v2922_v48 = vsub.f32 1.0, %v2921_v42  ;;  %v2943_v22 = vsub.f32 %v6722_v59, %v4026_v49  ;;  %vm2812_vm14 = vmor %vm2810_vm13, %vm2811_vm12  ;;  %v2918_v18 = vsel %vm6984_vm10, %v2917_v54, %v2913_v46  ;;  %v2843_v0 = vsub.f32 %v6718_v58, %v4024_v33 }
 0x6b4   :  { %v2824_v16 = vadd.f32 %v4020_v2, %v2823_v47  ;;  %v2813_v40 = vsel %vm2812_vm14, %v6906_v19, %v2809_v57  ;;  %v2817_v29 = vor.u32 1.1754944e-38, %v2816_v21  ;;  %vm2815_vm1 = vcmp.eq.f32.partialorder %v2814_v35, 8.507059e+37 }
 0x6b5   :  { %v2923_v17 = vmul.f32 %v4022_v51, %v2922_v48  ;;  %v2945_v27 = vmul.f32 %v2943_v22, %v2918_v18  ;;  %v7544_v48 = vld [vmem:[#allocation62_spill] sm:$0xff] }
 0x6b6   :  { %v4028_v52 = vpop.eup %4027  ;;  %v2828_v6 = vsel %vm2827_vm11, %v4020_v2, %v2824_v16  ;;  %v2818_v63 = vsel %vm2815_vm1, %v2817_v29, %v2813_v40  ;;  %v3049_v16 = vpop.f32.mrf.mxu1 }
 0x6b7   :  { %v4030_v37 = vpop.eup %4029  ;;  %v2924_v3 = vadd.f32 %v4022_v51, %v2923_v17  ;;  %v2833_v24 = vsel %vm6970_vm7, %v2832_v53, %v2828_v6  ;;  %v2844_v38 = vsub.f32 %v6713_v39, %v4028_v52  ;;  %v2845_v47 = vmul.f32 %v2843_v0, %v2818_v63  ;;  %v7546_v53 = vld [vmem:[#allocation56_spill] sm:$0xff]  ;;  %v7039_v17 = vpop.permute.xlu2 %2996 }
 0x6b8   :  { %v2944_v2 = vsub.f32 %v6715_v5, %v4030_v37  ;;  %v3050_v54 = vadd.f32 %v3049_v16, %v7039_v17 }
 0x6b9   :  { %v2928_v30 = vsel %vm2927_vm0, %v4022_v51, %v2924_v3  ;;  %v2846_v1 = vmul.f32 %v2844_v38, %v2833_v24  ;;  %v7014_v19 = vadd.f32 %v4024_v33, %v2845_v47  ;;  %v7017_v51 = vadd.f32 %v4026_v49, %v2945_v27  ;;  %v7543_v33 = vld [vmem:[#allocation53_spill] sm:$0xff]  ;;  %v3092_v49 = vpop.f32.mrf.mxu3  ;;  %v3072_v46 = vpop.f32.mrf.mxu2 }
 0x6ba   :  { %v2933_v14 = vsel %vm6964_vm5, %v2932_v36, %v2928_v30  ;;  %v7542_v36 = vld [vmem:[#allocation76_spill] sm:$0xff]  ;;  %4031 = vtanh.f32 %v3050_v54 }
 0x6bb   :  { %v2946_v42 = vmul.f32 %v2944_v2, %v2933_v14  ;;  %v7009_v4 = vadd.f32 %v4028_v52, %v2846_v1  ;;  %v7042_v52 = vpop.permute.xlu1 %2991  ;;  %v7054_v14 = vpop.permute.xlu0 %3210 }
 0x6bc   :  { %v3047_v6 = vadd.f32 %v3046_v41, %v7042_v52  ;;  %v3093_v2 = vadd.f32 %v3092_v49, %v7042_v52 }
 0x6bd   :  { %7540 = vst [vmem:[#allocation58_spill] sm:$0xff] %v7009_v4  ;;  %v7011_v43 = vadd.f32 %v4030_v37, %v2946_v42  ;;  %3181 = vmatpush.msrb.mxu3 %v7009_v4  ;;  %v3070_v37 = vadd.f32 %v3069_v11, %v7042_v52 }
 0x6be   :  { %v3138_v57 = vpop.f32.mrf.mxu1  ;;  %4033 = vtanh.f32 %v3047_v6 }
 0x6bf   :  { %3018 = vmatpush.msra.mxu0 %v7011_v43  ;;  %3182 = vmatpush.msrb.mxu3 %v7014_v19  ;;  %v3139_v27 = vadd.f32 %v3138_v57, %v7042_v52 }
 0x6c0   :  { %3704 = vmatmul.msk.f32.vlgmr.msrb.gmra.mxu3 %vm2999_vm15, %v6737_v45  ;;  %v4032_v24 = vpop.eup %4031 }
 0x6c1   :  { %3019 = vmatpush.msra.mxu0 %v7017_v51  ;;  %v3095_v31 = vpop.f32.mrf.mxu3  ;;  %v3161_v35 = vpop.f32.mrf.mxu2 }
 0x6c2   :  { %v3096_v3 = vadd.f32 %v3095_v31, %v7039_v17  ;;  %v3162_v16 = vadd.f32 %v3161_v35, %v7042_v52 }
 0x6c3   :  { %3020 = vmatpush.msra.mxu0 %v7541_v34  ;;  %v7050_v40 = vpop.permute.xlu1 %3215 }
 0x6c4   :  { %v4034_v18 = vpop.eup %4033  ;;  %v3227_v29 = vmul.f32 %v4032_v24, %v7050_v40 }
 0x6c5   :  { %3021 = vmatpush.msra.mxu0 %v7542_v36  ;;  %v3219_v42 = vmul.f32 %v4034_v18, %v7054_v14 }
 0x6c6   :  { %3690 = vmatmul.msk.f32.vlgmr.msra.gmra.mxu0 %vm2999_vm15, %v6737_v45  ;;  %v3141_v38 = vpop.f32.mrf.mxu1 }
 0x6c7   :  { %3110 = vmatpush.msrb.mxu0 %v7543_v33  ;;  %v3142_v30 = vadd.f32 %v3141_v38, %v7039_v17  ;;  %v3241_v49 = vadd.f32 %v3227_v29, %v3219_v42 }
 0x6c8   :  { %3705 = vmatmul.msk.f32.gmra.mxu3 %vm2999_vm15, %v6761_v55 }
 0x6c9   :  { %3111 = vmatpush.msrb.mxu0 %v7544_v48  ;;  %v3164_v1 = vpop.f32.mrf.mxu2 }
 0x6ca   :  { %v3165_v11 = vadd.f32 %v3164_v1, %v7039_v17 }
 0x6cb   :  { %3112 = vmatpush.msrb.mxu0 %v7545_v8 }
 0x6cd   :  { %3113 = vmatpush.msrb.mxu0 %v7546_v53 }
 0x6ce   :  { %3691 = vmatmul.msk.f32.gmra.mxu0 %vm2999_vm15, %v6761_v55 }
 0x6d6   :  { %3698 = vmatmul.msk.f32.vlgmr.msrb.gmra.mxu0 %vm2999_vm15, %v6737_v45 }
 0x6de   :  { %3699 = vmatmul.msk.f32.gmra.mxu0 %vm2999_vm15, %v6761_v55  ;;  %v3073_v55 = vadd.f32 %v3072_v46, %v7039_v17 }
 0x6e0   :  { %4035 = vtanh.f32 %v3073_v55 }
 0x6e1   :  { %4037 = vtanh.f32 %v3070_v37  ;;  %v3242_v37 = vrot.slane %v3241_v49, 4 }
 0x6e2   :  { %4039 = vtanh.f32 %v3096_v3 }
 0x6e3   :  { %v3243_v1 = vadd.f32 %v3242_v37, %v3241_v49 }
 0x6e6   :  { %v4036_v41 = vpop.eup %4035 }
 0x6e7   :  { %v4038_v46 = vpop.eup %4037  ;;  %v3228_v6 = vmul.f32 %v4036_v41, %v7050_v40 }
 0x6e8   :  { %v4040_v54 = vpop.eup %4039  ;;  %v3220_v3 = vmul.f32 %v4038_v46, %v7054_v14 }
 0x6e9   :  { %v3229_v35 = vmul.f32 %v4040_v54, %v7050_v40  ;;  %v3244_v54 = vrot.slane %v3243_v1, 2 }
 0x743   :  { %v3023_v45 = vpop.f32.mrf.mxu0  ;;  %v3184_v21 = vpop.f32.mrf.mxu3 }
 0x744   :  { %v3024_v22 = vadd.f32 %v3023_v45, %v7042_v52  ;;  %v3185_v57 = vadd.f32 %v3184_v21, %v7042_v52 }
 0x746   :  { %4041 = vtanh.f32 %v3024_v22 }
 0x747   :  { %4043 = vtanh.f32 %v3093_v2  ;;  %v3248_v2 = vadd.f32 %v3228_v6, %v3220_v3 }
 0x74b   :  { %v3026_v0 = vpop.f32.mrf.mxu0  ;;  %v3187_v47 = vpop.f32.mrf.mxu3 }
 0x74c   :  { %v3027_v63 = vadd.f32 %v3026_v0, %v7039_v17  ;;  %v3188_v31 = vadd.f32 %v3187_v47, %v7039_v17  ;;  %v4042_v45 = vpop.eup %4041 }
 0x74d   :  { %v4044_v55 = vpop.eup %4043  ;;  %v3218_v18 = vmul.f32 %v4042_v45, %v7054_v14 }
 0x74e   :  { %4045 = vtanh.f32 %v3027_v63 }
 0x74f   :  { %4047 = vtanh.f32 %v3142_v30  ;;  %v3221_v30 = vmul.f32 %v4044_v55, %v7054_v14 }
 0x750   :  { %4049 = vtanh.f32 %v3139_v27 }
 0x751   :  { %4051 = vtanh.f32 %v3165_v11  ;;  %v3255_v27 = vadd.f32 %v3229_v35, %v3221_v30  ;;  %v3249_v11 = vrot.slane %v3248_v2, 4  ;;  %v3245_v30 = vadd.f32 %v3244_v54, %v3243_v1 }
 0x752   :  { %4053 = vtanh.f32 %v3162_v16 }
 0x753   :  { %v3115_v24 = vpop.f32.mrf.mxu0  ;;  %4055 = vtanh.f32 %v3188_v31  ;;  %v3256_v37 = vrot.slane %v3255_v27, 4 }
 0x754   :  { %v4046_v38 = vpop.eup %4045  ;;  %4057 = vtanh.f32 %v3185_v57  ;;  %v3116_v47 = vadd.f32 %v3115_v24, %v7042_v52 }
 0x755   :  { %v4048_v22 = vpop.eup %4047  ;;  %v3226_v29 = vmul.f32 %v4046_v38, %v7050_v40  ;;  %v3250_v38 = vadd.f32 %v3249_v11, %v3248_v2  ;;  %v3246_v2 = vrot.slane %v3245_v30, 1 }
 0x756   :  { %v4050_v21 = vpop.eup %4049  ;;  %v3231_v42 = vmul.f32 %v4048_v22, %v7050_v40  ;;  %4059 = vtanh.f32 %v3116_v47 }
 0x757   :  { %v3234_v0 = vadd.f32 %v3226_v29, %v3218_v18  ;;  %v4052_v63 = vpop.eup %4051  ;;  %v3223_v31 = vmul.f32 %v4050_v21, %v7054_v14  ;;  %v3247_v54 = vadd.f32 %v3246_v2, %v3245_v30 }
 0x758   :  { %v4054_v41 = vpop.eup %4053  ;;  %v3232_v6 = vmul.f32 %v4052_v63, %v7050_v40  ;;  %v3251_v63 = vrot.slane %v3250_v38, 2 }
 0x759   :  { %v3235_v16 = vrot.slane %v3234_v0, 4  ;;  %v4056_v46 = vpop.eup %4055  ;;  %v3269_v49 = vadd.f32 %v3231_v42, %v3223_v31  ;;  %v3224_v52 = vmul.f32 %v4054_v41, %v7054_v14 }
 0x75a   :  { %v4058_v55 = vpop.eup %4057  ;;  %v3233_v35 = vmul.f32 %v4056_v46, %v7050_v40 }
 0x75b   :  { %v3236_v45 = vadd.f32 %v3235_v16, %v3234_v0  ;;  %v3118_v57 = vpop.f32.mrf.mxu0  ;;  %v3276_v22 = vadd.f32 %v3232_v6, %v3224_v52  ;;  %v3225_v18 = vmul.f32 %v4058_v55, %v7054_v14  ;;  %v3270_v21 = vrot.slane %v3269_v49, 4 }
 0x75c   :  { %v3119_v3 = vadd.f32 %v3118_v57, %v7039_v17  ;;  %v3257_v0 = vadd.f32 %v3256_v37, %v3255_v27  ;;  %v4060_v16 = vpop.eup %4059  ;;  %v3252_v57 = vadd.f32 %v3251_v63, %v3250_v38 }
 0x75d   :  { %v3237_v24 = vrot.slane %v3236_v45, 2  ;;  %v3283_v42 = vadd.f32 %v3233_v35, %v3225_v18  ;;  %v3277_v47 = vrot.slane %v3276_v22, 4  ;;  %v3271_v11 = vadd.f32 %v3270_v21, %v3269_v49 }
 0x75e   :  { %4061 = vtanh.f32 %v3119_v3  ;;  %v3258_v41 = vrot.slane %v3257_v0, 2  ;;  %v3222_v46 = vmul.f32 %v4060_v16, %v7054_v14  ;;  %v3253_v37 = vrot.slane %v3252_v57, 1 }
 0x75f   :  { %v3238_v29 = vadd.f32 %v3237_v24, %v3236_v45  ;;  %v3284_v44 = vrot.slane %v3283_v42, 4  ;;  %v3278_v55 = vadd.f32 %v3277_v47, %v3276_v22  ;;  %v3272_v27 = vrot.slane %v3271_v11, 2 }
 0x760   :  { %v3259_v3 = vadd.f32 %v3258_v41, %v3257_v0  ;;  %v3254_v21 = vadd.f32 %v3253_v37, %v3252_v57 }
 0x761   :  { %v3239_v31 = vrot.slane %v3238_v29, 1  ;;  %v3285_v52 = vadd.f32 %v3284_v44, %v3283_v42  ;;  %v3279_v35 = vrot.slane %v3278_v55, 2  ;;  %v3273_v49 = vadd.f32 %v3272_v27, %v3271_v11 }
 0x762   :  { %v3260_v38 = vrot.slane %v3259_v3, 1 }
 0x763   :  { %v3240_v45 = vadd.f32 %v3239_v31, %v3238_v29  ;;  %v3286_v63 = vrot.slane %v3285_v52, 2  ;;  %v3280_v14 = vadd.f32 %v3279_v35, %v3278_v55  ;;  %v3274_v22 = vrot.slane %v3273_v49, 1 }
 0x764   :  { %v4062_v17 = vpop.eup %4061  ;;  %v3261_v29 = vadd.f32 %v3260_v38, %v3259_v3 }
 0x765   :  { %v3230_v6 = vmul.f32 %v4062_v17, %v7050_v40  ;;  %v3290_v18 = vmax.f32 %v3240_v45, %v3247_v54  ;;  %v3287_v47 = vadd.f32 %v3286_v63, %v3285_v52  ;;  %v3281_v31 = vrot.slane %v3280_v14, 1 }
 0x766   :  { %v3275_v44 = vadd.f32 %v3274_v22, %v3273_v49 }
 0x767   :  { %v3262_v1 = vadd.f32 %v3230_v6, %v3222_v46  ;;  %v3291_v16 = vmax.f32 %v3290_v18, %v3254_v21  ;;  %v3288_v42 = vrot.slane %v3287_v47, 1  ;;  %v3282_v41 = vadd.f32 %v3281_v31, %v3280_v14 }
 0x769   :  { %v3263_v24 = vrot.slane %v3262_v1, 4  ;;  %v3292_v0 = vmax.f32 %v3291_v16, %v3261_v29  ;;  %v3289_v11 = vadd.f32 %v3288_v42, %v3287_v47 }
 0x76b   :  { %v3264_v32 = vadd.f32 %v3263_v24, %v3262_v1 }
 0x76d   :  { %v3265_v4 = vrot.slane %v3264_v32, 2 }
 0x76f   :  { %v3266_v40 = vadd.f32 %v3265_v4, %v3264_v32 }
 0x771   :  { %v3267_v30 = vrot.slane %v3266_v40, 1 }
 0x773   :  { %v3268_v17 = vadd.f32 %v3267_v30, %v3266_v40 }
 0x775   :  { %v3293_v2 = vmax.f32 %v3292_v0, %v3268_v17 }
 0x777   :  { %v3294_v46 = vmax.f32 %v3293_v2, %v3275_v44 }
 0x779   :  { %v3295_v57 = vmax.f32 %v3294_v46, %v3282_v41 }
 0x77b   :  { %v3296_v6 = vmax.f32 %v3295_v57, %v3289_v11 }
 0x77d   :  { %v3297_v1 = vsub.f32 %v3240_v45, %v3296_v6  ;;  %v3313_v27 = vsub.f32 %v3247_v54, %v3296_v6  ;;  %v3329_v55 = vsub.f32 %v3254_v21, %v3296_v6  ;;  %v3345_v37 = vsub.f32 %v3261_v29, %v3296_v6 }
 0x77e   :  { %v3361_v3 = vsub.f32 %v3268_v17, %v3296_v6  ;;  %v3377_v18 = vsub.f32 %v3275_v44, %v3296_v6  ;;  %v3393_v63 = vsub.f32 %v3282_v41, %v3296_v6  ;;  %v3409_v2 = vsub.f32 %v3289_v11, %v3296_v6 }
 0x77f   :  { %v3298_v32 = vmul.f32 1.442695, %v3297_v1  ;;  %v3314_v4 = vmul.f32 1.442695, %v3313_v27  ;;  %v3330_v52 = vmul.f32 1.442695, %v3329_v55 }
 0x780   :  { %v3346_v24 = vmul.f32 1.442695, %v3345_v37  ;;  %v3362_v35 = vmul.f32 1.442695, %v3361_v3  ;;  %v3378_v38 = vmul.f32 1.442695, %v3377_v18 }
 0x781   :  { %4063 = vpow2.f32 %v3298_v32  ;;  %v3410_v37 = vmul.f32 1.442695, %v3409_v2 }
 0x782   :  { %4065 = vpow2.f32 %v3314_v4 }
 0x783   :  { %4067 = vpow2.f32 %v3330_v52 }
 0x784   :  { %4069 = vpow2.f32 %v3346_v24 }
 0x785   :  { %4071 = vpow2.f32 %v3362_v35 }
 0x786   :  { %4073 = vpow2.f32 %v3378_v38 }
 0x787   :  { %v4064_v49 = vpop.eup %4063 }
 0x788   :  { %v4066_v14 = vpop.eup %4065  ;;  %v3305_v45 = vmul.f32 %v4064_v49, %v7542_v36  ;;  %v3306_v54 = vmul.f32 %v4064_v49, %v7541_v34  ;;  %v3307_v21 = vmul.f32 %v4064_v49, %v7017_v51  ;;  %v3308_v16 = vmul.f32 %v4064_v49, %v7011_v43 }
 0x789   :  { %v3316_v40 = vadd.f32 %v4066_v14, %v4064_v49  ;;  %v3321_v22 = vmul.f32 %v4066_v14, %v7496_v62  ;;  %v3322_v29 = vmul.f32 %v4066_v14, %v7495_v26  ;;  %v3323_v47 = vmul.f32 %v4066_v14, %v6722_v59  ;;  %v4068_v30 = vpop.eup %4067 }
 0x78a   :  { %v3324_v31 = vmul.f32 %v4066_v14, %v6715_v5  ;;  %v4070_v42 = vpop.eup %4069  ;;  %v3394_v51 = vmul.f32 1.442695, %v3393_v63  ;;  %v3337_v41 = vmul.f32 %v4068_v30, %v7500_v12  ;;  %v3338_v62 = vmul.f32 %v4068_v30, %v7497_v13 }
 0x78b   :  { %v3325_v17 = vadd.f32 %v3321_v22, %v3305_v45  ;;  %v3326_v0 = vadd.f32 %v3322_v29, %v3306_v54  ;;  %v3327_v44 = vadd.f32 %v3323_v47, %v3307_v21  ;;  %v3332_v36 = vadd.f32 %v4068_v30, %v3316_v40  ;;  %v4072_v43 = vpop.eup %4071 }
 0x78c   :  { %v3328_v34 = vadd.f32 %v3324_v31, %v3308_v16  ;;  %v3339_v26 = vmul.f32 %v4068_v30, %v6459_v10  ;;  %v3340_v46 = vmul.f32 %v4068_v30, %v6453_v50  ;;  %v3353_v32 = vmul.f32 %v4070_v42, %v7501_v60  ;;  %v4074_v12 = vpop.eup %4073 }
 0x78d   :  { %v3348_v59 = vadd.f32 %v4070_v42, %v3332_v36  ;;  %v3341_v5 = vadd.f32 %v3337_v41, %v3325_v17  ;;  %v3342_v57 = vadd.f32 %v3338_v62, %v3326_v0  ;;  %v3354_v11 = vmul.f32 %v4070_v42, %v7498_v15  ;;  %v7547_v17 = vld [vmem:[#allocation58_spill] sm:$0xff] }
 0x78e   :  { %v3343_v1 = vadd.f32 %v3339_v26, %v3327_v44  ;;  %v3344_v27 = vadd.f32 %v3340_v46, %v3328_v34  ;;  %v3355_v6 = vmul.f32 %v4070_v42, %v6137_v7  ;;  %4075 = vpow2.f32 %v3394_v51  ;;  %v7548_v44 = vld [vmem:[#allocation77_spill] sm:$0xff] }
 0x78f   :  { %v3364_v55 = vadd.f32 %v4072_v43, %v3348_v59  ;;  %v3356_v13 = vmul.f32 %v4070_v42, %v6131_v20  ;;  %v3357_v10 = vadd.f32 %v3353_v32, %v3341_v5  ;;  %v3358_v4 = vadd.f32 %v3354_v11, %v3342_v57  ;;  %v7549_v42 = vld [vmem:[#allocation75_spill] sm:$0xff] }
 0x790   :  { %v3359_v3 = vadd.f32 %v3355_v6, %v3343_v1  ;;  %v3369_v24 = vmul.f32 %v4072_v43, %v7546_v53  ;;  %v3370_v35 = vmul.f32 %v4072_v43, %v7545_v8  ;;  %v3371_v18 = vmul.f32 %v4072_v43, %v7544_v48 }
 0x791   :  { %v3360_v50 = vadd.f32 %v3356_v13, %v3344_v27  ;;  %v3380_v52 = vadd.f32 %v4074_v12, %v3364_v55  ;;  %4077 = vpow2.f32 %v3410_v37  ;;  %v3372_v15 = vmul.f32 %v4072_v43, %v7543_v33 }
 0x792   :  { %v3373_v7 = vadd.f32 %v3369_v24, %v3357_v10  ;;  %v3374_v49 = vadd.f32 %v3370_v35, %v3358_v4  ;;  %v3375_v38 = vadd.f32 %v3371_v18, %v3359_v3  ;;  %v3385_v14 = vmul.f32 %v4074_v12, %v6456_v9 }
 0x793   :  { %v3376_v63 = vadd.f32 %v3372_v15, %v3360_v50  ;;  %v3386_v45 = vmul.f32 %v4074_v12, %v6451_v28  ;;  %v3387_v54 = vmul.f32 %v4074_v12, %v7502_v56  ;;  %v3388_v53 = vmul.f32 %v4074_v12, %v7499_v25 }
 0x794   :  { %v4076_v60 = vpop.eup %4075  ;;  %v3389_v21 = vadd.f32 %v3385_v14, %v3373_v7 }
 0x795   :  { %v3396_v20 = vadd.f32 %v4076_v60, %v3380_v52  ;;  %v3390_v48 = vadd.f32 %v3386_v45, %v3374_v49  ;;  %v3391_v16 = vadd.f32 %v3387_v54, %v3375_v38  ;;  %v3392_v40 = vadd.f32 %v3388_v53, %v3376_v63 }
 0x796   :  { %v3401_v22 = vmul.f32 %v4076_v60, %v6718_v58  ;;  %v3402_v29 = vmul.f32 %v4076_v60, %v6713_v39  ;;  %v3403_v47 = vmul.f32 %v4076_v60, %v7505_v23  ;;  %v3404_v9 = vmul.f32 %v4076_v60, %v7503_v61 }
 0x797   :  { %v4078_v8 = vpop.eup %4077 }
 0x798   :  { %v3412_v33 = vadd.f32 %v4078_v8, %v3396_v20  ;;  %v3405_v28 = vadd.f32 %v3401_v22, %v3389_v21  ;;  %v3406_v30 = vadd.f32 %v3402_v29, %v3390_v48  ;;  %v3407_v56 = vadd.f32 %v3403_v47, %v3391_v16 }
 0x799   :  { %v3408_v31 = vadd.f32 %v3404_v9, %v3392_v40  ;;  %v3413_v25 = vmul.f32 %v4078_v8, %v7014_v19  ;;  %v3414_v0 = vmul.f32 %v4078_v8, %v7547_v17  ;;  %v3415_v36 = vmul.f32 %v4078_v8, %v7548_v44 }
 0x79a   :  { %4079 = vrcp.f32 %v3412_v33  ;;  %v3416_v34 = vmul.f32 %v4078_v8, %v7549_v42 }
 0x79b   :  { %v3417_v58 = vadd.f32 %v3413_v25, %v3405_v28  ;;  %v3418_v51 = vadd.f32 %v3414_v0, %v3406_v30  ;;  %v3419_v39 = vadd.f32 %v3415_v36, %v3407_v56 }
 0x79c   :  { %v3420_v23 = vadd.f32 %v3416_v34, %v3408_v31 }
 0x7a0   :  { %v4080_v2 = vpop.eup %4079 }
 0x7a1   :  { %v3422_v43 = vmul.f32 %v4080_v2, %v3417_v58  ;;  %v3423_v61 = vmul.f32 %v4080_v2, %v3418_v51  ;;  %v3424_v41 = vmul.f32 %v4080_v2, %v3419_v39  ;;  %v3425_v62 = vmul.f32 %v4080_v2, %v3420_v23 }
 0x7a3   :  { %3426 = vst [vmem:[%s7132_s9] sm:$0xff] %v3422_v43 }
 0x7a4   :  { %3427 = vst [vmem:[%s7132_s9 + $0x8] sm:$0xff] %v3423_v61 }
 0x7a5   :  { %3428 = vst [vmem:[%s7132_s9 + $0x10] sm:$0xff] %v3424_v41 }
 0x7a6   :  { %3429 = vst [vmem:[%s7132_s9 + $0x18] sm:$0xff] %v3425_v62 }

</bundles_post_ra>
